<compile_context>
chip_gen: v7x
topology: tpu7x:2x2x1
jax: 0.10.0
libtpu: 0.0.40
codegen_flags: <defaults>
</compile_context>

<pallas_src>
import functools

import jax
import jax.numpy as jnp
from jax.experimental import pallas as pl
from jax.experimental.pallas import tpu as pltpu

NODE_FEAT = 27 + 50          # 77 raw node features
NODE_FEAT_PAD = 128          # zero-padded contraction dim for the embedding
NODE_DIM = 64
EDGE_DIM = 32
HIDDEN_DIM = 128
NUM_LAYERS = 3
BN_EPS = 1e-5
W_LANES = 3 * 128            # per-layer weight slab: 3 lane-aligned 128-wide tiles

# Rows inside the packed f32 vector slab ([16, 128]):
#   row 0                 : node-embedding bias                     (lanes 0:64)
#   rows 1+4l .. 4+4l     : layer-l g_scale, g_bias, bn_scale, bn_shift (lanes 0:64)
#   row 1+4L              : final BN scale (gamma/sqrt(var+eps))    (128 lanes)
#   row 2+4L              : final shift (fin_b*scale + beta)        (128 lanes)
_FS_ROW = 1 + 4 * NUM_LAYERS
_VEC_ROWS = 16


def _round_up(x, m):
    return ((x + m - 1) // m) * m


# ---------------------------------------------------------------------------
# Kernel
# ---------------------------------------------------------------------------
def gnn_kernel(data_ref, smat_ref, w_ref, vec_ref, out_ref):
    n_p, e_p = smat_ref.shape          # padded node / edge counts (static)
    b_p = out_ref.shape[0]             # padded graph count (static)

    vec = vec_ref[...]                                  # [16, 128] f32
    nemb_b = vec[0:1, :NODE_DIM]                        # [1, 64]

    # --- unpack the graph-data slab (all row offsets are multiples of 8) ---
    x_feat = data_ref[0:n_p, 0:NODE_FEAT_PAD]                           # [n_p,128] bf16
    gmat = data_ref[n_p:n_p + e_p, :]                                   # [e_p,n_p] bf16
    pmat = data_ref[n_p + e_p:n_p + e_p + b_p, :]                       # [b_p,n_p] bf16
    eattr = data_ref[n_p + e_p + b_p:n_p + 2 * e_p + b_p, 0:1]          # [e_p,1]
    eattr = eattr.astype(jnp.float32)
    smat = smat_ref[...]                                                # [n_p,e_p] bf16

    # --- node embedding: [n_p,128] @ [128,64] ---
    nemb_w = w_ref[0:NODE_FEAT_PAD, 0:NODE_DIM]                         # bf16
    x = jnp.dot(x_feat, nemb_w, preferred_element_type=jnp.float32) + nemb_b

    for l in range(NUM_LAYERS):                          # static unroll
        r = 1 + 4 * l
        g_scale = vec[r + 0:r + 1, :NODE_DIM]            # [1, 64]
        g_bias = vec[r + 1:r + 2, :NODE_DIM]
        bn_scale = vec[r + 2:r + 3, :NODE_DIM]
        bn_shift = vec[r + 3:r + 4, :NODE_DIM]

        # fused node-side matmul with lane-aligned segments:
        #   xw lanes   0: 64 = x           (identity)
        #   xw lanes 128:192 = x @ Wgate_x
        #   xw lanes 256:320 = x @ Wnode
        w_aug = w_ref[NODE_FEAT_PAD + NODE_DIM * l:
                      NODE_FEAT_PAD + NODE_DIM * (l + 1), :]            # [64,384] bf16
        xw = jnp.dot(x.astype(jnp.bfloat16), w_aug,
                     preferred_element_type=jnp.float32)                # [n_p,384] f32

        # one gather matmul yields both x_j (tile 0) and x_j@Wgate_x (tile 1)
        g = jnp.dot(gmat, xw[:, :256].astype(jnp.bfloat16),
                    preferred_element_type=jnp.float32)                 # [e_p,256]
        x_j = g[:, 0:NODE_DIM]                                          # lanes 0:64

        # message: gate = sigmoid(x_j@Wg1 + edge path); edge path is a rank-1
        # VPU broadcast (edge_attr is scalar per edge, folded host-side).
        gate = jax.nn.sigmoid(g[:, 128:128 + NODE_DIM] + eattr * g_scale + g_bias)
        msg = gate * x_j                                                # [e_p,64] f32

        # aggregate (scatter-add) + update + folded BatchNorm (eval) + ReLU
        aggr = jnp.dot(smat, msg.astype(jnp.bfloat16),
                       preferred_element_type=jnp.float32)              # [n_p,64]
        out = (xw[:, 256:256 + NODE_DIM] + aggr) * bn_scale + bn_shift
        x = jnp.maximum(out, 0.0)

    # global mean pool (count-normalized one-hot matmul) + final projection
    pooled = jnp.dot(pmat, x.astype(jnp.bfloat16),
                     preferred_element_type=jnp.float32)                # [b_p,64]
    fin_w = w_ref[NODE_FEAT_PAD + NODE_DIM * NUM_LAYERS:
                  NODE_FEAT_PAD + NODE_DIM * (NUM_LAYERS + 1), 0:HIDDEN_DIM]
    fs = vec[_FS_ROW:_FS_ROW + 1, :]
    fb = vec[_FS_ROW + 1:_FS_ROW + 2, :]
    h = jnp.dot(pooled.astype(jnp.bfloat16), fin_w,
                preferred_element_type=jnp.float32) * fs + fb
    out_ref[...] = jnp.maximum(h, 0.0)                   # ReLU; Dropout = identity


# ---------------------------------------------------------------------------
# Host-side parameter folding (one-time, no per-call cost)
# ---------------------------------------------------------------------------
def fold_params(p):
    inv = 1.0 / jnp.sqrt(1.0 + BN_EPS)   # BN eval: running_mean=0, running_var=1
    eye = jnp.eye(NODE_DIM, dtype=jnp.float32)
    z64 = jnp.zeros((NODE_DIM, NODE_DIM), jnp.float32)
    lane_pad = HIDDEN_DIM - NODE_DIM

    w_rows = [jnp.pad(p["nemb_w"], ((0, NODE_FEAT_PAD - NODE_FEAT),
                                    (0, W_LANES - NODE_DIM)))]          # [128,384]
    vec_rows = [jnp.pad(p["nemb_b"], ((0, 0), (0, lane_pad)))]

    for l in range(NUM_LAYERS):
        wg1 = p["cw_gate"][l][:NODE_DIM]                 # [64, 64] (x_j side)
        wg2 = p["cw_gate"][l][NODE_DIM:]                 # [64, 64] (edge side)
        wn = p["cw_node"][l]                             # [64, 64]
        # lane-aligned segments: [I | 0 | Wg1 | 0 | Wn | 0] -> [64, 384]
        w_rows.append(jnp.concatenate([eye, z64, wg1, z64, wn, z64], axis=1))

        # edge path: (edge_attr @ eemb_w + eemb_b) @ cw_edge + cb_edge, then @ wg2
        e_scale = p["eemb_w"] @ p["cw_edge"][l]                          # [1, 64]
        e_bias = p["eemb_b"] @ p["cw_edge"][l] + p["cb_edge"][l]         # [1, 64]
        g_scale = e_scale @ wg2                                          # [1, 64]
        g_bias = e_bias @ wg2 + p["cb_gate"][l]                          # [1, 64]

        bn_scale = p["bn_g"][l] * inv                                    # [1, 64]
        bn_shift = p["cb_node"][l] * bn_scale + p["bn_b"][l]             # [1, 64]
        for v in (g_scale, g_bias, bn_scale, bn_shift):
            vec_rows.append(jnp.pad(v, ((0, 0), (0, lane_pad))))

    # final projection weight padded into the same [64, 384] slab format
    w_rows.append(jnp.pad(p["fin_w"], ((0, 0), (0, W_LANES - HIDDEN_DIM))))
    fs = p["fbn_g"] * inv                                                # [1, 128]
    fb = p["fin_b"] * fs + p["fbn_b"]                                    # [1, 128]
    vec_rows += [fs, fb]

    w_slab = jnp.concatenate(w_rows, axis=0).astype(jnp.bfloat16)        # [384, 384]
    vec_pack = jnp.concatenate(vec_rows, axis=0)                         # [15, 128]
    vec_pack = jnp.pad(vec_pack, ((0, _VEC_ROWS - vec_pack.shape[0]), (0, 0)))
    return {"w_slab": w_slab, "vec_pack": vec_pack.astype(jnp.float32)}


# ---------------------------------------------------------------------------
# Host-side graph packing: one bf16 data slab + the scatter operator
# ---------------------------------------------------------------------------
def pack_graph(x_feat, edge_attr, src, dst, batch, n_graphs):
    n, f = x_feat.shape
    e = edge_attr.shape[0]
    n_p = max(_round_up(n, 128), NODE_FEAT_PAD)   # node rows & slab lane width
    e_p = _round_up(e, 128)
    b_p = _round_up(n_graphs, 8)

    xf = jnp.zeros((n_p, n_p), jnp.float32).at[:n, :f].set(x_feat)
    gmat = jnp.zeros((e_p, n_p), jnp.float32).at[:e, :n].set(
        jax.nn.one_hot(src, n, dtype=jnp.float32))
    counts = jnp.maximum(
        jax.ops.segment_sum(jnp.ones((n,), jnp.float32), batch,
                            num_segments=n_graphs), 1.0)
    pmat = jax.nn.one_hot(batch, n_graphs, dtype=jnp.float32).T / counts[:, None]
    pmat_p = jnp.zeros((b_p, n_p), jnp.float32).at[:n_graphs, :n].set(pmat)
    ea = jnp.zeros((e_p, n_p), jnp.float32).at[:e, 0:1].set(edge_attr)

    data_slab = jnp.concatenate([xf, gmat, pmat_p, ea], axis=0).astype(jnp.bfloat16)
    smat = jnp.zeros((n_p, e_p), jnp.float32).at[:n, :e].set(
        jax.nn.one_hot(dst, n, dtype=jnp.float32).T).astype(jnp.bfloat16)
    return data_slab, smat


# ---------------------------------------------------------------------------
# pallas_call wrapper
# ---------------------------------------------------------------------------
@functools.partial(jax.jit, static_argnames=("n_graphs",))
def gnn_forward(data_slab, smat, w_slab, vec_pack, n_graphs):
    n_p, e_p = smat.shape
    b_p = data_slab.shape[0] - n_p - 2 * e_p

    flops = 2 * n_p * NODE_FEAT_PAD * NODE_DIM
    flops += NUM_LAYERS * 2 * (n_p * NODE_DIM * W_LANES
                               + e_p * n_p * 2 * HIDDEN_DIM
                               + n_p * e_p * NODE_DIM)
    flops += 2 * (b_p * n_p * NODE_DIM + b_p * NODE_DIM * HIDDEN_DIM)
    bytes_accessed = sum(int(a.size) * a.dtype.itemsize
                         for a in (data_slab, smat, w_slab, vec_pack))
    bytes_accessed += b_p * HIDDEN_DIM * 4

    out = pl.pallas_call(
        gnn_kernel,
        out_shape=jax.ShapeDtypeStruct((b_p, HIDDEN_DIM), jnp.float32),
        in_specs=[pl.BlockSpec(memory_space=pltpu.MemorySpace.VMEM)] * 4,
        out_specs=pl.BlockSpec(memory_space=pltpu.MemorySpace.VMEM),
        cost_estimate=pl.CostEstimate(
            flops=int(flops),
            transcendentals=int(NUM_LAYERS * e_p * NODE_DIM),
            bytes_accessed=int(bytes_accessed)),
    )(data_slab, smat, w_slab, vec_pack)
    return out[:n_graphs]


# ---------------------------------------------------------------------------
# Pure-JAX reference replicating the PyTorch forward (eval mode), unfused, f32
# ---------------------------------------------------------------------------
def gnn_reference(x_feat, edge_attr, gmat, smat, pmat, p):
    inv = 1.0 / jnp.sqrt(1.0 + BN_EPS)
    x = x_feat @ p["nemb_w"] + p["nemb_b"]
    e = edge_attr @ p["eemb_w"] + p["eemb_b"]
    for l in range(NUM_LAYERS):
        x_j = gmat @ x
        ef = e @ p["cw_edge"][l] + p["cb_edge"][l]
        comb = jnp.concatenate([x_j, ef], axis=1)
        gate = jax.nn.sigmoid(comb @ p["cw_gate"][l] + p["cb_gate"][l])
        aggr = smat @ (gate * x_j)
        out = x @ p["cw_node"][l] + p["cb_node"][l] + aggr
        out = out * inv * p["bn_g"][l] + p["bn_b"][l]
        x = jnp.maximum(out, 0.0)
    pooled = pmat @ x
    h = pooled @ p["fin_w"] + p["fin_b"]
    h = h * inv * p["fbn_g"] + p["fbn_b"]
    return jnp.maximum(h, 0.0)


if __name__ == "__main__":
    # 8 graphs of 16 nodes / 32 edges stacked per pallas_call (block-diagonal
    # connectivity) -> N=128 nodes, E=256 edges per launch.
    G, NPG, EPG = 8, 16, 32
    N, E = G * NPG, G * EPG

    key = jax.random.PRNGKey(0)
    kit = iter(jax.random.split(key, 32))

    def init(shape, scale=0.1):
        return (scale * jax.random.normal(next(kit), shape)).astype(jnp.float32)

    params = dict(
        nemb_w=init((NODE_FEAT, NODE_DIM)), nemb_b=init((1, NODE_DIM)),
        eemb_w=init((1, EDGE_DIM)),         eemb_b=init((1, EDGE_DIM)),
        cw_edge=init((NUM_LAYERS, EDGE_DIM, NODE_DIM)),
        cb_edge=init((NUM_LAYERS, 1, NODE_DIM)),
        cw_gate=init((NUM_LAYERS, 2 * NODE_DIM, NODE_DIM)),
        cb_gate=init((NUM_LAYERS, 1, NODE_DIM)),
        cw_node=init((NUM_LAYERS, NODE_DIM, NODE_DIM)),
        cb_node=init((NUM_LAYERS, 1, NODE_DIM)),
        bn_g=jnp.ones((NUM_LAYERS, 1, NODE_DIM), jnp.float32),
        bn_b=jnp.zeros((NUM_LAYERS, 1, NODE_DIM), jnp.float32),
        fin_w=init((NODE_DIM, HIDDEN_DIM)), fin_b=init((1, HIDDEN_DIM)),
        fbn_g=jnp.ones((1, HIDDEN_DIM), jnp.float32),
        fbn_b=jnp.zeros((1, HIDDEN_DIM), jnp.float32),
    )

    # graph batch: edges stay within each graph's node block
    x_feat = jax.random.normal(next(kit), (N, NODE_FEAT), dtype=jnp.float32)
    edge_attr = jax.random.normal(next(kit), (E, 1), dtype=jnp.float32)
    goff = (jnp.arange(G, dtype=jnp.int32) * NPG)[:, None]
    src = (jax.random.randint(next(kit), (G, EPG), 0, NPG) + goff).reshape(-1)
    dst = (jax.random.randint(next(kit), (G, EPG), 0, NPG) + goff).reshape(-1)
    batch = jnp.repeat(jnp.arange(G, dtype=jnp.int32), NPG)

    # packed kernel inputs (4 DMA slabs total)
    folded = fold_params(params)
    data_slab, smat_pk = pack_graph(x_feat, edge_attr, src, dst, batch, G)
    data_slab, smat_pk = jax.block_until_ready((data_slab, smat_pk))
    folded = jax.tree_util.tree_map(jax.block_until_ready, folded)

    out = jax.block_until_ready(
        gnn_forward(data_slab, smat_pk, folded["w_slab"], folded["vec_pack"], G))

    # unfused f32 reference operators
    gmat_ref = jax.nn.one_hot(src, N, dtype=jnp.float32)
    smat_ref_m = jax.nn.one_hot(dst, N, dtype=jnp.float32).T
    counts = jnp.maximum(
        jax.ops.segment_sum(jnp.ones((N,), jnp.float32), batch, num_segments=G), 1.0)
    pmat_ref = jax.nn.one_hot(batch, G, dtype=jnp.float32).T / counts[:, None]
    ref = gnn_reference(x_feat, edge_attr, gmat_ref, smat_ref_m, pmat_ref, params)

    assert out.shape == (G, HIDDEN_DIM)
    # bf16 MXU operands + folded-parameter reassociation vs the unfused f32
    # reference -> modest tolerance (one-hot operators remain exact in bf16)
    assert jnp.allclose(out, ref, atol=2e-2, rtol=2e-2), "mismatch vs JAX reference"
    print("KERNEL_OK")
</pallas_src>

<mosaic_0001>
module attributes {stable_mosaic.version = 11 : i64} {
  func.func @gnn_kernel(%arg0: memref<648x128xbf16, #tpu.memory_space<vmem>>, %arg1: memref<128x256xbf16, #tpu.memory_space<vmem>>, %arg2: memref<384x384xbf16, #tpu.memory_space<vmem>>, %arg3: memref<16x128xf32, #tpu.memory_space<vmem>>, %arg4: memref<8x128xf32, #tpu.memory_space<vmem>>) attributes {dimension_semantics = [], scalar_prefetch = 0 : i64, scratch_operands = 0 : i64, tpu.core_type = #tpu.core_type<tc>} {
    %c0 = arith.constant 0 : index
    %c0_0 = arith.constant 0 : index
    %0 = vector.load %arg3[%c0, %c0_0] : memref<16x128xf32, #tpu.memory_space<vmem>>, vector<16x128xf32>
    %1 = vector.extract_strided_slice %0 {offsets = [0, 0], sizes = [1, 64], strides = [1, 1]} : vector<16x128xf32> to vector<1x64xf32>
    %c0_1 = arith.constant 0 : index
    %c0_2 = arith.constant 0 : index
    %2 = vector.load %arg0[%c0_1, %c0_2] : memref<648x128xbf16, #tpu.memory_space<vmem>>, vector<128x128xbf16>
    %c128 = arith.constant 128 : index
    %c0_3 = arith.constant 0 : index
    %3 = vector.load %arg0[%c128, %c0_3] : memref<648x128xbf16, #tpu.memory_space<vmem>>, vector<256x128xbf16>
    %c384 = arith.constant 384 : index
    %c0_4 = arith.constant 0 : index
    %4 = vector.load %arg0[%c384, %c0_4] : memref<648x128xbf16, #tpu.memory_space<vmem>>, vector<8x128xbf16>
    %c392 = arith.constant 392 : index
    %c0_5 = arith.constant 0 : index
    %5 = vector.load %arg0[%c392, %c0_5] : memref<648x128xbf16, #tpu.memory_space<vmem>>, vector<256x1xbf16>
    %6 = arith.extf %5 : vector<256x1xbf16> to vector<256x1xf32>
    %c0_6 = arith.constant 0 : index
    %c0_7 = arith.constant 0 : index
    %7 = vector.load %arg1[%c0_6, %c0_7] : memref<128x256xbf16, #tpu.memory_space<vmem>>, vector<128x256xbf16>
    %c0_8 = arith.constant 0 : index
    %c0_9 = arith.constant 0 : index
    %8 = vector.load %arg2[%c0_8, %c0_9] : memref<384x384xbf16, #tpu.memory_space<vmem>>, vector<128x64xbf16>
    %cst = arith.constant dense<0.000000e+00> : vector<128x64xf32>
    %9 = tpu.matmul %2, %8, %cst {dimension_numbers = #tpu.dot_dimension_numbers<[1], [0], [0], [1], [0, 0, 1, 1], [], []>} : vector<128x128xbf16>, vector<128x64xbf16>, vector<128x64xf32> -> vector<128x64xf32>
    %10 = vector.broadcast %1 : vector<1x64xf32> to vector<128x64xf32>
    %11 = arith.addf %9, %10 : vector<128x64xf32>
    %12 = vector.extract_strided_slice %0 {offsets = [1, 0], sizes = [1, 64], strides = [1, 1]} : vector<16x128xf32> to vector<1x64xf32>
    %13 = vector.extract_strided_slice %0 {offsets = [2, 0], sizes = [1, 64], strides = [1, 1]} : vector<16x128xf32> to vector<1x64xf32>
    %14 = vector.extract_strided_slice %0 {offsets = [3, 0], sizes = [1, 64], strides = [1, 1]} : vector<16x128xf32> to vector<1x64xf32>
    %15 = vector.extract_strided_slice %0 {offsets = [4, 0], sizes = [1, 64], strides = [1, 1]} : vector<16x128xf32> to vector<1x64xf32>
    %c128_10 = arith.constant 128 : index
    %c0_11 = arith.constant 0 : index
    %16 = vector.load %arg2[%c128_10, %c0_11] : memref<384x384xbf16, #tpu.memory_space<vmem>>, vector<64x384xbf16>
    %17 = arith.truncf %11 : vector<128x64xf32> to vector<128x64xbf16>
    %cst_12 = arith.constant dense<0.000000e+00> : vector<128x384xf32>
    %18 = tpu.matmul %17, %16, %cst_12 {dimension_numbers = #tpu.dot_dimension_numbers<[1], [0], [0], [1], [0, 0, 1, 1], [], []>} : vector<128x64xbf16>, vector<64x384xbf16>, vector<128x384xf32> -> vector<128x384xf32>
    %19 = vector.extract_strided_slice %18 {offsets = [0, 0], sizes = [128, 256], strides = [1, 1]} : vector<128x384xf32> to vector<128x256xf32>
    %20 = arith.truncf %19 : vector<128x256xf32> to vector<128x256xbf16>
    %cst_13 = arith.constant dense<0.000000e+00> : vector<256x256xf32>
    %21 = tpu.matmul %3, %20, %cst_13 {dimension_numbers = #tpu.dot_dimension_numbers<[1], [0], [0], [1], [0, 0, 1, 1], [], []>} : vector<256x128xbf16>, vector<128x256xbf16>, vector<256x256xf32> -> vector<256x256xf32>
    %22 = vector.extract_strided_slice %21 {offsets = [0, 0], sizes = [256, 64], strides = [1, 1]} : vector<256x256xf32> to vector<256x64xf32>
    %23 = vector.extract_strided_slice %21 {offsets = [0, 128], sizes = [256, 64], strides = [1, 1]} : vector<256x256xf32> to vector<256x64xf32>
    %24 = vector.broadcast %6 : vector<256x1xf32> to vector<256x64xf32>
    %25 = vector.broadcast %12 : vector<1x64xf32> to vector<256x64xf32>
    %26 = arith.mulf %24, %25 : vector<256x64xf32>
    %27 = arith.addf %23, %26 : vector<256x64xf32>
    %28 = vector.broadcast %13 : vector<1x64xf32> to vector<256x64xf32>
    %29 = arith.addf %27, %28 : vector<256x64xf32>
    %30 = arith.negf %29 : vector<256x64xf32>
    %31 = math.exp %30 : vector<256x64xf32>
    %cst_14 = arith.constant 1.000000e+00 : f32
    %32 = vector.broadcast %cst_14 : f32 to vector<256x64xf32>
    %33 = arith.addf %32, %31 : vector<256x64xf32>
    %34 = arith.divf %32, %33 : vector<256x64xf32>
    %35 = arith.mulf %34, %22 : vector<256x64xf32>
    %36 = arith.truncf %35 : vector<256x64xf32> to vector<256x64xbf16>
    %cst_15 = arith.constant dense<0.000000e+00> : vector<128x64xf32>
    %37 = tpu.matmul %7, %36, %cst_15 {dimension_numbers = #tpu.dot_dimension_numbers<[1], [0], [0], [1], [0, 0, 1, 1], [], []>} : vector<128x256xbf16>, vector<256x64xbf16>, vector<128x64xf32> -> vector<128x64xf32>
    %38 = vector.extract_strided_slice %18 {offsets = [0, 256], sizes = [128, 64], strides = [1, 1]} : vector<128x384xf32> to vector<128x64xf32>
    %39 = arith.addf %38, %37 : vector<128x64xf32>
    %40 = vector.broadcast %14 : vector<1x64xf32> to vector<128x64xf32>
    %41 = arith.mulf %39, %40 : vector<128x64xf32>
    %42 = vector.broadcast %15 : vector<1x64xf32> to vector<128x64xf32>
    %43 = arith.addf %41, %42 : vector<128x64xf32>
    %cst_16 = arith.constant 0.000000e+00 : f32
    %44 = vector.broadcast %cst_16 : f32 to vector<128x64xf32>
    %45 = arith.maximumf %43, %44 : vector<128x64xf32>
    %46 = vector.extract_strided_slice %0 {offsets = [5, 0], sizes = [1, 64], strides = [1, 1]} : vector<16x128xf32> to vector<1x64xf32>
    %47 = vector.extract_strided_slice %0 {offsets = [6, 0], sizes = [1, 64], strides = [1, 1]} : vector<16x128xf32> to vector<1x64xf32>
    %48 = vector.extract_strided_slice %0 {offsets = [7, 0], sizes = [1, 64], strides = [1, 1]} : vector<16x128xf32> to vector<1x64xf32>
    %49 = vector.extract_strided_slice %0 {offsets = [8, 0], sizes = [1, 64], strides = [1, 1]} : vector<16x128xf32> to vector<1x64xf32>
    %c192 = arith.constant 192 : index
    %c0_17 = arith.constant 0 : index
    %50 = vector.load %arg2[%c192, %c0_17] : memref<384x384xbf16, #tpu.memory_space<vmem>>, vector<64x384xbf16>
    %51 = arith.truncf %45 : vector<128x64xf32> to vector<128x64xbf16>
    %cst_18 = arith.constant dense<0.000000e+00> : vector<128x384xf32>
    %52 = tpu.matmul %51, %50, %cst_18 {dimension_numbers = #tpu.dot_dimension_numbers<[1], [0], [0], [1], [0, 0, 1, 1], [], []>} : vector<128x64xbf16>, vector<64x384xbf16>, vector<128x384xf32> -> vector<128x384xf32>
    %53 = vector.extract_strided_slice %52 {offsets = [0, 0], sizes = [128, 256], strides = [1, 1]} : vector<128x384xf32> to vector<128x256xf32>
    %54 = arith.truncf %53 : vector<128x256xf32> to vector<128x256xbf16>
    %cst_19 = arith.constant dense<0.000000e+00> : vector<256x256xf32>
    %55 = tpu.matmul %3, %54, %cst_19 {dimension_numbers = #tpu.dot_dimension_numbers<[1], [0], [0], [1], [0, 0, 1, 1], [], []>} : vector<256x128xbf16>, vector<128x256xbf16>, vector<256x256xf32> -> vector<256x256xf32>
    %56 = vector.extract_strided_slice %55 {offsets = [0, 0], sizes = [256, 64], strides = [1, 1]} : vector<256x256xf32> to vector<256x64xf32>
    %57 = vector.extract_strided_slice %55 {offsets = [0, 128], sizes = [256, 64], strides = [1, 1]} : vector<256x256xf32> to vector<256x64xf32>
    %58 = vector.broadcast %6 : vector<256x1xf32> to vector<256x64xf32>
    %59 = vector.broadcast %46 : vector<1x64xf32> to vector<256x64xf32>
    %60 = arith.mulf %58, %59 : vector<256x64xf32>
    %61 = arith.addf %57, %60 : vector<256x64xf32>
    %62 = vector.broadcast %47 : vector<1x64xf32> to vector<256x64xf32>
    %63 = arith.addf %61, %62 : vector<256x64xf32>
    %64 = arith.negf %63 : vector<256x64xf32>
    %65 = math.exp %64 : vector<256x64xf32>
    %cst_20 = arith.constant 1.000000e+00 : f32
    %66 = vector.broadcast %cst_20 : f32 to vector<256x64xf32>
    %67 = arith.addf %66, %65 : vector<256x64xf32>
    %68 = arith.divf %66, %67 : vector<256x64xf32>
    %69 = arith.mulf %68, %56 : vector<256x64xf32>
    %70 = arith.truncf %69 : vector<256x64xf32> to vector<256x64xbf16>
    %cst_21 = arith.constant dense<0.000000e+00> : vector<128x64xf32>
    %71 = tpu.matmul %7, %70, %cst_21 {dimension_numbers = #tpu.dot_dimension_numbers<[1], [0], [0], [1], [0, 0, 1, 1], [], []>} : vector<128x256xbf16>, vector<256x64xbf16>, vector<128x64xf32> -> vector<128x64xf32>
    %72 = vector.extract_strided_slice %52 {offsets = [0, 256], sizes = [128, 64], strides = [1, 1]} : vector<128x384xf32> to vector<128x64xf32>
    %73 = arith.addf %72, %71 : vector<128x64xf32>
    %74 = vector.broadcast %48 : vector<1x64xf32> to vector<128x64xf32>
    %75 = arith.mulf %73, %74 : vector<128x64xf32>
    %76 = vector.broadcast %49 : vector<1x64xf32> to vector<128x64xf32>
    %77 = arith.addf %75, %76 : vector<128x64xf32>
    %cst_22 = arith.constant 0.000000e+00 : f32
    %78 = vector.broadcast %cst_22 : f32 to vector<128x64xf32>
    %79 = arith.maximumf %77, %78 : vector<128x64xf32>
    %80 = vector.extract_strided_slice %0 {offsets = [9, 0], sizes = [1, 64], strides = [1, 1]} : vector<16x128xf32> to vector<1x64xf32>
    %81 = vector.extract_strided_slice %0 {offsets = [10, 0], sizes = [1, 64], strides = [1, 1]} : vector<16x128xf32> to vector<1x64xf32>
    %82 = vector.extract_strided_slice %0 {offsets = [11, 0], sizes = [1, 64], strides = [1, 1]} : vector<16x128xf32> to vector<1x64xf32>
    %83 = vector.extract_strided_slice %0 {offsets = [12, 0], sizes = [1, 64], strides = [1, 1]} : vector<16x128xf32> to vector<1x64xf32>
    %c256 = arith.constant 256 : index
    %c0_23 = arith.constant 0 : index
    %84 = vector.load %arg2[%c256, %c0_23] : memref<384x384xbf16, #tpu.memory_space<vmem>>, vector<64x384xbf16>
    %85 = arith.truncf %79 : vector<128x64xf32> to vector<128x64xbf16>
    %cst_24 = arith.constant dense<0.000000e+00> : vector<128x384xf32>
    %86 = tpu.matmul %85, %84, %cst_24 {dimension_numbers = #tpu.dot_dimension_numbers<[1], [0], [0], [1], [0, 0, 1, 1], [], []>} : vector<128x64xbf16>, vector<64x384xbf16>, vector<128x384xf32> -> vector<128x384xf32>
    %87 = vector.extract_strided_slice %86 {offsets = [0, 0], sizes = [128, 256], strides = [1, 1]} : vector<128x384xf32> to vector<128x256xf32>
    %88 = arith.truncf %87 : vector<128x256xf32> to vector<128x256xbf16>
    %cst_25 = arith.constant dense<0.000000e+00> : vector<256x256xf32>
    %89 = tpu.matmul %3, %88, %cst_25 {dimension_numbers = #tpu.dot_dimension_numbers<[1], [0], [0], [1], [0, 0, 1, 1], [], []>} : vector<256x128xbf16>, vector<128x256xbf16>, vector<256x256xf32> -> vector<256x256xf32>
    %90 = vector.extract_strided_slice %89 {offsets = [0, 0], sizes = [256, 64], strides = [1, 1]} : vector<256x256xf32> to vector<256x64xf32>
    %91 = vector.extract_strided_slice %89 {offsets = [0, 128], sizes = [256, 64], strides = [1, 1]} : vector<256x256xf32> to vector<256x64xf32>
    %92 = vector.broadcast %6 : vector<256x1xf32> to vector<256x64xf32>
    %93 = vector.broadcast %80 : vector<1x64xf32> to vector<256x64xf32>
    %94 = arith.mulf %92, %93 : vector<256x64xf32>
    %95 = arith.addf %91, %94 : vector<256x64xf32>
    %96 = vector.broadcast %81 : vector<1x64xf32> to vector<256x64xf32>
    %97 = arith.addf %95, %96 : vector<256x64xf32>
    %98 = arith.negf %97 : vector<256x64xf32>
    %99 = math.exp %98 : vector<256x64xf32>
    %cst_26 = arith.constant 1.000000e+00 : f32
    %100 = vector.broadcast %cst_26 : f32 to vector<256x64xf32>
    %101 = arith.addf %100, %99 : vector<256x64xf32>
    %102 = arith.divf %100, %101 : vector<256x64xf32>
    %103 = arith.mulf %102, %90 : vector<256x64xf32>
    %104 = arith.truncf %103 : vector<256x64xf32> to vector<256x64xbf16>
    %cst_27 = arith.constant dense<0.000000e+00> : vector<128x64xf32>
    %105 = tpu.matmul %7, %104, %cst_27 {dimension_numbers = #tpu.dot_dimension_numbers<[1], [0], [0], [1], [0, 0, 1, 1], [], []>} : vector<128x256xbf16>, vector<256x64xbf16>, vector<128x64xf32> -> vector<128x64xf32>
    %106 = vector.extract_strided_slice %86 {offsets = [0, 256], sizes = [128, 64], strides = [1, 1]} : vector<128x384xf32> to vector<128x64xf32>
    %107 = arith.addf %106, %105 : vector<128x64xf32>
    %108 = vector.broadcast %82 : vector<1x64xf32> to vector<128x64xf32>
    %109 = arith.mulf %107, %108 : vector<128x64xf32>
    %110 = vector.broadcast %83 : vector<1x64xf32> to vector<128x64xf32>
    %111 = arith.addf %109, %110 : vector<128x64xf32>
    %cst_28 = arith.constant 0.000000e+00 : f32
    %112 = vector.broadcast %cst_28 : f32 to vector<128x64xf32>
    %113 = arith.maximumf %111, %112 : vector<128x64xf32>
    %114 = arith.truncf %113 : vector<128x64xf32> to vector<128x64xbf16>
    %cst_29 = arith.constant dense<0.000000e+00> : vector<8x64xf32>
    %115 = tpu.matmul %4, %114, %cst_29 {dimension_numbers = #tpu.dot_dimension_numbers<[1], [0], [0], [1], [0, 0, 1, 1], [], []>} : vector<8x128xbf16>, vector<128x64xbf16>, vector<8x64xf32> -> vector<8x64xf32>
    %c320 = arith.constant 320 : index
    %c0_30 = arith.constant 0 : index
    %116 = vector.load %arg2[%c320, %c0_30] : memref<384x384xbf16, #tpu.memory_space<vmem>>, vector<64x128xbf16>
    %117 = vector.extract_strided_slice %0 {offsets = [13, 0], sizes = [1, 128], strides = [1, 1]} : vector<16x128xf32> to vector<1x128xf32>
    %118 = vector.extract_strided_slice %0 {offsets = [14, 0], sizes = [1, 128], strides = [1, 1]} : vector<16x128xf32> to vector<1x128xf32>
    %119 = arith.truncf %115 : vector<8x64xf32> to vector<8x64xbf16>
    %cst_31 = arith.constant dense<0.000000e+00> : vector<8x128xf32>
    %120 = tpu.matmul %119, %116, %cst_31 {dimension_numbers = #tpu.dot_dimension_numbers<[1], [0], [0], [1], [0, 0, 1, 1], [], []>} : vector<8x64xbf16>, vector<64x128xbf16>, vector<8x128xf32> -> vector<8x128xf32>
    %121 = vector.broadcast %117 : vector<1x128xf32> to vector<8x128xf32>
    %122 = arith.mulf %120, %121 : vector<8x128xf32>
    %123 = vector.broadcast %118 : vector<1x128xf32> to vector<8x128xf32>
    %124 = arith.addf %122, %123 : vector<8x128xf32>
    %cst_32 = arith.constant 0.000000e+00 : f32
    %125 = vector.broadcast %cst_32 : f32 to vector<8x128xf32>
    %126 = arith.maximumf %124, %125 : vector<8x128xf32>
    %c0_33 = arith.constant 0 : index
    %c0_34 = arith.constant 0 : index
    %127 = vector.load %arg4[%c0_33, %c0_34] : memref<8x128xf32, #tpu.memory_space<vmem>>, vector<8x128xf32>
    tpu.vector_store %arg4[%c0_33, %c0_34], %126 {strides = array<i32>} : memref<8x128xf32, #tpu.memory_space<vmem>>, vector<8x128xf32>,
    return
  }
}

</mosaic_0001>

<bundles_post_ra>
// kernel: gnn_forward.1
= control target key start
LH: loop header
LB: loop body
LE: loop exit
PB: predicated region body
PF: predicated region fallthrough
CT: control target
= control target key end

     0   :  { %9 = vsyncpa [#allocation3], 0  ;;  %s6941_s0 = inlined_call_operand.hbm [shape: bf16[648,128], index: 0, kind: input, shape index: {}]   ;;  %s6942_s1 = inlined_call_operand.hbm [shape: bf16[128,256], index: 1, kind: input, shape index: {}]   ;;  %s6943_s2 = inlined_call_operand.hbm [shape: bf16[384,384], index: 2, kind: input, shape index: {}]   ;;  %s6944_s3 = inlined_call_operand.hbm [shape: f32[16,128], index: 3, kind: input, shape index: {}]   ;;  %s6945_s4 = inlined_call_operand.hbm [shape: f32[8,128], index: 4, kind: output, shape index: {}]  }
   0x1   :  { %10 = vsyncpa [#allocation6], 0 }
   0x2   :  { %11 = vsyncpa [#allocation9], 0 }
   0x3   :  { %12 = vsyncpa [#allocation4], 0  ;;  %s5515_s15 = smov [#allocation5]   ;;  %s5397_s19 = scalar_lea.hbm %s6942_s1, 2048 }
   0x4   :  { %s30_s16 = sshll.u32 %s5515_s15, 4  ;;  %p5398_p0 = scmp.ne.s32.totalorder %s6942_s1, %s5397_s19  ;;  %s31_s16 = int_to_ptr.vmem [resolvable:$true] %s30_s16 }
   0x5   :  { %p5401_p1 = scmp.lt.u32.totalorder %s5397_s19, %s6942_s1 }
   0x7   :  { %p5403_p2 = pnand %p5401_p1, %p5398_p0 }
   0x9   :  { %5406 = shalt.err (!%p5403_p2)
}
   0xa   :  { %s5407_s24 = scalar_lea.vmem %s31_s16, 2048  ;;  %p5412_p4 = scmp.lt.s32.totalorder %s31_s16, %s31_s16 }
   0xb   :  { %p5408_p3 = scmp.ne.s32.totalorder %s31_s16, %s5407_s24  ;;  %p5413_p5 = scmp.lt.s32.totalorder %s5407_s24, %s5407_s24 }
   0xd   :  { %p5414_p6 = por %p5413_p5, %p5412_p4 }
   0xf   :  { %p5415_p7 = pnand %p5414_p6, %p5408_p3 }
  0x11   :  { %5418 = shalt.err (!%p5415_p7)
}
  0x12   :  { %s5516_s25 = smov 128   ;;  %s5517_s26 = smov 8  }
  0x13   :  { %36 = dma.hbm_to_vmem [thread:$0]  %s6942_s1, 2048, %s31_s16, [#allocation6], %s5516_s25, %s5516_s25, %s5517_s26  }
  0x14   :  { %s5518_s29 = smov [#allocation2]   ;;  %s5419_s7 = scalar_lea.hbm %s6941_s0, 5184 }
  0x15   :  { %s18_s30 = sshll.u32 %s5518_s29, 4  ;;  %p5420_p8 = scmp.ne.s32.totalorder %s6941_s0, %s5419_s7  ;;  %s19_s30 = int_to_ptr.vmem [resolvable:$true] %s18_s30 }
  0x16   :  { %p5423_p9 = scmp.lt.u32.totalorder %s5419_s7, %s6941_s0 }
  0x18   :  { %p5425_p10 = pnand %p5423_p9, %p5420_p8 }
  0x1a   :  { %5428 = shalt.err (!%p5425_p10)
}
  0x1b   :  { %s5429_s12 = scalar_lea.vmem %s19_s30, 5184  ;;  %p5434_p12 = scmp.lt.s32.totalorder %s19_s30, %s19_s30 }
  0x1c   :  { %p5430_p11 = scmp.ne.s32.totalorder %s19_s30, %s5429_s12  ;;  %p5435_p13 = scmp.lt.s32.totalorder %s5429_s12, %s5429_s12 }
  0x1e   :  { %p5436_p0 = por %p5435_p13, %p5434_p12 }
  0x20   :  { %p5437_p1 = pnand %p5436_p0, %p5430_p11 }
  0x22   :  { %5440 = shalt.err (!%p5437_p1)
}
  0x23   :  { %s5519_s1 = smov 64   ;;  %s5520_s13 = smov 4  }
  0x24   :  { %24 = dma.hbm_to_vmem [thread:$0]  %s6941_s0, 5184, %s19_s30, [#allocation3], %s5519_s1, %s5519_s1, %s5520_s13  }
  0x25   :  { %s5521_s16 = smov [#allocation7]   ;;  %s5441_s20 = scalar_lea.hbm %s6943_s2, 9216 }
  0x26   :  { %s42_s17 = sshll.u32 %s5521_s16, 4  ;;  %p5442_p2 = scmp.ne.s32.totalorder %s6943_s2, %s5441_s20  ;;  %s43_s17 = int_to_ptr.vmem [resolvable:$true] %s42_s17 }
  0x27   :  { %p5445_p3 = scmp.lt.u32.totalorder %s5441_s20, %s6943_s2 }
  0x29   :  { %p5447_p4 = pnand %p5445_p3, %p5442_p2 }
  0x2b   :  { %5450 = shalt.err (!%p5447_p4)
}
  0x2c   :  { %s5451_s27 = scalar_lea.vmem %s43_s17, 9216  ;;  %p5456_p6 = scmp.lt.s32.totalorder %s43_s17, %s43_s17 }
  0x2d   :  { %p5452_p5 = scmp.ne.s32.totalorder %s43_s17, %s5451_s27  ;;  %p5457_p7 = scmp.lt.s32.totalorder %s5451_s27, %s5451_s27 }
  0x2f   :  { %p5458_p8 = por %p5457_p7, %p5456_p6 }
  0x31   :  { %p5459_p9 = pnand %p5458_p8, %p5452_p5 }
  0x33   :  { %5462 = shalt.err (!%p5459_p9)
}
  0x34   :  { %s5522_s0 = smov 192   ;;  %s5523_s28 = smov 12  }
  0x35   :  { %48 = dma.hbm_to_vmem [thread:$0]  %s6943_s2, 9216, %s43_s17, [#allocation6], %s5522_s0, %s5522_s0, %s5523_s28  }
  0x36   :  { %s5524_s5 = smov [#allocation8]   ;;  %s5463_s9 = scalar_lea.hbm %s6944_s3, 256 }
  0x37   :  { %s54_s6 = sshll.u32 %s5524_s5, 4  ;;  %p5464_p10 = scmp.ne.s32.totalorder %s6944_s3, %s5463_s9  ;;  %s55_s6 = int_to_ptr.vmem [resolvable:$true] %s54_s6 }
  0x38   :  { %p5467_p11 = scmp.lt.u32.totalorder %s5463_s9, %s6944_s3 }
  0x3a   :  { %p5469_p12 = pnand %p5467_p11, %p5464_p10 }
  0x3c   :  { %5472 = shalt.err (!%p5469_p12)
}
  0x3d   :  { %s5473_s13 = scalar_lea.vmem %s55_s6, 256  ;;  %p5478_p0 = scmp.lt.s32.totalorder %s55_s6, %s55_s6 }
  0x3e   :  { %p5474_p13 = scmp.ne.s32.totalorder %s55_s6, %s5473_s13  ;;  %p5479_p1 = scmp.lt.s32.totalorder %s5473_s13, %s5473_s13 }
  0x40   :  { %p5480_p2 = por %p5479_p1, %p5478_p0 }
  0x42   :  { %p5481_p3 = pnand %p5480_p2, %p5474_p13 }
  0x44   :  { %5484 = shalt.err (!%p5481_p3)
}
  0x45   :  { %60 = dma.hbm_to_vmem [thread:$0]  %s6944_s3, 256, %s55_s6, [#allocation9], %s5516_s25, %s5516_s25, %s5517_s26  }
  0x46   :  { %5507 = dma.done.wait [#allocation3], 5184  }
  0x47   :  { %5508 = vsyncadd [#allocation3], 4294962112 }
  0x48   :  { %5509 = dma.done.wait [#allocation6], 11264  }
  0x49   :  { %5510 = vsyncadd [#allocation6], 4294956032 }
  0x4a   :  { %5511 = dma.done.wait [#allocation9], 256  }
  0x4b   :  { %5512 = vsyncadd [#allocation9], 4294967040  ;;  %v4838_v0 = vld [vmem:[#allocation7] ss:$12 sps:$4 sm:$0xff]   ;;  %v4839_v1 = vld [vmem:[#allocation7 + $0x18] ss:$12 sps:$4 sm:$0xff]   ;;  %v221_v29 = vlaneseq }
  0x4c   :  { %4606 = vmatprep.subr.bf16.mxu0 %v4838_v0  ;;  %v4840_v2 = vld [vmem:[#allocation7 + $0x30] ss:$12 sps:$4 sm:$0xff]   ;;  %v4841_v3 = vld [vmem:[#allocation7 + $0x48] ss:$12 sps:$4 sm:$0xff]   ;;  %v4842_v5 = vld [vmem:[#allocation7 + $0x60] ss:$12 sps:$4 sm:$0xff]  }
  0x4d   :  { %4607 = vmatpush3.bf16.msra.mxu0 %v4838_v0  ;;  %v4846_v4 = vld [vmem:[#allocation2] sm:$0xff]   ;;  %v4843_v6 = vld [vmem:[#allocation7 + $0x78] ss:$12 sps:$4 sm:$0xff]   ;;  %v4845_v12 = vld [vmem:[#allocation7 + $0xa8] ss:$12 sps:$4 sm:$0xff]   ;;  %v6949_v28 = vmov 0  }
  0x4e   :  { %4608 = vmatprep.subr.bf16.mxu0 %v4839_v1  ;;  %4622 = vmatprep.mubr.bf16.mxu0 %v4846_v4  ;;  %v4854_v7 = vld [vmem:[#allocation7 + $0xc4] ss:$12 sps:$4 sm:$0xff]   ;;  %v4856_v8 = vld [vmem:[#allocation7 + $0xc0] ss:$12 sps:$4 sm:$0xff]   ;;  %v4858_v9 = vld [vmem:[#allocation7 + $0xdc] ss:$12 sps:$4 sm:$0xff]  }
  0x4f   :  { %531 = vmatprep.subr.bf16.mxu1 %v4854_v7  ;;  %v4860_v10 = vld [vmem:[#allocation7 + $0xd8] ss:$12 sps:$4 sm:$0xff]   ;;  %v4844_v11 = vld [vmem:[#allocation7 + $0x90] ss:$12 sps:$4 sm:$0xff]   ;;  %v4857_v13 = vld [vmem:[#allocation7 + $0xc8] ss:$12 sps:$4 sm:$0xff]   ;;  %563 = vmatprep.mubr.bf16.mxu1 %v6949_v28 }
  0x50   :  { %532 = vmatpush1.bf16.msra.mxu1 %v4856_v8  ;;  %v4847_v14 = vld [vmem:[#allocation2 + $0x8] sm:$0xff]   ;;  %v4848_v15 = vld [vmem:[#allocation2 + $0x10] sm:$0xff]   ;;  %v4849_v17 = vld [vmem:[#allocation2 + $0x18] sm:$0xff]   ;;  %4756 = vset.pattern.permute.xlu0 %v6949_v28  ;;  %v5611_v30 = vshrl.u32 %v221_v29, 7  ;;  %vm506_vm0 = vcmask 523264   ;;  %vm5527_vm1 = vmmov 0  }
  0x51   :  { %4609 = vmatpush3.bf16.msra.mxu0 %v4839_v1  ;;  %533 = vmatprep.subr.bf16.mxu1 %v4858_v9  ;;  %v4861_v16 = vld [vmem:[#allocation7 + $0xe0] ss:$12 sps:$4 sm:$0xff]   ;;  %v4851_v19 = vld [vmem:[#allocation2 + $0x28] sm:$0xff]   ;;  %v4853_v21 = vld [vmem:[#allocation2 + $0x38] sm:$0xff]   ;;  %s5528_s3 = smov [#allocation10]  }
  0x52   :  { %4610 = vmatprep.subr.bf16.mxu0 %v4840_v2  ;;  %v4850_v18 = vld [vmem:[#allocation2 + $0x20] sm:$0xff]   ;;  %v4852_v20 = vld [vmem:[#allocation2 + $0x30] sm:$0xff]   ;;  %v4865_v24 = vld [vmem:[#allocation7 + $0xf8] ss:$12 sps:$4 sm:$0xff]   ;;  %4767 = vset.pattern.permute.xlu1 %v6949_v28  ;;  %v6948_v31 = vsub.s32 0, %v5611_v30  ;;  %s4029_s25 = sshll.u32 %s5528_s3, 4  ;;  %s4030_s25 = int_to_ptr.vmem [resolvable:$true] %s4029_s25 }
  0x53   :  { %v4862_v22 = vld [vmem:[#allocation7 + $0xf4] ss:$12 sps:$4 sm:$0xff]   ;;  %v4864_v23 = vld [vmem:[#allocation7 + $0xf0] ss:$12 sps:$4 sm:$0xff]   ;;  %v4866_v25 = vld [vmem:[#allocation7 + $0x10c] ss:$12 sps:$4 sm:$0xff]   ;;  %p5490_p5 = scmp.lt.s32.totalorder %s4030_s25, %s4030_s25 }
  0x54   :  { %534 = vmatpush1.bf16.msra.mxu1 %v4860_v10  ;;  %v4868_v26 = vld [vmem:[#allocation7 + $0x108] ss:$12 sps:$4 sm:$0xff]   ;;  %v4869_v27 = vld [vmem:[#allocation7 + $0x110] ss:$12 sps:$4 sm:$0xff]   ;;  %v5614_v32 = vld [vmem:[#allocation8] sm:$0xff]  ;;  %s5485_s26 = scalar_lea.vmem %s4030_s25, 128 }
  0x55   :  { %4611 = vmatpush3.bf16.msra.mxu0 %v4840_v2  ;;  %535 = vmatprep.subr.bf16.mxu1 %v4862_v22  ;;  %v224_v33 = vrot.slane %v5614_v32, %v6948_v31  ;;  %p5486_p4 = scmp.ne.s32.totalorder %s4030_s25, %s5485_s26  ;;  %p5491_p6 = scmp.lt.s32.totalorder %s5485_s26, %s5485_s26 }
  0x56   :  { %4612 = vmatprep.subr.bf16.mxu0 %v4841_v3 }
  0x57   :  { %p5492_p7 = por %p5491_p6, %p5490_p5 }
  0x58   :  { %536 = vmatpush1.bf16.msra.mxu1 %v4864_v23 }
  0x59   :  { %4613 = vmatpush3.bf16.msra.mxu0 %v4841_v3  ;;  %537 = vmatprep.subr.bf16.mxu1 %v4866_v25  ;;  %v5655_v25 = vld [vmem:[#allocation2 + $0x100] sm:$0xff]   ;;  %p5493_p8 = pnand %p5492_p7, %p5486_p4 }
  0x5a   :  { %4614 = vmatprep.subr.bf16.mxu0 %v4842_v5 }
  0x5c   :  { %538 = vmatpush1.bf16.msra.mxu1 %v4868_v26  ;;  %v4341_v26 = vld [vmem:[#allocation2 + $0x108] sm:$0xff]  }
  0x5d   :  { %4615 = vmatpush3.bf16.msra.mxu0 %v4842_v5 }
  0x5e   :  { %4616 = vmatprep.subr.bf16.mxu0 %v4843_v6 }
  0x61   :  { %4617 = vmatpush3.bf16.msra.mxu0 %v4843_v6 }
  0x62   :  { %4618 = vmatprep.subr.bf16.mxu0 %v4844_v11 }
  0x65   :  { %4619 = vmatpush3.bf16.msra.mxu0 %v4844_v11 }
  0x66   :  { %4620 = vmatprep.subr.bf16.mxu0 %v4845_v12 }
  0x69   :  { %4621 = vmatpush3.bf16.msra.mxu0 %v4845_v12 }
  0x6a   :  { %4638 = vmatprep.subr.bf16.mxu0 %v4857_v13 }
  0x6c   :  { %4623 = vmatmul.mubr.bf16.vlgmr.msra.gmra.mrb[0].mxu0 %v4847_v14 }
  0x6d   :  { %4626 = vmatprep.mubr.bf16.mxu0 %v4848_v15  ;;  %4639 = vmatpush3.bf16.msra.mxu0 %v4857_v13 }
  0x6e   :  { %4640 = vmatprep.subr.bf16.mxu0 %v4861_v16 }
  0x71   :  { %4641 = vmatpush3.bf16.msra.mxu0 %v4861_v16 }
  0x72   :  { %4642 = vmatprep.subr.bf16.mxu0 %v4865_v24 }
  0x74   :  { %4627 = vmatmul.mubr.bf16.gmra.mrb[4].mxu0 %v4849_v17 }
  0x75   :  { %4630 = vmatprep.mubr.bf16.mxu0 %v4850_v18  ;;  %4643 = vmatpush3.bf16.msra.mxu0 %v4865_v24 }
  0x76   :  { %4644 = vmatprep.subr.bf16.mxu0 %v4869_v27 }
  0x79   :  { %4645 = vmatpush3.bf16.msra.mxu0 %v4869_v27 }
  0x7c   :  { %4631 = vmatmul.mubr.bf16.gmra.mrb[8].mxu0 %v4851_v19 }
  0x7d   :  { %4634 = vmatprep.mubr.bf16.mxu0 %v4852_v20 }
  0x84   :  { %4635 = vmatmul.mubr.bf16.gmra.mrb[12].mxu0 %v4853_v21 }
 0x13f   :  { %v4624_v34 = vpop.f32.mrb[0].mxu0 }
 0x140   :  { %v355_v35 = vpop.f32.mrb[1].mxu0  ;;  %v364_v37 = vadd.f32 %v4624_v34, %v224_v33  ;;  %v4304_v34 = vunpack.c.h.bf16 %v5655_v25 }
 0x141   :  { %v4625_v36 = vpop.f32.mrb[2].mxu0  ;;  %v356_v40 = vadd.f32 %v355_v35, %v224_v33  ;;  %v4307_v35 = vunpack.c.l.bf16 %v4341_v26 }
 0x142   :  { %v367_v38 = vadd.f32 %v4625_v36, %v224_v33  ;;  %v358_v39 = vpop.f32.mrb[3].mxu0 }
 0x143   :  { %v359_v41 = vadd.f32 %v358_v39, %v224_v33  ;;  %v5662_v39 = vld [vmem:[#allocation2 + $0xc4] ss:$124 sps:$4 sm:$0xff]  }
 0x144   :  { %v435_v42 = vpack.c.bf16 %v367_v38, %v364_v37  ;;  %v4757_v38 = vpack.i.bf16 %v4307_v35, %v4304_v34 }
 0x145   :  { %v434_v43 = vpack.c.bf16 %v359_v41, %v356_v40  ;;  %v4333_v40 = vld [vmem:[#allocation2 + $0xc8] sm:$0xff]  }
 0x146   :  { %4758 = vperm.xlu0 %4756, %v4757_v38   ;;  %v4275_v41 = vunpack.c.l.bf16 %v4333_v40 }
 0x147   :  { %4068 = vmatmul.mubr.msk.bf16.vlgmr.msra.gmra.mrb[0].mxu1 %vm506_vm0, %v434_v43  ;;  %4646 = vmatprep.mubr.msk.bf16.mxu0 %vm506_vm0, %v434_v43  ;;  %v4628_v44 = vpop.f32.mrb[4].mxu0 }
 0x148   :  { %v380_v45 = vadd.f32 %v4628_v44, %v224_v33  ;;  %4647 = vmatmul.mubr.msk.bf16.vlgmr.msra.gmra.mrb[16].mxu0 %vm506_vm0, %v435_v42  ;;  %v371_v46 = vpop.f32.mrb[5].mxu0  ;;  %573 = vmatprep.mubr.bf16.mxu1 %v6949_v28 }
 0x149   :  { %v372_v47 = vadd.f32 %v371_v46, %v224_v33  ;;  %v4629_v48 = vpop.f32.mrb[6].mxu0 }
 0x14a   :  { %v383_v49 = vadd.f32 %v4629_v48, %v224_v33  ;;  %v374_v50 = vpop.f32.mrb[7].mxu0 }
 0x14b   :  { %v375_v51 = vadd.f32 %v374_v50, %v224_v33  ;;  %v5669_v50 = vld [vmem:[#allocation2 + $0x110] sm:$0xff]  }
 0x14c   :  { %v437_v52 = vpack.c.bf16 %v383_v49, %v380_v45  ;;  %v4308_v49 = vunpack.c.h.bf16 %v4341_v26 }
 0x14d   :  { %v436_v53 = vpack.c.bf16 %v375_v51, %v372_v47 }
 0x14f   :  { %4069 = vmatmul.mubr.msk.bf16.gmra.mrb[4].mxu1 %vm506_vm0, %v435_v42  ;;  %4650 = vmatprep.mubr.msk.bf16.mxu0 %vm506_vm0, %v436_v53  ;;  %v4632_v54 = vpop.f32.mrb[8].mxu0  ;;  %v157_v42 = vunpack.c.l.bf16 %v5662_v39 }
 0x150   :  { %4651 = vmatmul.mubr.msk.bf16.gmra.mrb[20].mxu0 %vm506_vm0, %v437_v52  ;;  %583 = vmatprep.mubr.bf16.mxu1 %v6949_v28  ;;  %v396_v55 = vadd.f32 %v4632_v54, %v224_v33  ;;  %v387_v56 = vpop.f32.mrb[9].mxu0  ;;  %v4311_v54 = vunpack.c.l.bf16 %v5669_v50 }
 0x151   :  { %v388_v57 = vadd.f32 %v387_v56, %v224_v33  ;;  %v4633_v58 = vpop.f32.mrb[10].mxu0  ;;  %v4762_v46 = vpack.i.bf16 %v4275_v41, %v157_v42  ;;  %v4337_v42 = vld [vmem:[#allocation2 + $0xe8] sm:$0xff]  }
 0x152   :  { %v399_v59 = vadd.f32 %v4633_v58, %v224_v33  ;;  %v390_v60 = vpop.f32.mrb[11].mxu0  ;;  %v4334_v58 = vld [vmem:[#allocation2 + $0xd0] sm:$0xff]  }
 0x153   :  { %v391_v61 = vadd.f32 %v390_v60, %v224_v33  ;;  %4763 = vperm.xlu0 %4756, %v4762_v46   ;;  %v4279_v60 = vunpack.c.l.bf16 %v4334_v58 }
 0x154   :  { %v439_v62 = vpack.c.bf16 %v399_v59, %v396_v55  ;;  %v4276_v59 = vunpack.c.h.bf16 %v4333_v40 }
 0x155   :  { %v438_v63 = vpack.c.bf16 %v391_v61, %v388_v57  ;;  %v4768_v57 = vpack.i.bf16 %v4311_v54, %v4308_v49 }
 0x157   :  { %4070 = vmatmul.mubr.msk.bf16.gmra.mrb[8].mxu1 %vm506_vm0, %v436_v53  ;;  %4654 = vmatprep.mubr.msk.bf16.mxu0 %vm506_vm0, %v438_v63  ;;  %v4636_v0 = vpop.f32.mrb[12].mxu0 }
 0x158   :  { %593 = vmatprep.mubr.bf16.mxu1 %v6949_v28  ;;  %4655 = vmatmul.mubr.msk.bf16.gmra.mrb[24].mxu0 %vm506_vm0, %v439_v62  ;;  %v412_v1 = vadd.f32 %v4636_v0, %v224_v33  ;;  %v403_v2 = vpop.f32.mrb[13].mxu0  ;;  %v4773_v0 = vpack.i.bf16 %v4279_v60, %v4276_v59 }
 0x159   :  { %v404_v3 = vadd.f32 %v403_v2, %v224_v33  ;;  %v4637_v4 = vpop.f32.mrb[14].mxu0  ;;  %4769 = vperm.xlu1 %4767, %v4768_v57   ;;  %v4338_v57 = vld [vmem:[#allocation2 + $0xf0] sm:$0xff]  }
 0x15a   :  { %v415_v5 = vadd.f32 %v4637_v4, %v224_v33  ;;  %v406_v6 = vpop.f32.mrb[15].mxu0  ;;  %v4295_v59 = vunpack.c.l.bf16 %v4338_v57 }
 0x15b   :  { %v407_v7 = vadd.f32 %v406_v6, %v224_v33 }
 0x15c   :  { %v441_v8 = vpack.c.bf16 %v415_v5, %v412_v1 }
 0x15d   :  { %v440_v9 = vpack.c.bf16 %v407_v7, %v404_v3  ;;  %4774 = vperm.xlu1 %4767, %v4773_v0  }
 0x15f   :  { %4071 = vmatmul.mubr.msk.bf16.gmra.mrb[12].mxu1 %vm506_vm0, %v437_v52  ;;  %4658 = vmatprep.mubr.msk.bf16.mxu0 %vm506_vm0, %v440_v9 }
 0x160   :  { %603 = vmatprep.mubr.bf16.mxu1 %v6949_v28  ;;  %4659 = vmatmul.mubr.msk.bf16.gmra.mrb[28].mxu0 %vm506_vm0, %v441_v8 }
 0x167   :  { %4072 = vmatmul.mubr.msk.bf16.gmra.mrb[16].mxu1 %vm506_vm0, %v438_v63 }
 0x168   :  { %613 = vmatprep.mubr.bf16.mxu1 %v6949_v28 }
 0x16f   :  { %4073 = vmatmul.mubr.msk.bf16.gmra.mrb[20].mxu1 %vm506_vm0, %v439_v62 }
 0x170   :  { %623 = vmatprep.mubr.bf16.mxu1 %v6949_v28 }
 0x177   :  { %4074 = vmatmul.mubr.msk.bf16.gmra.mrb[24].mxu1 %vm506_vm0, %v440_v9  ;;  %v4280_v9 = vunpack.c.h.bf16 %v4334_v58  ;;  %v4292_v58 = vunpack.c.h.bf16 %v4337_v42 }
 0x178   :  { %633 = vmatprep.mubr.bf16.mxu1 %v6949_v28 }
 0x179   :  { %v4813_v0 = vpack.i.bf16 %v4295_v59, %v4292_v58  ;;  %v4874_v58 = vld [vmem:[#allocation2 + $0x60] sm:$0xff]   ;;  %v4875_v59 = vld [vmem:[#allocation2 + $0x68] sm:$0xff]  }
 0x17f   :  { %4075 = vmatmul.mubr.msk.bf16.gmra.mrb[28].mxu1 %vm506_vm0, %v441_v8  ;;  %v4335_v8 = vld [vmem:[#allocation2 + $0xd8] sm:$0xff]  }
 0x180   :  { %885 = vmatprep.mubr.bf16.mxu1 %v6949_v28  ;;  %v4284_v26 = vunpack.c.h.bf16 %v4335_v8 }
 0x21a   :  { %v565_v10 = vpop.f32.mrb[0].mxu1 }
 0x21b   :  { %v567_v11 = vpop.f32.mrb[1].mxu1  ;;  %v5643_v12 = vpop.f32.mrb[16].mxu0 }
 0x21c   :  { %v569_v13 = vpop.f32.mrb[2].mxu1  ;;  %v5645_v14 = vpop.f32.mrb[17].mxu0 }
 0x21d   :  { %v741_v15 = vpack.c.bf16 %v569_v13, %v565_v10  ;;  %v571_v16 = vpop.f32.mrb[3].mxu1  ;;  %v5647_v17 = vpop.f32.mrb[18].mxu0  ;;  %v4283_v10 = vunpack.c.l.bf16 %v4335_v8  ;;  %v4343_v8 = vld [vmem:[#allocation2 + $0x118] sm:$0xff]  }
 0x21e   :  { %v742_v18 = vpack.c.bf16 %v571_v16, %v567_v11  ;;  %v5649_v19 = vpop.f32.mrb[19].mxu0 }
 0x220   :  { %853 = vmatprep.subr.bf16.mxu1 %v742_v18 }
 0x221   :  { %854 = vmatpush1.bf16.msra.mxu1 %v741_v15  ;;  %v4783_v15 = vpack.i.bf16 %v4283_v10, %v4280_v9  ;;  %v4344_v9 = vld [vmem:[#allocation2 + $0x120] sm:$0xff]  }
 0x222   :  { %v575_v20 = vpop.f32.mrb[4].mxu1 }
 0x223   :  { %v577_v21 = vpop.f32.mrb[5].mxu1  ;;  %v5651_v22 = vpop.f32.mrb[20].mxu0  ;;  %4784 = vperm.xlu1 %4767, %v4783_v15  }
 0x224   :  { %v579_v23 = vpop.f32.mrb[6].mxu1  ;;  %v5653_v24 = vpop.f32.mrb[21].mxu0 }
 0x225   :  { %v743_v27 = vpack.c.bf16 %v579_v23, %v575_v20  ;;  %v581_v29 = vpop.f32.mrb[7].mxu1  ;;  %v5657_v33 = vpop.f32.mrb[22].mxu0  ;;  %v4336_v23 = vld [vmem:[#allocation2 + $0xe0] sm:$0xff]  }
 0x226   :  { %v744_v36 = vpack.c.bf16 %v581_v29, %v577_v21  ;;  %v5660_v37 = vpop.f32.mrb[23].mxu0 }
 0x228   :  { %855 = vmatprep.subr.bf16.mxu1 %v744_v36 }
 0x229   :  { %856 = vmatpush1.bf16.msra.mxu1 %v743_v27  ;;  %v4287_v27 = vunpack.c.l.bf16 %v4336_v23 }
 0x22a   :  { %v585_v43 = vpop.f32.mrb[8].mxu1 }
 0x22b   :  { %v587_v44 = vpop.f32.mrb[9].mxu1  ;;  %v5665_v45 = vpop.f32.mrb[24].mxu0  ;;  %v4793_v35 = vpack.i.bf16 %v4287_v27, %v4284_v26  ;;  %v4870_v27 = vld [vmem:[#allocation2 + $0x40] sm:$0xff]  }
 0x22c   :  { %v589_v47 = vpop.f32.mrb[10].mxu1  ;;  %v5667_v48 = vpop.f32.mrb[25].mxu0 }
 0x22d   :  { %v745_v51 = vpack.c.bf16 %v589_v47, %v585_v43  ;;  %v591_v52 = vpop.f32.mrb[11].mxu1  ;;  %v5671_v53 = vpop.f32.mrb[26].mxu0  ;;  %4794 = vperm.xlu1 %4767, %v4793_v35   ;;  %v4288_v43 = vunpack.c.h.bf16 %v4336_v23 }
 0x22e   :  { %v746_v55 = vpack.c.bf16 %v591_v52, %v587_v44  ;;  %v5674_v56 = vpop.f32.mrb[27].mxu0  ;;  %v4291_v44 = vunpack.c.l.bf16 %v4337_v42  ;;  %v4347_v42 = vld [vmem:[#allocation2 + $0x138] sm:$0xff]  }
 0x230   :  { %857 = vmatprep.subr.bf16.mxu1 %v746_v55  ;;  %v4803_v49 = vpack.i.bf16 %v4291_v44, %v4288_v43  ;;  %v4871_v43 = vld [vmem:[#allocation2 + $0x48] sm:$0xff]  }
 0x231   :  { %858 = vmatpush1.bf16.msra.mxu1 %v745_v51 }
 0x232   :  { %v595_v61 = vpop.f32.mrb[12].mxu1  ;;  %4804 = vperm.xlu1 %4767, %v4803_v49  }
 0x233   :  { %v597_v62 = vpop.f32.mrb[13].mxu1  ;;  %v5676_v63 = vpop.f32.mrb[28].mxu0 }
 0x234   :  { %v599_v1 = vpop.f32.mrb[14].mxu1  ;;  %v5678_v2 = vpop.f32.mrb[29].mxu0 }
 0x235   :  { %v747_v3 = vpack.c.bf16 %v599_v1, %v595_v61  ;;  %v601_v4 = vpop.f32.mrb[15].mxu1  ;;  %v5680_v5 = vpop.f32.mrb[30].mxu0 }
 0x236   :  { %v748_v6 = vpack.c.bf16 %v601_v4, %v597_v62  ;;  %v5682_v7 = vpop.f32.mrb[31].mxu0  ;;  %v4312_v62 = vunpack.c.h.bf16 %v5669_v50  ;;  %v4296_v4 = vunpack.c.h.bf16 %v4338_v57  ;;  %4814 = vperm.xlu1 %4767, %v4813_v0   ;;  %v4345_v50 = vld [vmem:[#allocation2 + $0x128] sm:$0xff]   ;;  %v4873_v57 = vld [vmem:[#allocation2 + $0x58] sm:$0xff]   ;;  %v4880_v0 = vld [vmem:[#allocation2 + $0x90] sm:$0xff]  }
 0x237   :  { %v4323_v35 = vunpack.c.l.bf16 %v4345_v50 }
 0x238   :  { %859 = vmatprep.subr.bf16.mxu1 %v748_v6  ;;  %v4339_v6 = vld [vmem:[#allocation2 + $0xf8] sm:$0xff]  }
 0x239   :  { %860 = vmatpush1.bf16.msra.mxu1 %v747_v3  ;;  %v4303_v3 = vunpack.c.l.bf16 %v5655_v25  ;;  %v4300_v15 = vunpack.c.h.bf16 %v4339_v6 }
 0x23a   :  { %v605_v11 = vpop.f32.mrb[16].mxu1 }
 0x23b   :  { %v607_v13 = vpop.f32.mrb[17].mxu1  ;;  %v4833_v25 = vpack.i.bf16 %v4303_v3, %v4300_v15  ;;  %v4882_v3 = vld [vmem:[#allocation2 + $0xa0] sm:$0xff]  }
 0x23c   :  { %v609_v16 = vpop.f32.mrb[18].mxu1 }
 0x23d   :  { %v749_v18 = vpack.c.bf16 %v609_v16, %v605_v11  ;;  %v611_v20 = vpop.f32.mrb[19].mxu1  ;;  %v4315_v16 = vunpack.c.l.bf16 %v4343_v8 }
 0x23e   :  { %v750_v21 = vpack.c.bf16 %v611_v20, %v607_v13  ;;  %v4299_v13 = vunpack.c.l.bf16 %v4339_v6  ;;  %v4316_v20 = vunpack.c.h.bf16 %v4343_v8  ;;  %v4884_v6 = vld [vmem:[#allocation2 + $0xb0] sm:$0xff]   ;;  %v4885_v8 = vld [vmem:[#allocation2 + $0xb8] sm:$0xff]  }
 0x23f   :  { %v4778_v26 = vpack.i.bf16 %v4315_v16, %v4312_v62  ;;  %v4879_v62 = vld [vmem:[#allocation2 + $0x88] sm:$0xff]  }
 0x240   :  { %861 = vmatprep.subr.bf16.mxu1 %v750_v21  ;;  %v4319_v21 = vunpack.c.l.bf16 %v4344_v9  ;;  %v4823_v23 = vpack.i.bf16 %v4299_v13, %v4296_v4  ;;  %v4883_v4 = vld [vmem:[#allocation2 + $0xa8] sm:$0xff]   ;;  %v5705_v13 = vpop.permute.xlu1 %4769 }
 0x241   :  { %862 = vmatpush1.bf16.msra.mxu1 %v749_v18  ;;  %4779 = vperm.xlu0 %4756, %v4778_v26  }
 0x242   :  { %v615_v29 = vpop.f32.mrb[20].mxu1  ;;  %4824 = vperm.xlu1 %4767, %v4823_v23  }
 0x243   :  { %v617_v34 = vpop.f32.mrb[21].mxu1 }
 0x244   :  { %v619_v36 = vpop.f32.mrb[22].mxu1  ;;  %v4775_v23 = vpop.permute.xlu1 %4774 }
 0x245   :  { %v751_v38 = vpack.c.bf16 %v619_v36, %v615_v29  ;;  %v621_v40 = vpop.f32.mrb[23].mxu1  ;;  %v4788_v29 = vpack.i.bf16 %v4319_v21, %v4316_v20  ;;  %v4346_v36 = vld [vmem:[#allocation2 + $0x130] sm:$0xff]  }
 0x246   :  { %v752_v41 = vpack.c.bf16 %v621_v40, %v617_v34  ;;  %v4320_v34 = vunpack.c.h.bf16 %v4344_v9  ;;  %4834 = vperm.xlu1 %4767, %v4833_v25   ;;  %v4324_v40 = vunpack.c.h.bf16 %v4345_v50  ;;  %v5702_v9 = vpop.permute.xlu0 %4758 }
 0x247   :  { %4789 = vperm.xlu0 %4756, %v4788_v29  }
 0x248   :  { %863 = vmatprep.subr.bf16.mxu1 %v752_v41  ;;  %v4327_v41 = vunpack.c.l.bf16 %v4346_v36 }
 0x249   :  { %864 = vmatpush1.bf16.msra.mxu1 %v751_v38  ;;  %v4798_v38 = vpack.i.bf16 %v4323_v35, %v4320_v34  ;;  %v5730_v35 = vunpack.i.l.bf16 %v4775_v23 }
 0x24a   :  { %v625_v46 = vpop.f32.mrb[24].mxu1  ;;  %v4808_v44 = vpack.i.bf16 %v4327_v41, %v4324_v40  ;;  %v5733_v41 = vunpack.i.h.bf16 %v4775_v23 }
 0x24b   :  { %v627_v47 = vpop.f32.mrb[25].mxu1  ;;  %4799 = vperm.xlu0 %4756, %v4798_v38   ;;  %7008 = vst [vmem:[#allocation17_spill] sm:$0xff] %v5730_v35 }
 0x24c   :  { %v629_v51 = vpop.f32.mrb[26].mxu1  ;;  %7009 = vst [vmem:[#allocation18_spill] sm:$0xff] %v5733_v41 }
 0x24d   :  { %v753_v52 = vpack.c.bf16 %v629_v51, %v625_v46  ;;  %v631_v54 = vpop.f32.mrb[27].mxu1  ;;  %v4328_v46 = vunpack.c.h.bf16 %v4346_v36  ;;  %v4332_v51 = vunpack.c.h.bf16 %v4347_v42 }
 0x24e   :  { %v754_v55 = vpack.c.bf16 %v631_v54, %v627_v47  ;;  %v4331_v47 = vunpack.c.l.bf16 %v4347_v42  ;;  %v4872_v54 = vld [vmem:[#allocation2 + $0x50] sm:$0xff]  }
 0x24f   :  { %4809 = vperm.xlu0 %4756, %v4808_v44  }
 0x250   :  { %865 = vmatprep.subr.bf16.mxu1 %v754_v55  ;;  %v4818_v49 = vpack.i.bf16 %v4331_v47, %v4328_v46 }
 0x251   :  { %866 = vmatpush1.bf16.msra.mxu1 %v753_v52  ;;  %v188_v52 = vunpack.c.h.bf16 %v5662_v39  ;;  %v4876_v39 = vld [vmem:[#allocation2 + $0x70] sm:$0xff]  }
 0x252   :  { %v635_v60 = vpop.f32.mrb[28].mxu1 }
 0x253   :  { %v637_v61 = vpop.f32.mrb[29].mxu1  ;;  %4819 = vperm.xlu0 %4756, %v4818_v49   ;;  %v4828_v55 = vpack.i.bf16 %v188_v52, %v4332_v51 }
 0x254   :  { %v639_v1 = vpop.f32.mrb[30].mxu1 }
 0x255   :  { %v755_v10 = vpack.c.bf16 %v639_v1, %v635_v60  ;;  %v641_v11 = vpop.f32.mrb[31].mxu1  ;;  %v4877_v60 = vld [vmem:[#allocation2 + $0x78] sm:$0xff]  }
 0x256   :  { %v756_v18 = vpack.c.bf16 %v641_v11, %v637_v61  ;;  %v4878_v61 = vld [vmem:[#allocation2 + $0x80] sm:$0xff]   ;;  %v4881_v1 = vld [vmem:[#allocation2 + $0x98] sm:$0xff]   ;;  %v4764_v11 = vpop.permute.xlu0 %4763 }
 0x257   :  { %4829 = vperm.xlu0 %4756, %v4828_v55   ;;  %v5712_v16 = vunpack.i.l.bf16 %v4764_v11  ;;  %v5715_v20 = vunpack.i.h.bf16 %v4764_v11 }
 0x258   :  { %867 = vmatprep.subr.bf16.mxu1 %v756_v18  ;;  %v6946_v18 = vsub.s32 2, %v5611_v30 }
 0x259   :  { %868 = vmatpush1.bf16.msra.mxu1 %v755_v10  ;;  %v6947_v10 = vsub.s32 1, %v5611_v30  ;;  %7006 = vst [vmem:[#allocation15_spill] sm:$0xff] %v5712_v16  ;;  %7007 = vst [vmem:[#allocation16_spill] sm:$0xff] %v5715_v20 }
 0x25a   :  { %v5722_v26 = vrot.slane %v5614_v32, %v6946_v18 }
 0x25b   :  { %v5710_v15 = vrot.slane %v5614_v32, %v6947_v10 }
 0x25c   :  { %886 = vmatmul.mubr.bf16.vlgmr.msra.gmra.mrb[32].mxu1 %v4870_v27 }
 0x25d   :  { %895 = vmatprep.mubr.bf16.mxu1 %v6949_v28  ;;  %v1210_v21 = vmul.f32 %v5712_v16, %v5710_v15  ;;  %v1211_v27 = vmul.f32 %v5715_v20, %v5710_v15  ;;  %v1213_v49 = vmul.f32 %v5733_v41, %v5710_v15 }
 0x264   :  { %896 = vmatmul.mubr.bf16.gmra.mrb[36].mxu1 %v4871_v43  ;;  %v1212_v43 = vmul.f32 %v5730_v35, %v5710_v15 }
 0x265   :  { %905 = vmatprep.mubr.bf16.mxu1 %v6949_v28 }
 0x26c   :  { %906 = vmatmul.mubr.bf16.gmra.mrb[40].mxu1 %v4872_v54 }
 0x26d   :  { %915 = vmatprep.mubr.bf16.mxu1 %v6949_v28 }
 0x274   :  { %916 = vmatmul.mubr.bf16.gmra.mrb[44].mxu1 %v4873_v57 }
 0x275   :  { %925 = vmatprep.mubr.bf16.mxu1 %v6949_v28 }
 0x27c   :  { %926 = vmatmul.mubr.bf16.gmra.mrb[48].mxu1 %v4874_v58 }
 0x27d   :  { %935 = vmatprep.mubr.bf16.mxu1 %v6949_v28 }
 0x284   :  { %936 = vmatmul.mubr.bf16.gmra.mrb[52].mxu1 %v4875_v59 }
 0x285   :  { %945 = vmatprep.mubr.bf16.mxu1 %v6949_v28 }
 0x28c   :  { %946 = vmatmul.mubr.bf16.gmra.mrb[56].mxu1 %v4876_v39 }
 0x28d   :  { %955 = vmatprep.mubr.bf16.mxu1 %v6949_v28 }
 0x294   :  { %956 = vmatmul.mubr.bf16.gmra.mrb[60].mxu1 %v4877_v60 }
 0x295   :  { %965 = vmatprep.mubr.bf16.mxu1 %v6949_v28 }
 0x29c   :  { %966 = vmatmul.mubr.bf16.gmra.mrb[64].mxu1 %v4878_v61 }
 0x29d   :  { %975 = vmatprep.mubr.bf16.mxu1 %v6949_v28 }
 0x2a2   :  { %v4785_v44 = vpop.permute.xlu1 %4784 }
 0x2a3   :  { %v5744_v55 = vunpack.i.l.bf16 %v4785_v44  ;;  %v5747_v39 = vunpack.i.h.bf16 %v4785_v44 }
 0x2a4   :  { %976 = vmatmul.mubr.bf16.gmra.mrb[68].mxu1 %v4879_v62 }
 0x2a5   :  { %985 = vmatprep.mubr.bf16.mxu1 %v6949_v28  ;;  %7010 = vst [vmem:[#allocation19_spill] sm:$0xff] %v5744_v55  ;;  %7011 = vst [vmem:[#allocation20_spill] sm:$0xff] %v5747_v39  ;;  %v1214_v62 = vmul.f32 %v5744_v55, %v5710_v15 }
 0x2ac   :  { %986 = vmatmul.mubr.bf16.gmra.mrb[72].mxu1 %v4880_v0  ;;  %v4795_v0 = vpop.permute.xlu1 %4794 }
 0x2ad   :  { %995 = vmatprep.mubr.bf16.mxu1 %v6949_v28  ;;  %v5758_v23 = vunpack.i.l.bf16 %v4795_v0 }
 0x2af   :  { %7012 = vst [vmem:[#allocation21_spill] sm:$0xff] %v5758_v23  ;;  %v1216_v44 = vmul.f32 %v5758_v23, %v5710_v15 }
 0x2b4   :  { %996 = vmatmul.mubr.bf16.gmra.mrb[76].mxu1 %v4881_v1 }
 0x2b5   :  { %1005 = vmatprep.mubr.bf16.mxu1 %v6949_v28 }
 0x2bc   :  { %1006 = vmatmul.mubr.bf16.gmra.mrb[80].mxu1 %v4882_v3 }
 0x2bd   :  { %1015 = vmatprep.mubr.bf16.mxu1 %v6949_v28 }
 0x2c4   :  { %1016 = vmatmul.mubr.bf16.gmra.mrb[84].mxu1 %v4883_v4  ;;  %v1215_v4 = vmul.f32 %v5747_v39, %v5710_v15 }
 0x2c5   :  { %1025 = vmatprep.mubr.bf16.mxu1 %v6949_v28 }
 0x2cc   :  { %1026 = vmatmul.mubr.bf16.gmra.mrb[88].mxu1 %v4884_v6 }
 0x2cd   :  { %1035 = vmatprep.mubr.bf16.mxu1 %v6949_v28 }
 0x2d4   :  { %1036 = vmatmul.mubr.bf16.gmra.mrb[92].mxu1 %v4885_v8 }
 0x32f   :  { %v5724_v50 = vpop.f32.mrb[32].mxu1 }
 0x330   :  { %v889_v25 = vpop.f32.mrb[33].mxu1 }
 0x331   :  { %v1242_v29 = vadd.f32 %v1210_v21, %v889_v25  ;;  %v5728_v34 = vpop.f32.mrb[34].mxu1 }
 0x332   :  { %v893_v36 = vpop.f32.mrb[35].mxu1 }
 0x333   :  { %v1278_v38 = vadd.f32 %v5722_v26, %v1242_v29  ;;  %v1243_v40 = vadd.f32 %v1211_v27, %v893_v36 }
 0x335   :  { %v4100_v42 = vmul.f32 -1.442695, %v1278_v38  ;;  %v1279_v32 = vadd.f32 %v5722_v26, %v1243_v40  ;;  %v5761_v40 = vunpack.i.h.bf16 %v4795_v0 }
 0x337   :  { %4946 = vpow2.f32 %v4100_v42  ;;  %v4101_v46 = vmul.f32 -1.442695, %v1279_v32  ;;  %v5738_v47 = vpop.f32.mrb[36].mxu1  ;;  %7013 = vst [vmem:[#allocation22_spill] sm:$0xff] %v5761_v40 }
 0x338   :  { %v899_v51 = vpop.f32.mrb[37].mxu1 }
 0x339   :  { %4948 = vpow2.f32 %v4101_v46  ;;  %v1244_v52 = vadd.f32 %v1212_v43, %v899_v51  ;;  %v5742_v54 = vpop.f32.mrb[38].mxu1  ;;  %v4805_v46 = vpop.permute.xlu1 %4804 }
 0x33a   :  { %v903_v57 = vpop.f32.mrb[39].mxu1 }
 0x33b   :  { %v1280_v58 = vadd.f32 %v5722_v26, %v1244_v52  ;;  %v1245_v59 = vadd.f32 %v1213_v49, %v903_v57  ;;  %v1217_v52 = vmul.f32 %v5761_v40, %v5710_v15 }
 0x33d   :  { %v4102_v60 = vmul.f32 -1.442695, %v1280_v58  ;;  %v1281_v61 = vadd.f32 %v5722_v26, %v1245_v59 }
 0x33f   :  { %4950 = vpow2.f32 %v4102_v60  ;;  %v4103_v1 = vmul.f32 -1.442695, %v1281_v61  ;;  %v5752_v3 = vpop.f32.mrb[40].mxu1  ;;  %v5772_v61 = vunpack.i.l.bf16 %v4805_v46 }
 0x340   :  { %v909_v6 = vpop.f32.mrb[41].mxu1 }
 0x341   :  { %v4947_v8 = vpop.eup %4946  ;;  %4952 = vpow2.f32 %v4103_v1  ;;  %v1246_v11 = vadd.f32 %v1214_v62, %v909_v6  ;;  %v5756_v21 = vpop.f32.mrb[42].mxu1  ;;  %7014 = vst [vmem:[#allocation23_spill] sm:$0xff] %v5772_v61 }
 0x342   :  { %v1406_v27 = vadd.f32 1.0, %v4947_v8  ;;  %v913_v25 = vpop.f32.mrb[43].mxu1  ;;  %v5775_v8 = vunpack.i.h.bf16 %v4805_v46 }
 0x343   :  { %v4949_v29 = vpop.eup %4948  ;;  %v1282_v36 = vadd.f32 %v5722_v26, %v1246_v11  ;;  %v1247_v38 = vadd.f32 %v1215_v4, %v913_v25 }
 0x344   :  { %4954 = vrcp.f32 %v1406_v27  ;;  %v1407_v42 = vadd.f32 1.0, %v4949_v29  ;;  %7015 = vst [vmem:[#allocation24_spill] sm:$0xff] %v5775_v8  ;;  %v1218_v29 = vmul.f32 %v5772_v61, %v5710_v15 }
 0x345   :  { %v4104_v32 = vmul.f32 -1.442695, %v1282_v36  ;;  %v1283_v43 = vadd.f32 %v5722_v26, %v1247_v38  ;;  %v4815_v38 = vpop.permute.xlu1 %4814 }
 0x346   :  { %4956 = vrcp.f32 %v1407_v42  ;;  %v4888_v42 = vld [vmem:[#allocation5 + $0x4] ss:$8 sps:$4 sm:$0xff]  }
 0x347   :  { %4958 = vpow2.f32 %v4104_v32  ;;  %v4105_v49 = vmul.f32 -1.442695, %v1283_v43  ;;  %v5766_v51 = vpop.f32.mrb[44].mxu1  ;;  %1662 = vmatprep.mubr.bf16.mxu0 %v4888_v42 }
 0x348   :  { %v919_v57 = vpop.f32.mrb[45].mxu1 }
 0x349   :  { %v4951_v58 = vpop.eup %4950  ;;  %4960 = vpow2.f32 %v4105_v49  ;;  %v1248_v59 = vadd.f32 %v1216_v44, %v919_v57  ;;  %v5770_v60 = vpop.f32.mrb[46].mxu1  ;;  %v1219_v44 = vmul.f32 %v5775_v8, %v5710_v15 }
 0x34a   :  { %v1408_v62 = vadd.f32 1.0, %v4951_v58  ;;  %v923_v0 = vpop.f32.mrb[47].mxu1 }
 0x34b   :  { %v4953_v1 = vpop.eup %4952  ;;  %v1284_v4 = vadd.f32 %v5722_v26, %v1248_v59  ;;  %v1249_v6 = vadd.f32 %v1217_v52, %v923_v0 }
 0x34c   :  { %4962 = vrcp.f32 %v1408_v62  ;;  %v1409_v11 = vadd.f32 1.0, %v4953_v1  ;;  %v5789_v62 = vunpack.i.l.bf16 %v4815_v38 }
 0x34d   :  { %v4106_v27 = vmul.f32 -1.442695, %v1284_v4  ;;  %v1285_v25 = vadd.f32 %v5722_v26, %v1249_v6 }
 0x34e   :  { %v4955_v36 = vpop.eup %4954  ;;  %4964 = vrcp.f32 %v1409_v11  ;;  %7016 = vst [vmem:[#allocation25_spill] sm:$0xff] %v5789_v62 }
 0x34f   :  { %4966 = vpow2.f32 %v4106_v27  ;;  %v4107_v32 = vmul.f32 -1.442695, %v1285_v25  ;;  %v5780_v43 = vpop.f32.mrb[48].mxu1  ;;  %v5785_v46 = vmul.f32 %v4955_v36, %v5724_v50  ;;  %v5795_v27 = vunpack.i.h.bf16 %v4815_v38 }
 0x350   :  { %v4957_v49 = vpop.eup %4956  ;;  %v929_v52 = vpop.f32.mrb[49].mxu1 }
 0x351   :  { %v4959_v57 = vpop.eup %4958  ;;  %4968 = vpow2.f32 %v4107_v32  ;;  %v1250_v58 = vadd.f32 %v1218_v29, %v929_v52  ;;  %v5787_v59 = vpop.f32.mrb[50].mxu1  ;;  %v5792_v0 = vmul.f32 %v4957_v49, %v5728_v34  ;;  %7017 = vst [vmem:[#allocation26_spill] sm:$0xff] %v5795_v27  ;;  %v1220_v34 = vmul.f32 %v5789_v62, %v5710_v15 }
 0x352   :  { %v1410_v1 = vadd.f32 1.0, %v4959_v57  ;;  %v933_v4 = vpop.f32.mrb[51].mxu1  ;;  %v4825_v49 = vpop.permute.xlu1 %4824  ;;  %v1221_v38 = vmul.f32 %v5795_v27, %v5710_v15 }
 0x353   :  { %v4961_v6 = vpop.eup %4960  ;;  %v1286_v11 = vadd.f32 %v5722_v26, %v1250_v58  ;;  %v1251_v50 = vadd.f32 %v1219_v44, %v933_v4 }
 0x354   :  { %4970 = vrcp.f32 %v1410_v1  ;;  %v1411_v29 = vadd.f32 1.0, %v4961_v6 }
 0x355   :  { %v4108_v36 = vmul.f32 -1.442695, %v1286_v11  ;;  %v1287_v42 = vadd.f32 %v5722_v26, %v1251_v50  ;;  %v5811_v50 = vunpack.i.l.bf16 %v4825_v49 }
 0x356   :  { %v4963_v32 = vpop.eup %4962  ;;  %4972 = vrcp.f32 %v1411_v29 }
 0x357   :  { %4974 = vpow2.f32 %v4108_v36  ;;  %v4109_v52 = vmul.f32 -1.442695, %v1287_v42  ;;  %v5802_v57 = vpop.f32.mrb[52].mxu1  ;;  %v5807_v44 = vmul.f32 %v4963_v32, %v5738_v47  ;;  %7018 = vst [vmem:[#allocation27_spill] sm:$0xff] %v5811_v50  ;;  %v5817_v47 = vunpack.i.h.bf16 %v4825_v49 }
 0x358   :  { %v4965_v58 = vpop.eup %4964  ;;  %v939_v1 = vpop.f32.mrb[53].mxu1 }
 0x359   :  { %v4967_v4 = vpop.eup %4966  ;;  %4976 = vpow2.f32 %v4109_v52  ;;  %v1252_v6 = vadd.f32 %v1220_v34, %v939_v1  ;;  %v5809_v11 = vpop.f32.mrb[54].mxu1  ;;  %v5814_v29 = vmul.f32 %v4965_v58, %v5742_v54  ;;  %7019 = vst [vmem:[#allocation28_spill] sm:$0xff] %v5817_v47  ;;  %v1222_v54 = vmul.f32 %v5811_v50, %v5710_v15 }
 0x35a   :  { %v1412_v36 = vadd.f32 1.0, %v4967_v4  ;;  %v943_v42 = vpop.f32.mrb[55].mxu1  ;;  %v4835_v4 = vpop.permute.xlu1 %4834  ;;  %v1223_v49 = vmul.f32 %v5817_v47, %v5710_v15 }
 0x35b   :  { %v4969_v18 = vpop.eup %4968  ;;  %v1288_v10 = vadd.f32 %v5722_v26, %v1252_v6  ;;  %v1253_v31 = vadd.f32 %v1221_v38, %v943_v42  ;;  %v5833_v32 = vunpack.i.l.bf16 %v4835_v4 }
 0x35c   :  { %4978 = vrcp.f32 %v1412_v36  ;;  %v1413_v34 = vadd.f32 1.0, %v4969_v18 }
 0x35d   :  { %v4110_v52 = vmul.f32 -1.442695, %v1288_v10  ;;  %v1289_v1 = vadd.f32 %v5722_v26, %v1253_v31  ;;  %7020 = vst [vmem:[#allocation29_spill] sm:$0xff] %v5833_v32 }
 0x35e   :  { %v4971_v58 = vpop.eup %4970  ;;  %4980 = vrcp.f32 %v1413_v34 }
 0x35f   :  { %4982 = vpow2.f32 %v4110_v52  ;;  %v4111_v28 = vmul.f32 -1.442695, %v1289_v1  ;;  %v5824_v6 = vpop.f32.mrb[56].mxu1  ;;  %v5829_v38 = vmul.f32 %v4971_v58, %v5752_v3  ;;  %v5839_v3 = vunpack.i.h.bf16 %v4835_v4 }
 0x360   :  { %v4973_v18 = vpop.eup %4972  ;;  %v949_v10 = vpop.f32.mrb[57].mxu1 }
 0x361   :  { %v4975_v36 = vpop.eup %4974  ;;  %4984 = vpow2.f32 %v4111_v28  ;;  %v1254_v31 = vadd.f32 %v1222_v54, %v949_v10  ;;  %v5831_v42 = vpop.f32.mrb[58].mxu1  ;;  %v5836_v34 = vmul.f32 %v4973_v18, %v5756_v21  ;;  %7021 = vst [vmem:[#allocation30_spill] sm:$0xff] %v5839_v3  ;;  %v1224_v21 = vmul.f32 %v5833_v32, %v5710_v15 }
 0x362   :  { %v1414_v52 = vadd.f32 1.0, %v4975_v36  ;;  %v953_v1 = vpop.f32.mrb[59].mxu1  ;;  %v1225_v4 = vmul.f32 %v5839_v3, %v5710_v15  ;;  %v5862_v3 = vunpack.i.h.bf16 %v5702_v9 }
 0x363   :  { %v4977_v25 = vpop.eup %4976  ;;  %v1290_v47 = vadd.f32 %v5722_v26, %v1254_v31  ;;  %v1255_v50 = vadd.f32 %v1223_v49, %v953_v1 }
 0x364   :  { %4986 = vrcp.f32 %v1414_v52  ;;  %v1415_v28 = vadd.f32 1.0, %v4977_v25  ;;  %7023 = vst [vmem:[#allocation32_spill] sm:$0xff] %v5862_v3 }
 0x365   :  { %v4112_v54 = vmul.f32 -1.442695, %v1290_v47  ;;  %v1291_v10 = vadd.f32 %v5722_v26, %v1255_v50  ;;  %v5854_v50 = vunpack.i.l.bf16 %v5702_v9 }
 0x366   :  { %v4979_v18 = vpop.eup %4978  ;;  %4988 = vrcp.f32 %v1415_v28 }
 0x367   :  { %4990 = vpow2.f32 %v4112_v54  ;;  %v4113_v36 = vmul.f32 -1.442695, %v1291_v10  ;;  %v5846_v27 = vpop.f32.mrb[60].mxu1  ;;  %v5851_v49 = vmul.f32 %v4979_v18, %v5766_v51  ;;  %7022 = vst [vmem:[#allocation31_spill] sm:$0xff] %v5854_v50 }
 0x368   :  { %v4981_v31 = vpop.eup %4980  ;;  %v959_v25 = vpop.f32.mrb[61].mxu1 }
 0x369   :  { %v4983_v47 = vpop.eup %4982  ;;  %4992 = vpow2.f32 %v4113_v36  ;;  %v1256_v52 = vadd.f32 %v1224_v21, %v959_v25  ;;  %v5856_v1 = vpop.f32.mrb[62].mxu1  ;;  %v5859_v28 = vmul.f32 %v4981_v31, %v5770_v60  ;;  %v1226_v60 = vmul.f32 %v5854_v50, %v5710_v15 }
 0x36a   :  { %v1416_v54 = vadd.f32 1.0, %v4983_v47  ;;  %v963_v10 = vpop.f32.mrb[63].mxu1 }
 0x36b   :  { %v4985_v58 = vpop.eup %4984  ;;  %v1292_v51 = vadd.f32 %v5722_v26, %v1256_v52  ;;  %v1257_v18 = vadd.f32 %v1225_v4, %v963_v10  ;;  %v1227_v4 = vmul.f32 %v5862_v3, %v5710_v15  ;;  %v5886_v3 = vunpack.i.h.bf16 %v5705_v13 }
 0x36c   :  { %4994 = vrcp.f32 %v1416_v54  ;;  %v1417_v36 = vadd.f32 1.0, %v4985_v58 }
 0x36d   :  { %v4114_v21 = vmul.f32 -1.442695, %v1292_v51  ;;  %v1293_v25 = vadd.f32 %v5722_v26, %v1257_v18  ;;  %v5878_v51 = vunpack.i.l.bf16 %v5705_v13  ;;  %7025 = vst [vmem:[#allocation34_spill] sm:$0xff] %v5886_v3 }
 0x36e   :  { %v4987_v31 = vpop.eup %4986  ;;  %4996 = vrcp.f32 %v1417_v36 }
 0x36f   :  { %4998 = vpow2.f32 %v4114_v21  ;;  %v4115_v47 = vmul.f32 -1.442695, %v1293_v25  ;;  %v5870_v9 = vpop.f32.mrb[64].mxu1  ;;  %v5875_v52 = vmul.f32 %v4987_v31, %v5780_v43  ;;  %7024 = vst [vmem:[#allocation33_spill] sm:$0xff] %v5878_v51 }
 0x370   :  { %v4989_v54 = vpop.eup %4988  ;;  %v969_v58 = vpop.f32.mrb[65].mxu1 }
 0x371   :  { %v4991_v10 = vpop.eup %4990  ;;  %5000 = vpow2.f32 %v4115_v47  ;;  %v1258_v18 = vadd.f32 %v1226_v60, %v969_v58  ;;  %v5880_v32 = vpop.f32.mrb[66].mxu1  ;;  %v5883_v36 = vmul.f32 %v4989_v54, %v5787_v59  ;;  %v1228_v59 = vmul.f32 %v5878_v51, %v5710_v15 }
 0x372   :  { %v1418_v21 = vadd.f32 1.0, %v4991_v10  ;;  %v973_v25 = vpop.f32.mrb[67].mxu1 }
 0x373   :  { %v4993_v50 = vpop.eup %4992  ;;  %v1294_v43 = vadd.f32 %v5722_v26, %v1258_v18  ;;  %v1259_v31 = vadd.f32 %v1227_v4, %v973_v25  ;;  %v1229_v4 = vmul.f32 %v5886_v3, %v5710_v15 }
 0x374   :  { %5002 = vrcp.f32 %v1418_v21  ;;  %v1419_v47 = vadd.f32 1.0, %v4993_v50  ;;  %v4780_v50 = vpop.permute.xlu0 %4779 }
 0x375   :  { %v4116_v60 = vmul.f32 -1.442695, %v1294_v43  ;;  %v1295_v58 = vadd.f32 %v5722_v26, %v1259_v31  ;;  %v5901_v31 = vunpack.i.l.bf16 %v4780_v50  ;;  %v5908_v3 = vunpack.i.h.bf16 %v4780_v50 }
 0x376   :  { %v4995_v54 = vpop.eup %4994  ;;  %5004 = vrcp.f32 %v1419_v47 }
 0x377   :  { %5006 = vpow2.f32 %v4116_v60  ;;  %v4117_v10 = vmul.f32 -1.442695, %v1295_v58  ;;  %v5894_v13 = vpop.f32.mrb[68].mxu1  ;;  %v5899_v18 = vmul.f32 %v4995_v54, %v5802_v57  ;;  %7026 = vst [vmem:[#allocation35_spill] sm:$0xff] %v5901_v31  ;;  %7027 = vst [vmem:[#allocation36_spill] sm:$0xff] %v5908_v3 }
 0x378   :  { %v4997_v21 = vpop.eup %4996  ;;  %v979_v25 = vpop.f32.mrb[69].mxu1 }
 0x379   :  { %v4999_v43 = vpop.eup %4998  ;;  %5008 = vpow2.f32 %v4117_v10  ;;  %v1260_v62 = vadd.f32 %v1228_v59, %v979_v25  ;;  %v5903_v51 = vpop.f32.mrb[70].mxu1  ;;  %v5906_v47 = vmul.f32 %v4997_v21, %v5809_v11  ;;  %v1230_v11 = vmul.f32 %v5901_v31, %v5710_v15 }
 0x37a   :  { %v1420_v60 = vadd.f32 1.0, %v4999_v43  ;;  %v983_v58 = vpop.f32.mrb[71].mxu1 }
 0x37b   :  { %v5001_v8 = vpop.eup %5000  ;;  %v1296_v57 = vadd.f32 %v5722_v26, %v1260_v62  ;;  %v1261_v54 = vadd.f32 %v1229_v4, %v983_v58  ;;  %v1231_v62 = vmul.f32 %v5908_v3, %v5710_v15 }
 0x37c   :  { %5010 = vrcp.f32 %v1420_v60  ;;  %v1421_v10 = vadd.f32 1.0, %v5001_v8  ;;  %v4790_v8 = vpop.permute.xlu0 %4789 }
 0x37d   :  { %v4118_v40 = vmul.f32 -1.442695, %v1296_v57  ;;  %v1297_v59 = vadd.f32 %v5722_v26, %v1261_v54  ;;  %v5923_v57 = vunpack.i.l.bf16 %v4790_v8  ;;  %v5930_v3 = vunpack.i.h.bf16 %v4790_v8 }
 0x37e   :  { %v5003_v21 = vpop.eup %5002  ;;  %5012 = vrcp.f32 %v1421_v10 }
 0x37f   :  { %5014 = vpow2.f32 %v4118_v40  ;;  %v4119_v25 = vmul.f32 -1.442695, %v1297_v59  ;;  %v5916_v50 = vpop.f32.mrb[72].mxu1  ;;  %v5921_v4 = vmul.f32 %v5003_v21, %v5824_v6  ;;  %7028 = vst [vmem:[#allocation37_spill] sm:$0xff] %v5923_v57  ;;  %7029 = vst [vmem:[#allocation38_spill] sm:$0xff] %v5930_v3 }
 0x380   :  { %v5005_v43 = vpop.eup %5004  ;;  %v989_v60 = vpop.f32.mrb[73].mxu1 }
 0x381   :  { %v5007_v58 = vpop.eup %5006  ;;  %5016 = vpow2.f32 %v4119_v25  ;;  %v1262_v54 = vadd.f32 %v1230_v11, %v989_v60  ;;  %v5925_v61 = vpop.f32.mrb[74].mxu1  ;;  %v5928_v40 = vmul.f32 %v5005_v43, %v5831_v42  ;;  %v1232_v42 = vmul.f32 %v5923_v57, %v5710_v15 }
 0x382   :  { %v1422_v10 = vadd.f32 1.0, %v5007_v58  ;;  %v993_v59 = vpop.f32.mrb[75].mxu1 }
 0x383   :  { %v5009_v31 = vpop.eup %5008  ;;  %v1298_v6 = vadd.f32 %v5722_v26, %v1262_v54  ;;  %v1263_v21 = vadd.f32 %v1231_v62, %v993_v59  ;;  %v1233_v62 = vmul.f32 %v5930_v3, %v5710_v15 }
 0x384   :  { %5018 = vrcp.f32 %v1422_v10  ;;  %v1423_v39 = vadd.f32 1.0, %v5009_v31 }
 0x385   :  { %v4120_v25 = vmul.f32 -1.442695, %v1298_v6  ;;  %v1299_v11 = vadd.f32 %v5722_v26, %v1263_v21 }
 0x386   :  { %v5011_v43 = vpop.eup %5010  ;;  %5020 = vrcp.f32 %v1423_v39 }
 0x387   :  { %5022 = vpow2.f32 %v4120_v25  ;;  %v4121_v60 = vmul.f32 -1.442695, %v1299_v11  ;;  %v5938_v8 = vpop.f32.mrb[76].mxu1  ;;  %v5943_v58 = vmul.f32 %v5011_v43, %v5846_v27  ;;  %v4800_v25 = vpop.permute.xlu0 %4799 }
 0x388   :  { %v5013_v54 = vpop.eup %5012  ;;  %v999_v31 = vpop.f32.mrb[77].mxu1  ;;  %v5950_v57 = vunpack.i.l.bf16 %v4800_v25 }
 0x389   :  { %v5015_v10 = vpop.eup %5014  ;;  %5024 = vpow2.f32 %v4121_v60  ;;  %v1264_v59 = vadd.f32 %v1232_v42, %v999_v31  ;;  %v5945_v6 = vpop.f32.mrb[78].mxu1  ;;  %v5948_v21 = vmul.f32 %v5013_v54, %v5856_v1  ;;  %v5955_v42 = vunpack.i.h.bf16 %v4800_v25 }
 0x38a   :  { %v1424_v39 = vadd.f32 1.0, %v5015_v10  ;;  %v1003_v11 = vpop.f32.mrb[79].mxu1  ;;  %7030 = vst [vmem:[#allocation39_spill] sm:$0xff] %v5950_v57 }
 0x38b   :  { %v5017_v23 = vpop.eup %5016  ;;  %v1300_v3 = vadd.f32 %v5722_v26, %v1264_v59  ;;  %v1265_v27 = vadd.f32 %v1233_v62, %v1003_v11  ;;  %7031 = vst [vmem:[#allocation40_spill] sm:$0xff] %v5955_v42  ;;  %v1234_v59 = vmul.f32 %v5950_v57, %v5710_v15 }
 0x38c   :  { %5026 = vrcp.f32 %v1424_v39  ;;  %v1425_v60 = vadd.f32 1.0, %v5017_v23 }
 0x38d   :  { %v4122_v31 = vmul.f32 -1.442695, %v1300_v3  ;;  %v1301_v1 = vadd.f32 %v5722_v26, %v1265_v27  ;;  %v1235_v3 = vmul.f32 %v5955_v42, %v5710_v15 }
 0x38e   :  { %v5019_v54 = vpop.eup %5018  ;;  %5028 = vrcp.f32 %v1425_v60  ;;  %v4810_v60 = vpop.permute.xlu0 %4809 }
 0x38f   :  { %5030 = vpow2.f32 %v4122_v31  ;;  %v4123_v10 = vmul.f32 -1.442695, %v1301_v1  ;;  %v5958_v55 = vpop.f32.mrb[80].mxu1  ;;  %v1518_v62 = vmul.f32 %v5019_v54, %v5870_v9  ;;  %v5968_v35 = vunpack.i.l.bf16 %v4810_v60 }
 0x390   :  { %v5021_v11 = vpop.eup %5020  ;;  %v1009_v43 = vpop.f32.mrb[81].mxu1 }
 0x391   :  { %v5023_v39 = vpop.eup %5022  ;;  %5032 = vpow2.f32 %v4123_v10  ;;  %v1266_v23 = vadd.f32 %v1234_v59, %v1009_v43  ;;  %v5963_v25 = vpop.f32.mrb[82].mxu1  ;;  %v1519_v27 = vmul.f32 %v5021_v11, %v5880_v32  ;;  %v5971_v43 = vunpack.i.h.bf16 %v4810_v60 }
 0x392   :  { %v1426_v31 = vadd.f32 1.0, %v5023_v39  ;;  %v1013_v1 = vpop.f32.mrb[83].mxu1  ;;  %v7032_v32 = vpack.c.bf16 %v5792_v0, %v5785_v46 }
 0x393   :  { %v5025_v41 = vpop.eup %5024  ;;  %v1302_v9 = vadd.f32 %v5722_v26, %v1266_v23  ;;  %v1267_v54 = vadd.f32 %v1235_v3, %v1013_v1  ;;  %v1542_v57 = vpack.c.bf16 %v1519_v27, %v1518_v62  ;;  %v1236_v62 = vmul.f32 %v5968_v35, %v5710_v15 }
 0x394   :  { %5034 = vrcp.f32 %v1426_v31  ;;  %v1427_v10 = vadd.f32 1.0, %v5025_v41  ;;  %v1237_v46 = vmul.f32 %v5971_v43, %v5710_v15 }
 0x395   :  { %v4124_v59 = vmul.f32 -1.442695, %v1302_v9  ;;  %v1303_v20 = vadd.f32 %v5722_v26, %v1267_v54  ;;  %4376 = vmatprep.subr.bf16.mxu0 %v1542_v57 }
 0x396   :  { %v5027_v42 = vpop.eup %5026  ;;  %5036 = vrcp.f32 %v1427_v10  ;;  %4377 = vmatpush3.bf16.msra.mxu0 %v7032_v32 }
 0x397   :  { %5038 = vpow2.f32 %v4124_v59  ;;  %v4125_v11 = vmul.f32 -1.442695, %v1303_v20  ;;  %v5977_v39 = vpop.f32.mrb[84].mxu1  ;;  %v1520_v41 = vmul.f32 %v5027_v42, %v5894_v13  ;;  %v4820_v20 = vpop.permute.xlu0 %4819 }
 0x398   :  { %v5029_v23 = vpop.eup %5028  ;;  %v1019_v3 = vpop.f32.mrb[85].mxu1  ;;  %v5987_v54 = vunpack.i.l.bf16 %v4820_v20  ;;  %v5990_v32 = vunpack.i.h.bf16 %v4820_v20 }
 0x399   :  { %v5031_v27 = vpop.eup %5030  ;;  %5040 = vpow2.f32 %v4125_v11  ;;  %v1268_v57 = vadd.f32 %v1236_v62, %v1019_v3  ;;  %v5982_v60 = vpop.f32.mrb[86].mxu1  ;;  %v1521_v0 = vmul.f32 %v5029_v23, %v5903_v51  ;;  %v7033_v51 = vpack.c.bf16 %v5814_v29, %v5807_v44 }
 0x39a   :  { %v1428_v31 = vadd.f32 1.0, %v5031_v27  ;;  %v1023_v1 = vpop.f32.mrb[87].mxu1  ;;  %v1239_v44 = vmul.f32 %v5990_v32, %v5710_v15 }
 0x39b   :  { %v5033_v9 = vpop.eup %5032  ;;  %v1304_v13 = vadd.f32 %v5722_v26, %v1268_v57  ;;  %v1269_v42 = vadd.f32 %v1237_v46, %v1023_v1  ;;  %v1543_v10 = vpack.c.bf16 %v1521_v0, %v1520_v41  ;;  %v1238_v41 = vmul.f32 %v5987_v54, %v5710_v15  ;;  %v4830_v0 = vpop.permute.xlu0 %4829 }
 0x39c   :  { %5042 = vrcp.f32 %v1428_v31  ;;  %v1429_v59 = vadd.f32 1.0, %v5033_v9 }
 0x39d   :  { %v4126_v11 = vmul.f32 -1.442695, %v1304_v13  ;;  %v1305_v62 = vadd.f32 %v5722_v26, %v1269_v42  ;;  %4378 = vmatprep.subr.bf16.mxu0 %v1543_v10 }
 0x39e   :  { %v5035_v3 = vpop.eup %5034  ;;  %5044 = vrcp.f32 %v1429_v59  ;;  %4379 = vmatpush3.bf16.msra.mxu0 %v7033_v51  ;;  %v6006_v59 = vunpack.i.l.bf16 %v4830_v0  ;;  %v6009_v51 = vunpack.i.h.bf16 %v4830_v0 }
 0x39f   :  { %5046 = vpow2.f32 %v4126_v11  ;;  %v4127_v23 = vmul.f32 -1.442695, %v1305_v62  ;;  %v5996_v27 = vpop.f32.mrb[88].mxu1  ;;  %v1522_v57 = vmul.f32 %v5035_v3, %v5916_v50 }
 0x3a0   :  { %v5037_v46 = vpop.eup %5036  ;;  %v1029_v20 = vpop.f32.mrb[89].mxu1 }
 0x3a1   :  { %v5039_v31 = vpop.eup %5038  ;;  %5048 = vpow2.f32 %v4127_v23  ;;  %v1270_v1 = vadd.f32 %v1238_v41, %v1029_v20  ;;  %v6001_v9 = vpop.f32.mrb[90].mxu1  ;;  %v1523_v29 = vmul.f32 %v5037_v46, %v5925_v61  ;;  %v7034_v61 = vpack.c.bf16 %v5836_v34, %v5829_v38 }
 0x3a2   :  { %v1430_v13 = vadd.f32 1.0, %v5039_v31  ;;  %v1033_v42 = vpop.f32.mrb[91].mxu1 }
 0x3a3   :  { %v5041_v10 = vpop.eup %5040  ;;  %v1306_v50 = vadd.f32 %v5722_v26, %v1270_v1  ;;  %v1271_v11 = vadd.f32 %v1239_v44, %v1033_v42  ;;  %v1544_v62 = vpack.c.bf16 %v1523_v29, %v1522_v57  ;;  %v1240_v57 = vmul.f32 %v6006_v59, %v5710_v15 }
 0x3a4   :  { %5050 = vrcp.f32 %v1430_v13  ;;  %v1431_v3 = vadd.f32 1.0, %v5041_v10  ;;  %v1241_v10 = vmul.f32 %v6009_v51, %v5710_v15  ;;  %v7035_v15 = vpack.c.bf16 %v5859_v28, %v5851_v49 }
 0x3a5   :  { %v4128_v23 = vmul.f32 -1.442695, %v1306_v50  ;;  %v1307_v41 = vadd.f32 %v5722_v26, %v1271_v11  ;;  %4380 = vmatprep.subr.bf16.mxu0 %v1544_v62  ;;  %v7036_v49 = vpack.c.bf16 %v5883_v36, %v5875_v52 }
 0x3a6   :  { %v5043_v20 = vpop.eup %5042  ;;  %5052 = vrcp.f32 %v1431_v3  ;;  %4381 = vmatpush3.bf16.msra.mxu0 %v7034_v61 }
 0x3a7   :  { %5054 = vpow2.f32 %v4128_v23  ;;  %v4129_v46 = vmul.f32 -1.442695, %v1307_v41  ;;  %v1037_v31 = vpop.f32.mrb[92].mxu1  ;;  %v1524_v1 = vmul.f32 %v5043_v20, %v5938_v8 }
 0x3a8   :  { %v5045_v0 = vpop.eup %5044  ;;  %v1039_v44 = vpop.f32.mrb[93].mxu1 }
 0x3a9   :  { %v5047_v29 = vpop.eup %5046  ;;  %5056 = vpow2.f32 %v4129_v46  ;;  %v1272_v13 = vadd.f32 %v1240_v57, %v1039_v44  ;;  %v1041_v42 = vpop.f32.mrb[94].mxu1  ;;  %v1525_v38 = vmul.f32 %v5045_v0, %v5945_v6 }
 0x3aa   :  { %v1432_v34 = vadd.f32 1.0, %v5047_v29  ;;  %v1043_v50 = vpop.f32.mrb[95].mxu1 }
 0x3ab   :  { %v5049_v11 = vpop.eup %5048  ;;  %v1308_v62 = vadd.f32 %v5722_v26, %v1272_v13  ;;  %v1273_v3 = vadd.f32 %v1241_v10, %v1043_v50  ;;  %v1545_v23 = vpack.c.bf16 %v1525_v38, %v1524_v1 }
 0x3ac   :  { %5058 = vrcp.f32 %v1432_v34  ;;  %v1433_v8 = vadd.f32 1.0, %v5049_v11 }
 0x3ad   :  { %v4130_v41 = vmul.f32 -1.442695, %v1308_v62  ;;  %v1309_v20 = vadd.f32 %v5722_v26, %v1273_v3  ;;  %4382 = vmatprep.subr.bf16.mxu0 %v1545_v23  ;;  %v7037_v23 = vpack.c.bf16 %v5906_v47, %v5899_v18  ;;  %v4886_v18 = vld [vmem:[#allocation5] ss:$8 sps:$4 sm:$0xff]   ;;  %v7039_v47 = vpack.c.bf16 %v5948_v21, %v5943_v58  ;;  %v4895_v21 = vld [vmem:[#allocation5 + $0x34] ss:$8 sps:$4 sm:$0xff]  }
 0x3ae   :  { %v5051_v61 = vpop.eup %5050  ;;  %5060 = vrcp.f32 %v1433_v8  ;;  %4383 = vmatpush3.bf16.msra.mxu0 %v7035_v15  ;;  %v4894_v58 = vld [vmem:[#allocation5 + $0x20] ss:$8 sps:$4 sm:$0xff]  }
 0x3af   :  { %5062 = vpow2.f32 %v4130_v41  ;;  %v4131_v6 = vmul.f32 -1.442695, %v1309_v20  ;;  %v1526_v46 = vmul.f32 %v5051_v61, %v5958_v55  ;;  %v7038_v41 = vpack.c.bf16 %v5928_v40, %v5921_v4  ;;  %v4913_v4 = vld [vmem:[#allocation7 + $0x138] ss:$12 sps:$4 sm:$0xff]   ;;  %v4918_v40 = vld [vmem:[#allocation7 + $0x154] ss:$12 sps:$4 sm:$0xff]  }
 0x3b0   :  { %v5053_v57 = vpop.eup %5052 }
 0x3b1   :  { %v5055_v0 = vpop.eup %5054  ;;  %5064 = vpow2.f32 %v4131_v6  ;;  %v1527_v1 = vmul.f32 %v5053_v57, %v5963_v25  ;;  %v4915_v57 = vld [vmem:[#allocation7 + $0x13c] ss:$12 sps:$4 sm:$0xff]  }
 0x3b2   :  { %v1434_v44 = vadd.f32 1.0, %v5055_v0  ;;  %v4916_v0 = vld [vmem:[#allocation7 + $0x150] ss:$12 sps:$4 sm:$0xff]  }
 0x3b3   :  { %v5057_v29 = vpop.eup %5056  ;;  %v1546_v13 = vpack.c.bf16 %v1527_v1, %v1526_v46  ;;  %v4912_v46 = vld [vmem:[#allocation7 + $0x124] ss:$12 sps:$4 sm:$0xff]  }
 0x3b4   :  { %5066 = vrcp.f32 %v1434_v44  ;;  %v1435_v26 = vadd.f32 1.0, %v5057_v29  ;;  %v4897_v1 = vld [vmem:[#allocation5 + $0x30] ss:$8 sps:$4 sm:$0xff]   ;;  %v4898_v44 = vld [vmem:[#allocation5 + $0x44] ss:$8 sps:$4 sm:$0xff]  }
 0x3b5   :  { %4384 = vmatprep.subr.bf16.mxu0 %v1546_v13  ;;  %v4900_v29 = vld [vmem:[#allocation5 + $0x40] ss:$8 sps:$4 sm:$0xff]   ;;  %v4901_v13 = vld [vmem:[#allocation5 + $0x54] ss:$8 sps:$4 sm:$0xff]  }
 0x3b6   :  { %v5059_v10 = vpop.eup %5058  ;;  %5068 = vrcp.f32 %v1435_v26  ;;  %4385 = vmatpush3.bf16.msra.mxu0 %v7036_v49  ;;  %v4903_v26 = vld [vmem:[#allocation5 + $0x50] ss:$8 sps:$4 sm:$0xff]   ;;  %v4906_v49 = vld [vmem:[#allocation5 + $0x60] ss:$8 sps:$4 sm:$0xff]  }
 0x3b7   :  { %v1528_v28 = vmul.f32 %v5059_v10, %v5977_v39  ;;  %v4904_v10 = vld [vmem:[#allocation5 + $0x64] ss:$8 sps:$4 sm:$0xff]  }
 0x3b8   :  { %v5061_v55 = vpop.eup %5060 }
 0x3b9   :  { %v5063_v38 = vpop.eup %5062  ;;  %v1529_v34 = vmul.f32 %v5061_v55, %v5982_v60  ;;  %v4909_v55 = vld [vmem:[#allocation5 + $0x70] ss:$8 sps:$4 sm:$0xff]  }
 0x3ba   :  { %v1436_v50 = vadd.f32 1.0, %v5063_v38  ;;  %v7040_v38 = vmov 0  }
 0x3bb   :  { %v5065_v25 = vpop.eup %5064  ;;  %v1547_v11 = vpack.c.bf16 %v1529_v34, %v1528_v28  ;;  %v4907_v28 = vld [vmem:[#allocation5 + $0x74] ss:$8 sps:$4 sm:$0xff]  }
 0x3bc   :  { %5070 = vrcp.f32 %v1436_v50  ;;  %v1437_v62 = vadd.f32 1.0, %v5065_v25  ;;  %v4922_v34 = vld [vmem:[#allocation7 + $0x128] ss:$12 sps:$4 sm:$0xff]   ;;  %v4921_v50 = vld [vmem:[#allocation7 + $0x16c] ss:$12 sps:$4 sm:$0xff]  }
 0x3bd   :  { %4386 = vmatprep.subr.bf16.mxu0 %v1547_v11  ;;  %4662 = vmatprep.subr.bf16.mxu1 %v4922_v34  ;;  %v4923_v25 = vld [vmem:[#allocation7 + $0x140] ss:$12 sps:$4 sm:$0xff]   ;;  %v4919_v11 = vld [vmem:[#allocation7 + $0x168] ss:$12 sps:$4 sm:$0xff]  }
 0x3be   :  { %v5067_v3 = vpop.eup %5066  ;;  %5072 = vrcp.f32 %v1437_v62  ;;  %4387 = vmatpush3.bf16.msra.mxu0 %v7037_v23  ;;  %4663 = vmatpush3.bf16.msra.mxu1 %v4922_v34  ;;  %v4924_v62 = vld [vmem:[#allocation7 + $0x158] ss:$12 sps:$4 sm:$0xff]   ;;  %v7004_v23 = vsub.s32 3, %v5611_v30 }
 0x3bf   :  { %v1530_v52 = vmul.f32 %v5067_v3, %v5996_v27  ;;  %v4889_v27 = vld [vmem:[#allocation5 + $0x14] ss:$8 sps:$4 sm:$0xff]   ;;  %4664 = vmatprep.subr.bf16.mxu1 %v4923_v25 }
 0x3c0   :  { %v5069_v36 = vpop.eup %5068  ;;  %v4925_v3 = vld [vmem:[#allocation7 + $0x170] ss:$12 sps:$4 sm:$0xff]  }
 0x3c1   :  { %v1531_v39 = vmul.f32 %v5069_v36, %v6001_v9  ;;  %v4910_v9 = vld [vmem:[#allocation7 + $0x120] ss:$12 sps:$4 sm:$0xff]   ;;  %v7003_v36 = vsub.s32 4, %v5611_v30 }
 0x3c2   :  { %4665 = vmatpush3.bf16.msra.mxu1 %v4923_v25 }
 0x3c3   :  { %v1548_v8 = vpack.c.bf16 %v1531_v39, %v1530_v52  ;;  %4666 = vmatprep.subr.bf16.mxu1 %v4924_v62 }
 0x3c5   :  { %4388 = vmatprep.subr.bf16.mxu0 %v1548_v8 }
 0x3c6   :  { %v5071_v60 = vpop.eup %5070  ;;  %4389 = vmatpush3.bf16.msra.mxu0 %v7038_v41  ;;  %4667 = vmatpush3.bf16.msra.mxu1 %v4924_v62 }
 0x3c7   :  { %v1532_v20 = vmul.f32 %v5071_v60, %v1037_v31  ;;  %v4891_v31 = vld [vmem:[#allocation5 + $0x10] ss:$8 sps:$4 sm:$0xff]   ;;  %4668 = vmatprep.subr.bf16.mxu1 %v4925_v3  ;;  %v6047_v60 = vld [vmem:[#allocation8] sm:$0xff] }
 0x3c8   :  { %v5073_v61 = vpop.eup %5072  ;;  %v6052_v41 = vrot.slane %v6047_v60, %v7004_v23 }
 0x3c9   :  { %v1533_v15 = vmul.f32 %v5073_v61, %v1041_v42  ;;  %v4892_v42 = vld [vmem:[#allocation5 + $0x24] ss:$8 sps:$4 sm:$0xff]  }
 0x3ca   :  { %4669 = vmatpush3.bf16.msra.mxu1 %v4925_v3 }
 0x3cb   :  { %v1549_v6 = vpack.c.bf16 %v1533_v15, %v1532_v20 }
 0x3cd   :  { %4390 = vmatprep.subr.bf16.mxu0 %v1549_v6  ;;  %v6058_v6 = vrot.slane %v6047_v60, %v7003_v36 }
 0x3ce   :  { %4391 = vmatpush3.bf16.msra.mxu0 %v7039_v47 }
 0x3cf   :  { %1911 = vmatprep.subr.bf16.mxu0 %v4912_v46 }
 0x3d1   :  { %1663 = vmatmul.mubr.bf16.vlgmr.msra.gmra.mrb[32].mxu0 %v4886_v18 }
 0x3d2   :  { %1670 = vmatprep.mubr.bf16.mxu0 %v4889_v27  ;;  %1912 = vmatpush1.bf16.msra.mxu0 %v4910_v9 }
 0x3d3   :  { %1913 = vmatprep.subr.bf16.mxu0 %v4915_v57 }
 0x3d6   :  { %1914 = vmatpush1.bf16.msra.mxu0 %v4913_v4 }
 0x3d7   :  { %1915 = vmatprep.subr.bf16.mxu0 %v4918_v40 }
 0x3d9   :  { %1671 = vmatmul.mubr.bf16.gmra.mrb[36].mxu0 %v4891_v31 }
 0x3da   :  { %1678 = vmatprep.mubr.bf16.mxu0 %v4892_v42  ;;  %1916 = vmatpush1.bf16.msra.mxu0 %v4916_v0 }
 0x3db   :  { %1917 = vmatprep.subr.bf16.mxu0 %v4921_v50 }
 0x3de   :  { %1918 = vmatpush1.bf16.msra.mxu0 %v4919_v11 }
 0x3e1   :  { %1679 = vmatmul.mubr.bf16.gmra.mrb[40].mxu0 %v4894_v58 }
 0x3e2   :  { %1686 = vmatprep.mubr.bf16.mxu0 %v4895_v21 }
 0x3e9   :  { %1687 = vmatmul.mubr.bf16.gmra.mrb[44].mxu0 %v4897_v1 }
 0x3ea   :  { %1694 = vmatprep.mubr.bf16.mxu0 %v4898_v44 }
 0x3f1   :  { %1695 = vmatmul.mubr.bf16.gmra.mrb[48].mxu0 %v4900_v29 }
 0x3f2   :  { %1702 = vmatprep.mubr.bf16.mxu0 %v4901_v13 }
 0x3f9   :  { %1703 = vmatmul.mubr.bf16.gmra.mrb[52].mxu0 %v4903_v26 }
 0x3fa   :  { %1710 = vmatprep.mubr.bf16.mxu0 %v4904_v10 }
 0x401   :  { %1711 = vmatmul.mubr.bf16.gmra.mrb[56].mxu0 %v4906_v49 }
 0x402   :  { %1718 = vmatprep.mubr.bf16.mxu0 %v4907_v28 }
 0x409   :  { %1719 = vmatmul.mubr.bf16.gmra.mrb[60].mxu0 %v4909_v55 }
 0x40a   :  { %1943 = vmatprep.mubr.bf16.mxu0 %v7040_v38 }
 0x4a4   :  { %v4392_v52 = vpop.f32.mrb[32].mxu0 }
 0x4a5   :  { %v4393_v39 = vpop.f32.mrb[33].mxu0 }
 0x4a6   :  { %v4394_v8 = vadd.f32 %v4393_v39, %v4392_v52  ;;  %v4395_v20 = vpop.f32.mrb[34].mxu0 }
 0x4a7   :  { %v4396_v61 = vpop.f32.mrb[35].mxu0 }
 0x4a8   :  { %v1727_v15 = vadd.f32 %v4394_v8, %v5645_v14  ;;  %v4397_v46 = vadd.f32 %v4396_v61, %v4395_v20 }
 0x4aa   :  { %v1747_v18 = vmul.f32 %v6052_v41, %v1727_v15  ;;  %v1728_v47 = vadd.f32 %v4397_v46, %v5649_v19 }
 0x4ac   :  { %v1767_v27 = vadd.f32 %v6058_v6, %v1747_v18  ;;  %v1748_v9 = vmul.f32 %v6052_v41, %v1728_v47  ;;  %v4398_v57 = vpop.f32.mrb[36].mxu0 }
 0x4ad   :  { %v4399_v4 = vpop.f32.mrb[37].mxu0 }
 0x4ae   :  { %v1768_v40 = vadd.f32 %v6058_v6, %v1748_v9  ;;  %v4400_v31 = vadd.f32 %v4399_v4, %v4398_v57  ;;  %v4401_v14 = vpop.f32.mrb[38].mxu0  ;;  %v1783_v0 = vmax.f32 %v1767_v27, 0.0 }
 0x4af   :  { %v4402_v42 = vpop.f32.mrb[39].mxu0 }
 0x4b0   :  { %v1784_v58 = vmax.f32 %v1768_v40, 0.0  ;;  %v1729_v21 = vadd.f32 %v5643_v12, %v4400_v31  ;;  %v4403_v1 = vadd.f32 %v4402_v42, %v4401_v14 }
 0x4b2   :  { %v1815_v44 = vpack.c.bf16 %v1784_v58, %v1783_v0  ;;  %v1749_v29 = vmul.f32 %v6052_v41, %v1729_v21  ;;  %v1730_v19 = vadd.f32 %v5647_v17, %v4403_v1 }
 0x4b4   :  { %v1769_v13 = vadd.f32 %v6058_v6, %v1749_v29  ;;  %v1750_v26 = vmul.f32 %v6052_v41, %v1730_v19  ;;  %v4404_v10 = vpop.f32.mrb[40].mxu0  ;;  %4160 = vmatmul.mubr.msk.bf16.vlgmr.msra.gmra.mrb[64].mxu0 %vm506_vm0, %v1815_v44  ;;  %4670 = vmatprep.mubr.msk.bf16.mxu1 %vm506_vm0, %v1815_v44 }
 0x4b5   :  { %v4405_v49 = vpop.f32.mrb[41].mxu0  ;;  %1953 = vmatprep.mubr.bf16.mxu0 %v7040_v38 }
 0x4b6   :  { %v1770_v12 = vadd.f32 %v6058_v6, %v1750_v26  ;;  %v4406_v28 = vadd.f32 %v4405_v49, %v4404_v10  ;;  %v4407_v55 = vpop.f32.mrb[42].mxu0  ;;  %v1785_v50 = vmax.f32 %v1769_v13, 0.0 }
 0x4b7   :  { %v4408_v34 = vpop.f32.mrb[43].mxu0 }
 0x4b8   :  { %v1786_v25 = vmax.f32 %v1770_v12, 0.0  ;;  %v1731_v17 = vadd.f32 %v4406_v28, %v5653_v24  ;;  %v4409_v11 = vadd.f32 %v4408_v34, %v4407_v55 }
 0x4ba   :  { %v1751_v62 = vmul.f32 %v6052_v41, %v1731_v17  ;;  %v1732_v3 = vadd.f32 %v4409_v11, %v5660_v37  ;;  %v1816_v52 = vpack.c.bf16 %v1786_v25, %v1785_v50 }
 0x4bc   :  { %v1771_v39 = vadd.f32 %v6058_v6, %v1751_v62  ;;  %v1752_v8 = vmul.f32 %v6052_v41, %v1732_v3  ;;  %v4410_v20 = vpop.f32.mrb[44].mxu0  ;;  %4161 = vmatmul.mubr.msk.bf16.gmra.mrb[68].mxu0 %vm506_vm0, %v1816_v52  ;;  %4671 = vmatmul.mubr.msk.bf16.vlgmr.msra.gmra.mrb[96].mxu1 %vm506_vm0, %v1816_v52 }
 0x4bd   :  { %v4411_v61 = vpop.f32.mrb[45].mxu0  ;;  %1963 = vmatprep.mubr.bf16.mxu0 %v7040_v38 }
 0x4be   :  { %v1772_v24 = vadd.f32 %v6058_v6, %v1752_v8  ;;  %v4412_v15 = vadd.f32 %v4411_v61, %v4410_v20  ;;  %v4413_v46 = vpop.f32.mrb[46].mxu0  ;;  %v1787_v47 = vmax.f32 %v1771_v39, 0.0 }
 0x4bf   :  { %v4414_v18 = vpop.f32.mrb[47].mxu0 }
 0x4c0   :  { %v1788_v37 = vmax.f32 %v1772_v24, 0.0  ;;  %v1733_v27 = vadd.f32 %v5651_v22, %v4412_v15  ;;  %v4415_v9 = vadd.f32 %v4414_v18, %v4413_v46 }
 0x4c2   :  { %v1753_v57 = vmul.f32 %v6052_v41, %v1733_v27  ;;  %v1734_v4 = vadd.f32 %v5657_v33, %v4415_v9  ;;  %v1817_v40 = vpack.c.bf16 %v1788_v37, %v1787_v47 }
 0x4c4   :  { %v1773_v31 = vadd.f32 %v6058_v6, %v1753_v57  ;;  %v1754_v14 = vmul.f32 %v6052_v41, %v1734_v4  ;;  %v4416_v42 = vpop.f32.mrb[48].mxu0  ;;  %4162 = vmatmul.mubr.msk.bf16.gmra.mrb[72].mxu0 %vm506_vm0, %v1817_v40  ;;  %4674 = vmatprep.mubr.msk.bf16.mxu1 %vm506_vm0, %v1817_v40 }
 0x4c5   :  { %v4417_v0 = vpop.f32.mrb[49].mxu0  ;;  %1973 = vmatprep.mubr.bf16.mxu0 %v7040_v38 }
 0x4c6   :  { %v1774_v22 = vadd.f32 %v6058_v6, %v1754_v14  ;;  %v4418_v58 = vadd.f32 %v4417_v0, %v4416_v42  ;;  %v4419_v21 = vpop.f32.mrb[50].mxu0  ;;  %v1789_v44 = vmax.f32 %v1773_v31, 0.0 }
 0x4c7   :  { %v4420_v1 = vpop.f32.mrb[51].mxu0 }
 0x4c8   :  { %v1790_v33 = vmax.f32 %v1774_v22, 0.0  ;;  %v1735_v29 = vadd.f32 %v4418_v58, %v5667_v48  ;;  %v4421_v19 = vadd.f32 %v4420_v1, %v4419_v21 }
 0x4ca   :  { %v1755_v13 = vmul.f32 %v6052_v41, %v1735_v29  ;;  %v1736_v26 = vadd.f32 %v4421_v19, %v5674_v56  ;;  %v1818_v10 = vpack.c.bf16 %v1790_v33, %v1789_v44 }
 0x4cc   :  { %v1775_v49 = vadd.f32 %v6058_v6, %v1755_v13  ;;  %v1756_v12 = vmul.f32 %v6052_v41, %v1736_v26  ;;  %v4422_v28 = vpop.f32.mrb[52].mxu0  ;;  %4163 = vmatmul.mubr.msk.bf16.gmra.mrb[76].mxu0 %vm506_vm0, %v1818_v10  ;;  %4675 = vmatmul.mubr.msk.bf16.gmra.mrb[100].mxu1 %vm506_vm0, %v1818_v10 }
 0x4cd   :  { %v4423_v55 = vpop.f32.mrb[53].mxu0  ;;  %1983 = vmatprep.mubr.bf16.mxu0 %v7040_v38 }
 0x4ce   :  { %v1776_v48 = vadd.f32 %v6058_v6, %v1756_v12  ;;  %v4424_v34 = vadd.f32 %v4423_v55, %v4422_v28  ;;  %v4425_v50 = vpop.f32.mrb[54].mxu0  ;;  %v1791_v17 = vmax.f32 %v1775_v49, 0.0 }
 0x4cf   :  { %v4426_v25 = vpop.f32.mrb[55].mxu0 }
 0x4d0   :  { %v1792_v56 = vmax.f32 %v1776_v48, 0.0  ;;  %v1737_v11 = vadd.f32 %v5665_v45, %v4424_v34  ;;  %v4427_v62 = vadd.f32 %v4426_v25, %v4425_v50 }
 0x4d2   :  { %v1757_v3 = vmul.f32 %v6052_v41, %v1737_v11  ;;  %v1738_v52 = vadd.f32 %v5671_v53, %v4427_v62  ;;  %v1819_v39 = vpack.c.bf16 %v1792_v56, %v1791_v17 }
 0x4d4   :  { %v1777_v8 = vadd.f32 %v6058_v6, %v1757_v3  ;;  %v1758_v20 = vmul.f32 %v6052_v41, %v1738_v52  ;;  %v4428_v61 = vpop.f32.mrb[56].mxu0  ;;  %4164 = vmatmul.mubr.msk.bf16.gmra.mrb[80].mxu0 %vm506_vm0, %v1819_v39  ;;  %4678 = vmatprep.mubr.msk.bf16.mxu1 %vm506_vm0, %v1819_v39 }
 0x4d5   :  { %v4429_v24 = vpop.f32.mrb[57].mxu0  ;;  %1993 = vmatprep.mubr.bf16.mxu0 %v7040_v38 }
 0x4d6   :  { %v1778_v45 = vadd.f32 %v6058_v6, %v1758_v20  ;;  %v4430_v15 = vadd.f32 %v4429_v24, %v4428_v61  ;;  %v4431_v46 = vpop.f32.mrb[58].mxu0  ;;  %v1793_v47 = vmax.f32 %v1777_v8, 0.0 }
 0x4d7   :  { %v4432_v18 = vpop.f32.mrb[59].mxu0 }
 0x4d8   :  { %v1794_v53 = vmax.f32 %v1778_v45, 0.0  ;;  %v1739_v37 = vadd.f32 %v4430_v15, %v5678_v2  ;;  %v4433_v27 = vadd.f32 %v4432_v18, %v4431_v46 }
 0x4da   :  { %v1759_v9 = vmul.f32 %v6052_v41, %v1739_v37  ;;  %v1740_v57 = vadd.f32 %v4433_v27, %v5682_v7  ;;  %v1820_v4 = vpack.c.bf16 %v1794_v53, %v1793_v47 }
 0x4dc   :  { %v1779_v40 = vadd.f32 %v6058_v6, %v1759_v9  ;;  %v1760_v31 = vmul.f32 %v6052_v41, %v1740_v57  ;;  %v4434_v14 = vpop.f32.mrb[60].mxu0  ;;  %4165 = vmatmul.mubr.msk.bf16.gmra.mrb[84].mxu0 %vm506_vm0, %v1820_v4  ;;  %4679 = vmatmul.mubr.msk.bf16.gmra.mrb[104].mxu1 %vm506_vm0, %v1820_v4 }
 0x4dd   :  { %v4435_v42 = vpop.f32.mrb[61].mxu0  ;;  %2003 = vmatprep.mubr.bf16.mxu0 %v7040_v38 }
 0x4de   :  { %v1780_v2 = vadd.f32 %v6058_v6, %v1760_v31  ;;  %v4436_v0 = vadd.f32 %v4435_v42, %v4434_v14  ;;  %v4437_v22 = vpop.f32.mrb[62].mxu0  ;;  %v1795_v21 = vmax.f32 %v1779_v40, 0.0 }
 0x4df   :  { %v4438_v58 = vpop.f32.mrb[63].mxu0 }
 0x4e0   :  { %v1796_v7 = vmax.f32 %v1780_v2, 0.0  ;;  %v1741_v1 = vadd.f32 %v5676_v63, %v4436_v0  ;;  %v4439_v44 = vadd.f32 %v4438_v58, %v4437_v22 }
 0x4e2   :  { %v1761_v33 = vmul.f32 %v6052_v41, %v1741_v1  ;;  %v1742_v29 = vadd.f32 %v5680_v5, %v4439_v44  ;;  %v1821_v19 = vpack.c.bf16 %v1796_v7, %v1795_v21  ;;  %v5331_v5 = vld [vmem:[#allocation5 + $0x4] ss:$8 sps:$4 sm:$0xff]  }
 0x4e4   :  { %v1781_v13 = vadd.f32 %v6058_v6, %v1761_v33  ;;  %v1762_v26 = vmul.f32 %v6052_v41, %v1742_v29  ;;  %4166 = vmatmul.mubr.msk.bf16.gmra.mrb[88].mxu0 %vm506_vm0, %v1821_v19  ;;  %4682 = vmatprep.mubr.msk.bf16.mxu1 %vm506_vm0, %v1821_v19 }
 0x4e5   :  { %2013 = vmatprep.mubr.bf16.mxu0 %v7040_v38 }
 0x4e6   :  { %v1782_v10 = vadd.f32 %v6058_v6, %v1762_v26  ;;  %v1797_v49 = vmax.f32 %v1781_v13, 0.0 }
 0x4e8   :  { %v1798_v63 = vmax.f32 %v1782_v10, 0.0 }
 0x4ea   :  { %v1822_v12 = vpack.c.bf16 %v1798_v63, %v1797_v49 }
 0x4ec   :  { %4167 = vmatmul.mubr.msk.bf16.gmra.mrb[92].mxu0 %vm506_vm0, %v1822_v12  ;;  %4683 = vmatmul.mubr.msk.bf16.gmra.mrb[108].mxu1 %vm506_vm0, %v1822_v12 }
 0x4ed   :  { %2169 = vmatprep.mubr.bf16.mxu0 %v7040_v38  ;;  %2706 = vmatprep.mubr.bf16.mxu1 %v5331_v5 }
 0x587   :  { %v1945_v41 = vpop.f32.mrb[64].mxu0 }
 0x588   :  { %v1947_v28 = vpop.f32.mrb[65].mxu0 }
 0x589   :  { %v1949_v55 = vpop.f32.mrb[66].mxu0 }
 0x58a   :  { %v2121_v48 = vpack.c.bf16 %v1949_v55, %v1945_v41  ;;  %v1951_v34 = vpop.f32.mrb[67].mxu0 }
 0x58b   :  { %v2122_v50 = vpack.c.bf16 %v1951_v34, %v1947_v28 }
 0x58d   :  { %2137 = vmatprep.subr.bf16.mxu0 %v2122_v50 }
 0x58e   :  { %2138 = vmatpush1.bf16.msra.mxu0 %v2121_v48 }
 0x58f   :  { %v1955_v6 = vpop.f32.mrb[68].mxu0  ;;  %v6131_v25 = vpop.f32.mrb[96].mxu1 }
 0x590   :  { %v1957_v17 = vpop.f32.mrb[69].mxu0  ;;  %v6133_v56 = vpop.f32.mrb[97].mxu1 }
 0x591   :  { %v1959_v11 = vpop.f32.mrb[70].mxu0  ;;  %v6135_v62 = vpop.f32.mrb[98].mxu1 }
 0x592   :  { %v2123_v3 = vpack.c.bf16 %v1959_v11, %v1955_v6  ;;  %v1961_v52 = vpop.f32.mrb[71].mxu0  ;;  %v6137_v39 = vpop.f32.mrb[99].mxu1 }
 0x593   :  { %v2124_v8 = vpack.c.bf16 %v1961_v52, %v1957_v17 }
 0x595   :  { %2139 = vmatprep.subr.bf16.mxu0 %v2124_v8 }
 0x596   :  { %2140 = vmatpush1.bf16.msra.mxu0 %v2123_v3 }
 0x597   :  { %v1965_v20 = vpop.f32.mrb[72].mxu0 }
 0x598   :  { %v1967_v61 = vpop.f32.mrb[73].mxu0 }
 0x599   :  { %v1969_v24 = vpop.f32.mrb[74].mxu0 }
 0x59a   :  { %v2125_v45 = vpack.c.bf16 %v1969_v24, %v1965_v20  ;;  %v1971_v15 = vpop.f32.mrb[75].mxu0  ;;  %v5332_v20 = vld [vmem:[#allocation2 + $0x40] sm:$0xff]   ;;  %v5334_v24 = vld [vmem:[#allocation2 + $0x50] sm:$0xff]  }
 0x59b   :  { %v2126_v46 = vpack.c.bf16 %v1971_v15, %v1967_v61  ;;  %v5333_v61 = vld [vmem:[#allocation2 + $0x48] sm:$0xff]   ;;  %v5336_v15 = vld [vmem:[#allocation2 + $0x60] sm:$0xff]  }
 0x59d   :  { %2141 = vmatprep.subr.bf16.mxu0 %v2126_v46  ;;  %v5337_v46 = vld [vmem:[#allocation2 + $0x68] sm:$0xff]  }
 0x59e   :  { %2142 = vmatpush1.bf16.msra.mxu0 %v2125_v45  ;;  %v5335_v45 = vld [vmem:[#allocation2 + $0x58] sm:$0xff]  }
 0x59f   :  { %v1975_v18 = vpop.f32.mrb[76].mxu0  ;;  %v6139_v47 = vpop.f32.mrb[100].mxu1 }
 0x5a0   :  { %v1977_v53 = vpop.f32.mrb[77].mxu0  ;;  %v6141_v37 = vpop.f32.mrb[101].mxu1 }
 0x5a1   :  { %v1979_v27 = vpop.f32.mrb[78].mxu0  ;;  %v6143_v9 = vpop.f32.mrb[102].mxu1 }
 0x5a2   :  { %v2127_v57 = vpack.c.bf16 %v1979_v27, %v1975_v18  ;;  %v1981_v4 = vpop.f32.mrb[79].mxu0  ;;  %v6145_v40 = vpop.f32.mrb[103].mxu1  ;;  %v5338_v18 = vld [vmem:[#allocation2 + $0x70] sm:$0xff]   ;;  %v5340_v27 = vld [vmem:[#allocation2 + $0x80] sm:$0xff]  }
 0x5a3   :  { %v2128_v31 = vpack.c.bf16 %v1981_v4, %v1977_v53  ;;  %v5339_v53 = vld [vmem:[#allocation2 + $0x78] sm:$0xff]   ;;  %v5342_v4 = vld [vmem:[#allocation2 + $0x90] sm:$0xff]  }
 0x5a5   :  { %2143 = vmatprep.subr.bf16.mxu0 %v2128_v31  ;;  %v5343_v31 = vld [vmem:[#allocation2 + $0x98] sm:$0xff]  }
 0x5a6   :  { %2144 = vmatpush1.bf16.msra.mxu0 %v2127_v57  ;;  %v5341_v57 = vld [vmem:[#allocation2 + $0x88] sm:$0xff]  }
 0x5a7   :  { %v1985_v14 = vpop.f32.mrb[80].mxu0 }
 0x5a8   :  { %v1987_v42 = vpop.f32.mrb[81].mxu0 }
 0x5a9   :  { %v1989_v2 = vpop.f32.mrb[82].mxu0 }
 0x5aa   :  { %v2129_v0 = vpack.c.bf16 %v1989_v2, %v1985_v14  ;;  %v1991_v22 = vpop.f32.mrb[83].mxu0  ;;  %v5344_v14 = vld [vmem:[#allocation2 + $0xa0] sm:$0xff]   ;;  %v5346_v2 = vld [vmem:[#allocation2 + $0xb0] sm:$0xff]  }
 0x5ab   :  { %v2130_v58 = vpack.c.bf16 %v1991_v22, %v1987_v42  ;;  %v5345_v42 = vld [vmem:[#allocation2 + $0xa8] sm:$0xff]   ;;  %v7002_v22 = vsub.s32 5, %v5611_v30 }
 0x5ad   :  { %2145 = vmatprep.subr.bf16.mxu0 %v2130_v58  ;;  %v6182_v58 = vrot.slane %v6047_v60, %v7002_v22 }
 0x5ae   :  { %2146 = vmatpush1.bf16.msra.mxu0 %v2129_v0  ;;  %v5347_v0 = vld [vmem:[#allocation2 + $0xb8] sm:$0xff]  }
 0x5af   :  { %v1995_v21 = vpop.f32.mrb[84].mxu0  ;;  %v6147_v7 = vpop.f32.mrb[104].mxu1 }
 0x5b0   :  { %v1997_v1 = vpop.f32.mrb[85].mxu0  ;;  %v6149_v44 = vpop.f32.mrb[105].mxu1 }
 0x5b1   :  { %v1999_v33 = vpop.f32.mrb[86].mxu0  ;;  %v6151_v29 = vpop.f32.mrb[106].mxu1 }
 0x5b2   :  { %7041 = vst [vmem:[#allocation41_spill] sm:$0xff] %v6151_v29  ;;  %v2131_v19 = vpack.c.bf16 %v1999_v33, %v1995_v21  ;;  %v2001_v13 = vpop.f32.mrb[87].mxu0  ;;  %v6153_v26 = vpop.f32.mrb[107].mxu1  ;;  %v7001_v21 = vsub.s32 6, %v5611_v30 }
 0x5b3   :  { %v2132_v10 = vpack.c.bf16 %v2001_v13, %v1997_v1 }
 0x5b4   :  { %v6188_v1 = vrot.slane %v6047_v60, %v7001_v21 }
 0x5b5   :  { %2147 = vmatprep.subr.bf16.mxu0 %v2132_v10 }
 0x5b6   :  { %2148 = vmatpush1.bf16.msra.mxu0 %v2131_v19  ;;  %v2334_v19 = vmul.f32 %v5712_v16, %v6182_v58 }
 0x5b7   :  { %v2005_v49 = vpop.f32.mrb[88].mxu0 }
 0x5b8   :  { %v2007_v63 = vpop.f32.mrb[89].mxu0 }
 0x5b9   :  { %v2009_v12 = vpop.f32.mrb[90].mxu0 }
 0x5ba   :  { %v2133_v5 = vpack.c.bf16 %v2009_v12, %v2005_v49  ;;  %v2011_v41 = vpop.f32.mrb[91].mxu0 }
 0x5bb   :  { %v2134_v28 = vpack.c.bf16 %v2011_v41, %v2007_v63  ;;  %v7046_v63 = vld [vmem:[#allocation16_spill] sm:$0xff] }
 0x5bc   :  { %v2335_v12 = vmul.f32 %v7046_v63, %v6182_v58 }
 0x5bd   :  { %2149 = vmatprep.subr.bf16.mxu0 %v2134_v28 }
 0x5be   :  { %2150 = vmatpush1.bf16.msra.mxu0 %v2133_v5 }
 0x5bf   :  { %v2015_v55 = vpop.f32.mrb[92].mxu0  ;;  %v6155_v48 = vpop.f32.mrb[108].mxu1 }
 0x5c0   :  { %7042 = vst [vmem:[#allocation42_spill] sm:$0xff] %v6155_v48  ;;  %v2017_v34 = vpop.f32.mrb[93].mxu0  ;;  %v6157_v50 = vpop.f32.mrb[109].mxu1 }
 0x5c1   :  { %7043 = vst [vmem:[#allocation43_spill] sm:$0xff] %v6157_v50  ;;  %v2019_v6 = vpop.f32.mrb[94].mxu0  ;;  %v6159_v17 = vpop.f32.mrb[110].mxu1 }
 0x5c2   :  { %7044 = vst [vmem:[#allocation44_spill] sm:$0xff] %v6159_v17  ;;  %v2135_v11 = vpack.c.bf16 %v2019_v6, %v2015_v55  ;;  %v2021_v3 = vpop.f32.mrb[95].mxu0  ;;  %v6161_v52 = vpop.f32.mrb[111].mxu1 }
 0x5c3   :  { %7045 = vst [vmem:[#allocation45_spill] sm:$0xff] %v6161_v52  ;;  %v2136_v8 = vpack.c.bf16 %v2021_v3, %v2017_v34 }
 0x5c5   :  { %2151 = vmatprep.subr.bf16.mxu0 %v2136_v8 }
 0x5c6   :  { %2152 = vmatpush1.bf16.msra.mxu0 %v2135_v11  ;;  %v7047_v11 = vld [vmem:[#allocation17_spill] sm:$0xff] }
 0x5c7   :  { %v2336_v3 = vmul.f32 %v7047_v11, %v6182_v58 }
 0x5c9   :  { %2170 = vmatmul.mubr.bf16.vlgmr.msra.gmra.mrb[96].mxu0 %v5332_v20 }
 0x5ca   :  { %2179 = vmatprep.mubr.bf16.mxu0 %v7040_v38 }
 0x5d1   :  { %2180 = vmatmul.mubr.bf16.gmra.mrb[100].mxu0 %v5333_v61 }
 0x5d2   :  { %2189 = vmatprep.mubr.bf16.mxu0 %v7040_v38 }
 0x5d9   :  { %2190 = vmatmul.mubr.bf16.gmra.mrb[104].mxu0 %v5334_v24  ;;  %v7048_v24 = vld [vmem:[#allocation18_spill] sm:$0xff] }
 0x5da   :  { %2199 = vmatprep.mubr.bf16.mxu0 %v7040_v38 }
 0x5e1   :  { %2200 = vmatmul.mubr.bf16.gmra.mrb[108].mxu0 %v5335_v45  ;;  %v2337_v45 = vmul.f32 %v7048_v24, %v6182_v58 }
 0x5e2   :  { %2209 = vmatprep.mubr.bf16.mxu0 %v7040_v38 }
 0x5e9   :  { %2210 = vmatmul.mubr.bf16.gmra.mrb[112].mxu0 %v5336_v15 }
 0x5ea   :  { %2219 = vmatprep.mubr.bf16.mxu0 %v7040_v38 }
 0x5f1   :  { %2220 = vmatmul.mubr.bf16.gmra.mrb[116].mxu0 %v5337_v46 }
 0x5f2   :  { %2229 = vmatprep.mubr.bf16.mxu0 %v7040_v38 }
 0x5f9   :  { %2230 = vmatmul.mubr.bf16.gmra.mrb[120].mxu0 %v5338_v18 }
 0x5fa   :  { %2239 = vmatprep.mubr.bf16.mxu0 %v7040_v38 }
 0x601   :  { %2240 = vmatmul.mubr.bf16.gmra.mrb[124].mxu0 %v5339_v53 }
 0x602   :  { %2249 = vmatprep.mubr.bf16.mxu0 %v7040_v38 }
 0x609   :  { %2250 = vmatmul.mubr.bf16.gmra.mrb[128].mxu0 %v5340_v27 }
 0x60a   :  { %2259 = vmatprep.mubr.bf16.mxu0 %v7040_v38 }
 0x611   :  { %2260 = vmatmul.mubr.bf16.gmra.mrb[132].mxu0 %v5341_v57 }
 0x612   :  { %2269 = vmatprep.mubr.bf16.mxu0 %v7040_v38 }
 0x619   :  { %2270 = vmatmul.mubr.bf16.gmra.mrb[136].mxu0 %v5342_v4 }
 0x61a   :  { %2279 = vmatprep.mubr.bf16.mxu0 %v7040_v38 }
 0x621   :  { %2280 = vmatmul.mubr.bf16.gmra.mrb[140].mxu0 %v5343_v31  ;;  %v7049_v31 = vld [vmem:[#allocation19_spill] sm:$0xff] }
 0x622   :  { %2289 = vmatprep.mubr.bf16.mxu0 %v7040_v38 }
 0x629   :  { %2290 = vmatmul.mubr.bf16.gmra.mrb[144].mxu0 %v5344_v14  ;;  %v2338_v14 = vmul.f32 %v7049_v31, %v6182_v58 }
 0x62a   :  { %2299 = vmatprep.mubr.bf16.mxu0 %v7040_v38 }
 0x631   :  { %2300 = vmatmul.mubr.bf16.gmra.mrb[148].mxu0 %v5345_v42 }
 0x632   :  { %2309 = vmatprep.mubr.bf16.mxu0 %v7040_v38 }
 0x639   :  { %2310 = vmatmul.mubr.bf16.gmra.mrb[152].mxu0 %v5346_v2 }
 0x63a   :  { %2319 = vmatprep.mubr.bf16.mxu0 %v7040_v38 }
 0x641   :  { %2320 = vmatmul.mubr.bf16.gmra.mrb[156].mxu0 %v5347_v0 }
 0x69c   :  { %v6190_v33 = vpop.f32.mrb[96].mxu0 }
 0x69d   :  { %v2173_v13 = vpop.f32.mrb[97].mxu0 }
 0x69e   :  { %v2366_v10 = vadd.f32 %v2334_v19, %v2173_v13  ;;  %v6194_v49 = vpop.f32.mrb[98].mxu0  ;;  %v7050_v13 = vld [vmem:[#allocation20_spill] sm:$0xff] }
 0x69f   :  { %v2177_v5 = vpop.f32.mrb[99].mxu0 }
 0x6a0   :  { %v2402_v41 = vadd.f32 %v6188_v1, %v2366_v10  ;;  %v2367_v28 = vadd.f32 %v2335_v12, %v2177_v5  ;;  %v2339_v10 = vmul.f32 %v7050_v13, %v6182_v58 }
 0x6a2   :  { %v4176_v55 = vmul.f32 -1.442695, %v2402_v41  ;;  %v2403_v60 = vadd.f32 %v6188_v1, %v2367_v28 }
 0x6a4   :  { %5074 = vpow2.f32 %v4176_v55  ;;  %v4177_v34 = vmul.f32 -1.442695, %v2403_v60  ;;  %v6200_v6 = vpop.f32.mrb[100].mxu0 }
 0x6a5   :  { %v2183_v8 = vpop.f32.mrb[101].mxu0 }
 0x6a6   :  { %5076 = vpow2.f32 %v4177_v34  ;;  %v2368_v20 = vadd.f32 %v2336_v3, %v2183_v8  ;;  %v6204_v61 = vpop.f32.mrb[102].mxu0 }
 0x6a7   :  { %v2187_v15 = vpop.f32.mrb[103].mxu0 }
 0x6a8   :  { %v2404_v46 = vadd.f32 %v6188_v1, %v2368_v20  ;;  %v2369_v18 = vadd.f32 %v2337_v45, %v2187_v15  ;;  %v7051_v45 = vld [vmem:[#allocation21_spill] sm:$0xff] }
 0x6a9   :  { %v2340_v15 = vmul.f32 %v7051_v45, %v6182_v58 }
 0x6aa   :  { %v4178_v53 = vmul.f32 -1.442695, %v2404_v46  ;;  %v2405_v27 = vadd.f32 %v6188_v1, %v2369_v18 }
 0x6ac   :  { %5078 = vpow2.f32 %v4178_v53  ;;  %v4179_v57 = vmul.f32 -1.442695, %v2405_v27  ;;  %v6210_v4 = vpop.f32.mrb[104].mxu0 }
 0x6ad   :  { %v2193_v42 = vpop.f32.mrb[105].mxu0 }
 0x6ae   :  { %v5075_v2 = vpop.eup %5074  ;;  %5080 = vpow2.f32 %v4179_v57  ;;  %v2370_v0 = vadd.f32 %v2338_v14, %v2193_v42  ;;  %v6214_v19 = vpop.f32.mrb[106].mxu0  ;;  %v7052_v57 = vld [vmem:[#allocation22_spill] sm:$0xff] }
 0x6af   :  { %v2530_v12 = vadd.f32 1.0, %v5075_v2  ;;  %v2197_v5 = vpop.f32.mrb[107].mxu0  ;;  %v2341_v14 = vmul.f32 %v7052_v57, %v6182_v58 }
 0x6b0   :  { %v5077_v41 = vpop.eup %5076  ;;  %v2406_v28 = vadd.f32 %v6188_v1, %v2370_v0  ;;  %v2371_v55 = vadd.f32 %v2339_v10, %v2197_v5 }
 0x6b1   :  { %5082 = vrcp.f32 %v2530_v12  ;;  %v2531_v60 = vadd.f32 1.0, %v5077_v41 }
 0x6b2   :  { %v4180_v34 = vmul.f32 -1.442695, %v2406_v28  ;;  %v2407_v3 = vadd.f32 %v6188_v1, %v2371_v55 }
 0x6b3   :  { %5084 = vrcp.f32 %v2531_v60 }
 0x6b4   :  { %5086 = vpow2.f32 %v4180_v34  ;;  %v4181_v8 = vmul.f32 -1.442695, %v2407_v3  ;;  %v6220_v20 = vpop.f32.mrb[108].mxu0  ;;  %v7053_v3 = vld [vmem:[#allocation23_spill] sm:$0xff] }
 0x6b5   :  { %v2203_v46 = vpop.f32.mrb[109].mxu0 }
 0x6b6   :  { %v5079_v18 = vpop.eup %5078  ;;  %5088 = vpow2.f32 %v4181_v8  ;;  %v2372_v53 = vadd.f32 %v2340_v15, %v2203_v46  ;;  %v6224_v27 = vpop.f32.mrb[110].mxu0  ;;  %v2342_v8 = vmul.f32 %v7053_v3, %v6182_v58 }
 0x6b7   :  { %v2532_v42 = vadd.f32 1.0, %v5079_v18  ;;  %v2207_v2 = vpop.f32.mrb[111].mxu0 }
 0x6b8   :  { %v5081_v0 = vpop.eup %5080  ;;  %v2408_v10 = vadd.f32 %v6188_v1, %v2372_v53  ;;  %v2373_v12 = vadd.f32 %v2341_v14, %v2207_v2  ;;  %v7054_v2 = vld [vmem:[#allocation24_spill] sm:$0xff] }
 0x6b9   :  { %5090 = vrcp.f32 %v2532_v42  ;;  %v2533_v5 = vadd.f32 1.0, %v5081_v0  ;;  %v2343_v0 = vmul.f32 %v7054_v2, %v6182_v58 }
 0x6ba   :  { %v4182_v41 = vmul.f32 -1.442695, %v2408_v10  ;;  %v2409_v28 = vadd.f32 %v6188_v1, %v2373_v12 }
 0x6bb   :  { %v5083_v55 = vpop.eup %5082  ;;  %5092 = vrcp.f32 %v2533_v5 }
 0x6bc   :  { %5094 = vpow2.f32 %v4182_v41  ;;  %v4183_v60 = vmul.f32 -1.442695, %v2409_v28  ;;  %v6230_v34 = vpop.f32.mrb[112].mxu0  ;;  %v6235_v15 = vmul.f32 %v5083_v55, %v6190_v33 }
 0x6bd   :  { %v5085_v46 = vpop.eup %5084  ;;  %v2213_v18 = vpop.f32.mrb[113].mxu0 }
 0x6be   :  { %v5087_v53 = vpop.eup %5086  ;;  %5096 = vpow2.f32 %v4183_v60  ;;  %v2374_v14 = vadd.f32 %v2342_v8, %v2213_v18  ;;  %v6237_v42 = vpop.f32.mrb[114].mxu0  ;;  %v6242_v10 = vmul.f32 %v5085_v46, %v6194_v49  ;;  %v7055_v46 = vld [vmem:[#allocation25_spill] sm:$0xff] }
 0x6bf   :  { %v2534_v12 = vadd.f32 1.0, %v5087_v53  ;;  %v2217_v5 = vpop.f32.mrb[115].mxu0  ;;  %v2344_v53 = vmul.f32 %v7055_v46, %v6182_v58 }
 0x6c0   :  { %v5089_v41 = vpop.eup %5088  ;;  %v2410_v28 = vadd.f32 %v6188_v1, %v2374_v14  ;;  %v2375_v33 = vadd.f32 %v2343_v0, %v2217_v5 }
 0x6c1   :  { %5098 = vrcp.f32 %v2534_v12  ;;  %v2535_v60 = vadd.f32 1.0, %v5089_v41 }
 0x6c2   :  { %v4184_v8 = vmul.f32 -1.442695, %v2410_v28  ;;  %v2411_v18 = vadd.f32 %v6188_v1, %v2375_v33  ;;  %v7056_v28 = vld [vmem:[#allocation26_spill] sm:$0xff] }
 0x6c3   :  { %v5091_v21 = vpop.eup %5090  ;;  %5100 = vrcp.f32 %v2535_v60  ;;  %v2345_v33 = vmul.f32 %v7056_v28, %v6182_v58 }
 0x6c4   :  { %5102 = vpow2.f32 %v4184_v8  ;;  %v4185_v22 = vmul.f32 -1.442695, %v2411_v18  ;;  %v6248_v49 = vpop.f32.mrb[116].mxu0  ;;  %v6253_v14 = vmul.f32 %v5091_v21, %v6200_v6 }
 0x6c5   :  { %v5093_v0 = vpop.eup %5092  ;;  %v2223_v5 = vpop.f32.mrb[117].mxu0 }
 0x6c6   :  { %v5095_v36 = vpop.eup %5094  ;;  %5104 = vpow2.f32 %v4185_v22  ;;  %v2376_v12 = vadd.f32 %v2344_v53, %v2223_v5  ;;  %v6255_v41 = vpop.f32.mrb[118].mxu0  ;;  %v6260_v60 = vmul.f32 %v5093_v0, %v6204_v61 }
 0x6c7   :  { %v2536_v8 = vadd.f32 1.0, %v5095_v36  ;;  %v2227_v18 = vpop.f32.mrb[119].mxu0  ;;  %v7057_v36 = vld [vmem:[#allocation27_spill] sm:$0xff] }
 0x6c8   :  { %v5097_v23 = vpop.eup %5096  ;;  %v2412_v55 = vadd.f32 %v6188_v1, %v2376_v12  ;;  %v2377_v21 = vadd.f32 %v2345_v33, %v2227_v18  ;;  %v2346_v0 = vmul.f32 %v7057_v36, %v6182_v58 }
 0x6c9   :  { %5106 = vrcp.f32 %v2536_v8  ;;  %v2537_v22 = vadd.f32 1.0, %v5097_v23  ;;  %v7058_v8 = vld [vmem:[#allocation28_spill] sm:$0xff] }
 0x6ca   :  { %v4186_v53 = vmul.f32 -1.442695, %v2412_v55  ;;  %v2413_v5 = vadd.f32 %v6188_v1, %v2377_v21  ;;  %v2347_v21 = vmul.f32 %v7058_v8, %v6182_v58 }
 0x6cb   :  { %v5099_v46 = vpop.eup %5098  ;;  %5108 = vrcp.f32 %v2537_v22 }
 0x6cc   :  { %5110 = vpow2.f32 %v4186_v53  ;;  %v4187_v28 = vmul.f32 -1.442695, %v2413_v5  ;;  %v6266_v61 = vpop.f32.mrb[120].mxu0  ;;  %v6271_v12 = vmul.f32 %v5099_v46, %v6210_v4 }
 0x6cd   :  { %v5101_v33 = vpop.eup %5100  ;;  %v2233_v18 = vpop.f32.mrb[121].mxu0 }
 0x6ce   :  { %v5103_v6 = vpop.eup %5102  ;;  %5112 = vpow2.f32 %v4187_v28  ;;  %v2378_v23 = vadd.f32 %v2346_v0, %v2233_v18  ;;  %v6273_v55 = vpop.f32.mrb[122].mxu0  ;;  %v6278_v22 = vmul.f32 %v5101_v33, %v6214_v19 }
 0x6cf   :  { %v2538_v53 = vadd.f32 1.0, %v5103_v6  ;;  %v2237_v5 = vpop.f32.mrb[123].mxu0  ;;  %v7059_v6 = vld [vmem:[#allocation29_spill] sm:$0xff] }
 0x6d0   :  { %v5105_v2 = vpop.eup %5104  ;;  %v2414_v36 = vadd.f32 %v6188_v1, %v2378_v23  ;;  %v2379_v4 = vadd.f32 %v2347_v21, %v2237_v5  ;;  %v2348_v33 = vmul.f32 %v7059_v6, %v6182_v58 }
 0x6d1   :  { %5114 = vrcp.f32 %v2538_v53  ;;  %v2539_v28 = vadd.f32 1.0, %v5105_v2  ;;  %v7060_v53 = vld [vmem:[#allocation30_spill] sm:$0xff] }
 0x6d2   :  { %v4188_v0 = vmul.f32 -1.442695, %v2414_v36  ;;  %v2415_v18 = vadd.f32 %v6188_v1, %v2379_v4  ;;  %v2349_v4 = vmul.f32 %v7060_v53, %v6182_v58 }
 0x6d3   :  { %v5107_v3 = vpop.eup %5106  ;;  %5116 = vrcp.f32 %v2539_v28 }
 0x6d4   :  { %5118 = vpow2.f32 %v4188_v0  ;;  %v4189_v8 = vmul.f32 -1.442695, %v2415_v18  ;;  %v6284_v19 = vpop.f32.mrb[124].mxu0  ;;  %v6289_v23 = vmul.f32 %v5107_v3, %v6220_v20 }
 0x6d5   :  { %v5109_v21 = vpop.eup %5108  ;;  %v2243_v5 = vpop.f32.mrb[125].mxu0 }
 0x6d6   :  { %v5111_v46 = vpop.eup %5110  ;;  %5120 = vpow2.f32 %v4189_v8  ;;  %v2380_v2 = vadd.f32 %v2348_v33, %v2243_v5  ;;  %v6291_v36 = vpop.f32.mrb[126].mxu0  ;;  %v6296_v28 = vmul.f32 %v5109_v21, %v6224_v27 }
 0x6d7   :  { %v2540_v0 = vadd.f32 1.0, %v5111_v46  ;;  %v2247_v18 = vpop.f32.mrb[127].mxu0  ;;  %v7061_v46 = vld [vmem:[#allocation31_spill] sm:$0xff] }
 0x6d8   :  { %v5113_v57 = vpop.eup %5112  ;;  %v2416_v6 = vadd.f32 %v6188_v1, %v2380_v2  ;;  %v2381_v20 = vadd.f32 %v2349_v4, %v2247_v18  ;;  %v2350_v21 = vmul.f32 %v7061_v46, %v6182_v58 }
 0x6d9   :  { %5122 = vrcp.f32 %v2540_v0  ;;  %v2541_v8 = vadd.f32 1.0, %v5113_v57  ;;  %v7062_v0 = vld [vmem:[#allocation32_spill] sm:$0xff] }
 0x6da   :  { %v4190_v33 = vmul.f32 -1.442695, %v2416_v6  ;;  %v2417_v5 = vadd.f32 %v6188_v1, %v2381_v20  ;;  %v2351_v20 = vmul.f32 %v7062_v0, %v6182_v58 }
 0x6db   :  { %v5115_v45 = vpop.eup %5114  ;;  %5124 = vrcp.f32 %v2541_v8 }
 0x6dc   :  { %5126 = vpow2.f32 %v4190_v33  ;;  %v4191_v53 = vmul.f32 -1.442695, %v2417_v5  ;;  %v6302_v27 = vpop.f32.mrb[128].mxu0  ;;  %v6307_v2 = vmul.f32 %v5115_v45, %v6230_v34 }
 0x6dd   :  { %v5117_v4 = vpop.eup %5116  ;;  %v2253_v18 = vpop.f32.mrb[129].mxu0 }
 0x6de   :  { %v5119_v3 = vpop.eup %5118  ;;  %5128 = vpow2.f32 %v4191_v53  ;;  %v2382_v57 = vadd.f32 %v2350_v21, %v2253_v18  ;;  %v6309_v6 = vpop.f32.mrb[130].mxu0  ;;  %v6314_v8 = vmul.f32 %v5117_v4, %v6237_v42 }
 0x6df   :  { %v2542_v33 = vadd.f32 1.0, %v5119_v3  ;;  %v2257_v5 = vpop.f32.mrb[131].mxu0  ;;  %v7063_v3 = vld [vmem:[#allocation33_spill] sm:$0xff] }
 0x6e0   :  { %v5121_v13 = vpop.eup %5120  ;;  %v2418_v46 = vadd.f32 %v6188_v1, %v2382_v57  ;;  %v2383_v45 = vadd.f32 %v2351_v20, %v2257_v5  ;;  %v2352_v4 = vmul.f32 %v7063_v3, %v6182_v58 }
 0x6e1   :  { %5130 = vrcp.f32 %v2542_v33  ;;  %v2543_v53 = vadd.f32 1.0, %v5121_v13  ;;  %v7064_v33 = vld [vmem:[#allocation34_spill] sm:$0xff] }
 0x6e2   :  { %v4192_v21 = vmul.f32 -1.442695, %v2418_v46  ;;  %v2419_v18 = vadd.f32 %v6188_v1, %v2383_v45  ;;  %v2353_v45 = vmul.f32 %v7064_v33, %v6182_v58 }
 0x6e3   :  { %v5123_v31 = vpop.eup %5122  ;;  %5132 = vrcp.f32 %v2543_v53 }
 0x6e4   :  { %5134 = vpow2.f32 %v4192_v21  ;;  %v4193_v0 = vmul.f32 -1.442695, %v2419_v18  ;;  %v6320_v42 = vpop.f32.mrb[132].mxu0  ;;  %v6325_v57 = vmul.f32 %v5123_v31, %v6248_v49 }
 0x6e5   :  { %v5125_v20 = vpop.eup %5124  ;;  %v2263_v5 = vpop.f32.mrb[133].mxu0 }
 0x6e6   :  { %v5127_v34 = vpop.eup %5126  ;;  %5136 = vpow2.f32 %v4193_v0  ;;  %v2384_v13 = vadd.f32 %v2352_v4, %v2263_v5  ;;  %v6327_v46 = vpop.f32.mrb[134].mxu0  ;;  %v6332_v53 = vmul.f32 %v5125_v20, %v6255_v41 }
 0x6e7   :  { %v2544_v21 = vadd.f32 1.0, %v5127_v34  ;;  %v2267_v18 = vpop.f32.mrb[135].mxu0  ;;  %v7065_v34 = vld [vmem:[#allocation35_spill] sm:$0xff] }
 0x6e8   :  { %v5129_v24 = vpop.eup %5128  ;;  %v2420_v3 = vadd.f32 %v6188_v1, %v2384_v13  ;;  %v2385_v31 = vadd.f32 %v2353_v45, %v2267_v18  ;;  %v2354_v20 = vmul.f32 %v7065_v34, %v6182_v58 }
 0x6e9   :  { %5138 = vrcp.f32 %v2544_v21  ;;  %v2545_v0 = vadd.f32 1.0, %v5129_v24  ;;  %v7066_v21 = vld [vmem:[#allocation36_spill] sm:$0xff] }
 0x6ea   :  { %v4194_v4 = vmul.f32 -1.442695, %v2420_v3  ;;  %v2421_v5 = vadd.f32 %v6188_v1, %v2385_v31  ;;  %v2355_v31 = vmul.f32 %v7066_v21, %v6182_v58 }
 0x6eb   :  { %v5131_v11 = vpop.eup %5130  ;;  %5140 = vrcp.f32 %v2545_v0 }
 0x6ec   :  { %5142 = vpow2.f32 %v4194_v4  ;;  %v4195_v33 = vmul.f32 -1.442695, %v2421_v5  ;;  %v6338_v41 = vpop.f32.mrb[136].mxu0  ;;  %v6343_v13 = vmul.f32 %v5131_v11, %v6266_v61 }
 0x6ed   :  { %v5133_v45 = vpop.eup %5132  ;;  %v2273_v18 = vpop.f32.mrb[137].mxu0 }
 0x6ee   :  { %v5135_v49 = vpop.eup %5134  ;;  %5144 = vpow2.f32 %v4195_v33  ;;  %v2386_v24 = vadd.f32 %v2354_v20, %v2273_v18  ;;  %v6345_v3 = vpop.f32.mrb[138].mxu0  ;;  %v6350_v0 = vmul.f32 %v5133_v45, %v6273_v55 }
 0x6ef   :  { %v2546_v4 = vadd.f32 1.0, %v5135_v49  ;;  %v2277_v5 = vpop.f32.mrb[139].mxu0  ;;  %v7067_v49 = vld [vmem:[#allocation37_spill] sm:$0xff] }
 0x6f0   :  { %v5137_v63 = vpop.eup %5136  ;;  %v2422_v34 = vadd.f32 %v6188_v1, %v2386_v24  ;;  %v2387_v11 = vadd.f32 %v2355_v31, %v2277_v5  ;;  %v2356_v45 = vmul.f32 %v7067_v49, %v6182_v58 }
 0x6f1   :  { %5146 = vrcp.f32 %v2546_v4  ;;  %v2547_v33 = vadd.f32 1.0, %v5137_v63  ;;  %v7068_v4 = vld [vmem:[#allocation38_spill] sm:$0xff] }
 0x6f2   :  { %v4196_v20 = vmul.f32 -1.442695, %v2422_v34  ;;  %v2423_v18 = vadd.f32 %v6188_v1, %v2387_v11  ;;  %v2357_v11 = vmul.f32 %v7068_v4, %v6182_v58 }
 0x6f3   :  { %v5139_v16 = vpop.eup %5138  ;;  %5148 = vrcp.f32 %v2547_v33 }
 0x6f4   :  { %5150 = vpow2.f32 %v4196_v20  ;;  %v4197_v21 = vmul.f32 -1.442695, %v2423_v18  ;;  %v6356_v55 = vpop.f32.mrb[140].mxu0  ;;  %v6361_v24 = vmul.f32 %v5139_v16, %v6284_v19 }
 0x6f5   :  { %v5141_v31 = vpop.eup %5140  ;;  %v2283_v5 = vpop.f32.mrb[141].mxu0 }
 0x6f6   :  { %v5143_v61 = vpop.eup %5142  ;;  %5152 = vpow2.f32 %v4197_v21  ;;  %v2388_v63 = vadd.f32 %v2356_v45, %v2283_v5  ;;  %v6363_v34 = vpop.f32.mrb[142].mxu0  ;;  %v6368_v33 = vmul.f32 %v5141_v31, %v6291_v36 }
 0x6f7   :  { %v2548_v20 = vadd.f32 1.0, %v5143_v61  ;;  %v2287_v18 = vpop.f32.mrb[143].mxu0  ;;  %v7069_v61 = vld [vmem:[#allocation39_spill] sm:$0xff] }
 0x6f8   :  { %v5145_v17 = vpop.eup %5144  ;;  %v2424_v49 = vadd.f32 %v6188_v1, %v2388_v63  ;;  %v2389_v16 = vadd.f32 %v2357_v11, %v2287_v18  ;;  %v2358_v31 = vmul.f32 %v7069_v61, %v6182_v58 }
 0x6f9   :  { %5154 = vrcp.f32 %v2548_v20  ;;  %v2549_v21 = vadd.f32 1.0, %v5145_v17 }
 0x6fa   :  { %v4198_v45 = vmul.f32 -1.442695, %v2424_v49  ;;  %v2425_v5 = vadd.f32 %v6188_v1, %v2389_v16  ;;  %v7070_v49 = vld [vmem:[#allocation40_spill] sm:$0xff] }
 0x6fb   :  { %v5147_v48 = vpop.eup %5146  ;;  %5156 = vrcp.f32 %v2549_v21  ;;  %v2359_v16 = vmul.f32 %v7070_v49, %v6182_v58 }
 0x6fc   :  { %5158 = vpow2.f32 %v4198_v45  ;;  %v4199_v4 = vmul.f32 -1.442695, %v2425_v5  ;;  %v6374_v36 = vpop.f32.mrb[144].mxu0  ;;  %v2642_v63 = vmul.f32 %v5147_v48, %v6302_v27 }
 0x6fd   :  { %v5149_v11 = vpop.eup %5148  ;;  %v2293_v18 = vpop.f32.mrb[145].mxu0 }
 0x6fe   :  { %v5151_v52 = vpop.eup %5150  ;;  %5160 = vpow2.f32 %v4199_v4  ;;  %v2390_v20 = vadd.f32 %v2358_v31, %v2293_v18  ;;  %v6379_v17 = vpop.f32.mrb[146].mxu0  ;;  %v2643_v21 = vmul.f32 %v5149_v11, %v6309_v6  ;;  %v7071_v18 = vpack.c.bf16 %v6242_v10, %v6235_v15 }
 0x6ff   :  { %v2550_v45 = vadd.f32 1.0, %v5151_v52  ;;  %v2297_v5 = vpop.f32.mrb[147].mxu0  ;;  %v2360_v11 = vmul.f32 %v5968_v35, %v6182_v58  ;;  %v2361_v15 = vmul.f32 %v5971_v43, %v6182_v58 }
 0x700   :  { %v5153_v19 = vpop.eup %5152  ;;  %v2426_v50 = vadd.f32 %v6188_v1, %v2390_v20  ;;  %v2391_v61 = vadd.f32 %v2359_v16, %v2297_v5  ;;  %v2666_v29 = vpack.c.bf16 %v2643_v21, %v2642_v63 }
 0x701   :  { %5162 = vrcp.f32 %v2550_v45  ;;  %v2551_v48 = vadd.f32 1.0, %v5153_v19 }
 0x702   :  { %v4200_v27 = vmul.f32 -1.442695, %v2426_v50  ;;  %v2427_v4 = vadd.f32 %v6188_v1, %v2391_v61  ;;  %4452 = vmatprep.subr.bf16.mxu1 %v2666_v29 }
 0x703   :  { %v5155_v31 = vpop.eup %5154  ;;  %5164 = vrcp.f32 %v2551_v48  ;;  %4453 = vmatpush3.bf16.msra.mxu1 %v7071_v18 }
 0x704   :  { %5166 = vpow2.f32 %v4200_v27  ;;  %v4201_v52 = vmul.f32 -1.442695, %v2427_v4  ;;  %v6389_v6 = vpop.f32.mrb[148].mxu0  ;;  %v2644_v63 = vmul.f32 %v5155_v31, %v6320_v42 }
 0x705   :  { %v5157_v19 = vpop.eup %5156  ;;  %v2303_v50 = vpop.f32.mrb[149].mxu0 }
 0x706   :  { %v5159_v20 = vpop.eup %5158  ;;  %5168 = vpow2.f32 %v4201_v52  ;;  %v2392_v29 = vadd.f32 %v2360_v11, %v2303_v50  ;;  %v6394_v61 = vpop.f32.mrb[150].mxu0  ;;  %v2645_v10 = vmul.f32 %v5157_v19, %v6327_v46  ;;  %v7072_v52 = vpack.c.bf16 %v6260_v60, %v6253_v14 }
 0x707   :  { %v2552_v16 = vadd.f32 1.0, %v5159_v20  ;;  %v2307_v21 = vpop.f32.mrb[151].mxu0  ;;  %v2362_v19 = vmul.f32 %v5987_v54, %v6182_v58  ;;  %v2363_v14 = vmul.f32 %v5990_v32, %v6182_v58 }
 0x708   :  { %v5161_v45 = vpop.eup %5160  ;;  %v2428_v5 = vadd.f32 %v6188_v1, %v2392_v29  ;;  %v2393_v48 = vadd.f32 %v2361_v15, %v2307_v21  ;;  %v2667_v27 = vpack.c.bf16 %v2645_v10, %v2644_v63 }
 0x709   :  { %5170 = vrcp.f32 %v2552_v16  ;;  %v2553_v42 = vadd.f32 1.0, %v5161_v45 }
 0x70a   :  { %v4202_v4 = vmul.f32 -1.442695, %v2428_v5  ;;  %v2429_v31 = vadd.f32 %v6188_v1, %v2393_v48  ;;  %4454 = vmatprep.subr.bf16.mxu1 %v2667_v27 }
 0x70b   :  { %v5163_v18 = vpop.eup %5162  ;;  %5172 = vrcp.f32 %v2553_v42  ;;  %4455 = vmatpush3.bf16.msra.mxu1 %v7072_v52 }
 0x70c   :  { %5174 = vpow2.f32 %v4202_v4  ;;  %v4203_v46 = vmul.f32 -1.442695, %v2429_v31  ;;  %v6404_v11 = vpop.f32.mrb[152].mxu0  ;;  %v2646_v63 = vmul.f32 %v5163_v18, %v6338_v41  ;;  %v7073_v18 = vpack.c.bf16 %v6278_v22, %v6271_v12 }
 0x70d   :  { %v5165_v50 = vpop.eup %5164  ;;  %v2313_v20 = vpop.f32.mrb[153].mxu0 }
 0x70e   :  { %v5167_v29 = vpop.eup %5166  ;;  %5176 = vpow2.f32 %v4203_v46  ;;  %v2394_v15 = vadd.f32 %v2362_v19, %v2313_v20  ;;  %v6409_v10 = vpop.f32.mrb[154].mxu0  ;;  %v2647_v60 = vmul.f32 %v5165_v50, %v6345_v3  ;;  %v2364_v46 = vmul.f32 %v6006_v59, %v6182_v58 }
 0x70f   :  { %v2554_v16 = vadd.f32 1.0, %v5167_v29  ;;  %v2317_v21 = vpop.f32.mrb[155].mxu0 }
 0x710   :  { %v5169_v45 = vpop.eup %5168  ;;  %v2430_v5 = vadd.f32 %v6188_v1, %v2394_v15  ;;  %v2395_v48 = vadd.f32 %v2363_v14, %v2317_v21  ;;  %v2668_v27 = vpack.c.bf16 %v2647_v60, %v2646_v63  ;;  %v2365_v14 = vmul.f32 %v6009_v51, %v6182_v58 }
 0x711   :  { %5178 = vrcp.f32 %v2554_v16  ;;  %v2555_v41 = vadd.f32 1.0, %v5169_v45  ;;  %v7074_v58 = vpack.c.bf16 %v6296_v28, %v6289_v23  ;;  %v7075_v23 = vpack.c.bf16 %v6314_v8, %v6307_v2 }
 0x712   :  { %v4204_v42 = vmul.f32 -1.442695, %v2430_v5  ;;  %v2431_v4 = vadd.f32 %v6188_v1, %v2395_v48  ;;  %4456 = vmatprep.subr.bf16.mxu1 %v2668_v27 }
 0x713   :  { %v5171_v31 = vpop.eup %5170  ;;  %5180 = vrcp.f32 %v2555_v41  ;;  %4457 = vmatpush3.bf16.msra.mxu1 %v7073_v18 }
 0x714   :  { %5182 = vpow2.f32 %v4204_v42  ;;  %v4205_v3 = vmul.f32 -1.442695, %v2431_v4  ;;  %v2321_v52 = vpop.f32.mrb[156].mxu0  ;;  %v2648_v19 = vmul.f32 %v5171_v31, %v6356_v55 }
 0x715   :  { %v5173_v63 = vpop.eup %5172  ;;  %v2323_v50 = vpop.f32.mrb[157].mxu0 }
 0x716   :  { %v5175_v20 = vpop.eup %5174  ;;  %5184 = vpow2.f32 %v4205_v3  ;;  %v2396_v29 = vadd.f32 %v2364_v46, %v2323_v50  ;;  %v2325_v15 = vpop.f32.mrb[158].mxu0  ;;  %v2649_v12 = vmul.f32 %v5173_v63, %v6363_v34 }
 0x717   :  { %v2556_v22 = vadd.f32 1.0, %v5175_v20  ;;  %v2327_v60 = vpop.f32.mrb[159].mxu0 }
 0x718   :  { %v5177_v16 = vpop.eup %5176  ;;  %v2432_v21 = vadd.f32 %v6188_v1, %v2396_v29  ;;  %v2397_v45 = vadd.f32 %v2365_v14, %v2327_v60  ;;  %v2669_v5 = vpack.c.bf16 %v2649_v12, %v2648_v19  ;;  %v7076_v60 = vpack.c.bf16 %v6332_v53, %v6325_v57  ;;  %v4926_v53 = vld [vmem:[#allocation7 + $0x180] ss:$12 sps:$4 sm:$0xff]  }
 0x719   :  { %5186 = vrcp.f32 %v2556_v22  ;;  %v2557_v55 = vadd.f32 1.0, %v5177_v16  ;;  %v7078_v57 = vpack.c.bf16 %v6368_v33, %v6361_v24  ;;  %v5352_v24 = vld [vmem:[#allocation5 + $0x20] ss:$8 sps:$4 sm:$0xff]   ;;  %v5353_v33 = vld [vmem:[#allocation5 + $0x34] ss:$8 sps:$4 sm:$0xff]  }
 0x71a   :  { %v4206_v48 = vmul.f32 -1.442695, %v2432_v21  ;;  %v2433_v27 = vadd.f32 %v6188_v1, %v2397_v45  ;;  %4458 = vmatprep.subr.bf16.mxu1 %v2669_v5  ;;  %v7077_v21 = vpack.c.bf16 %v6350_v0, %v6343_v13  ;;  %v4929_v13 = vld [vmem:[#allocation7 + $0x198] ss:$12 sps:$4 sm:$0xff]   ;;  %v4934_v0 = vld [vmem:[#allocation7 + $0x1b4] ss:$12 sps:$4 sm:$0xff]  }
 0x71b   :  { %v5179_v41 = vpop.eup %5178  ;;  %5188 = vrcp.f32 %v2557_v55  ;;  %4459 = vmatpush3.bf16.msra.mxu1 %v7074_v58  ;;  %v5351_v58 = vld [vmem:[#allocation5 + $0x24] ss:$8 sps:$4 sm:$0xff]  }
 0x71c   :  { %5190 = vpow2.f32 %v4206_v48  ;;  %v4207_v34 = vmul.f32 -1.442695, %v2433_v27  ;;  %v2650_v42 = vmul.f32 %v5179_v41, %v6374_v36  ;;  %v4928_v27 = vld [vmem:[#allocation7 + $0x184] ss:$12 sps:$4 sm:$0xff]   ;;  %v5349_v41 = vld [vmem:[#allocation5 + $0x14] ss:$8 sps:$4 sm:$0xff]  }
 0x71d   :  { %v5181_v4 = vpop.eup %5180 }
 0x71e   :  { %v5183_v31 = vpop.eup %5182  ;;  %5192 = vpow2.f32 %v4207_v34  ;;  %v2651_v18 = vmul.f32 %v5181_v4, %v6379_v17  ;;  %v5354_v34 = vld [vmem:[#allocation5 + $0x30] ss:$8 sps:$4 sm:$0xff]   ;;  %v5356_v4 = vld [vmem:[#allocation5 + $0x40] ss:$8 sps:$4 sm:$0xff]  }
 0x71f   :  { %v2558_v3 = vadd.f32 1.0, %v5183_v31  ;;  %v5357_v31 = vld [vmem:[#allocation5 + $0x54] ss:$8 sps:$4 sm:$0xff]  }
 0x720   :  { %v5185_v46 = vpop.eup %5184  ;;  %v2670_v19 = vpack.c.bf16 %v2651_v18, %v2650_v42  ;;  %v5355_v42 = vld [vmem:[#allocation5 + $0x44] ss:$8 sps:$4 sm:$0xff]   ;;  %v5358_v18 = vld [vmem:[#allocation5 + $0x50] ss:$8 sps:$4 sm:$0xff]  }
 0x721   :  { %5194 = vrcp.f32 %v2558_v3  ;;  %v2559_v1 = vadd.f32 1.0, %v5185_v46  ;;  %v5359_v3 = vld [vmem:[#allocation5 + $0x64] ss:$8 sps:$4 sm:$0xff]   ;;  %v5360_v46 = vld [vmem:[#allocation5 + $0x60] ss:$8 sps:$4 sm:$0xff]  }
 0x722   :  { %4460 = vmatprep.subr.bf16.mxu1 %v2670_v19  ;;  %v5361_v19 = vld [vmem:[#allocation5 + $0x74] ss:$8 sps:$4 sm:$0xff]  }
 0x723   :  { %v5187_v63 = vpop.eup %5186  ;;  %5196 = vrcp.f32 %v2559_v1  ;;  %4461 = vmatpush3.bf16.msra.mxu1 %v7075_v23  ;;  %v5362_v1 = vld [vmem:[#allocation5 + $0x70] ss:$8 sps:$4 sm:$0xff]  }
 0x724   :  { %v2652_v28 = vmul.f32 %v5187_v63, %v6389_v6  ;;  %v4938_v63 = vld [vmem:[#allocation7 + $0x188] ss:$12 sps:$4 sm:$0xff]   ;;  %v4937_v23 = vld [vmem:[#allocation7 + $0x1cc] ss:$12 sps:$4 sm:$0xff]  }
 0x725   :  { %v5189_v36 = vpop.eup %5188  ;;  %4686 = vmatprep.subr.bf16.mxu0 %v4938_v63 }
 0x726   :  { %v5191_v50 = vpop.eup %5190  ;;  %v2653_v20 = vmul.f32 %v5189_v36, %v6394_v61  ;;  %4687 = vmatpush3.bf16.msra.mxu0 %v4938_v63  ;;  %v4935_v36 = vld [vmem:[#allocation7 + $0x1c8] ss:$12 sps:$4 sm:$0xff]  }
 0x727   :  { %v2560_v29 = vadd.f32 1.0, %v5191_v50  ;;  %v4940_v50 = vld [vmem:[#allocation7 + $0x1b8] ss:$12 sps:$4 sm:$0xff]  }
 0x728   :  { %v5193_v17 = vpop.eup %5192  ;;  %v2671_v14 = vpack.c.bf16 %v2653_v20, %v2652_v28  ;;  %v4939_v28 = vld [vmem:[#allocation7 + $0x1a0] ss:$12 sps:$4 sm:$0xff]   ;;  %v4941_v20 = vld [vmem:[#allocation7 + $0x1d0] ss:$12 sps:$4 sm:$0xff]  }
 0x729   :  { %5198 = vrcp.f32 %v2560_v29  ;;  %v2561_v12 = vadd.f32 1.0, %v5193_v17  ;;  %4688 = vmatprep.subr.bf16.mxu0 %v4939_v28  ;;  %v2789_v29 = vsub.s32 7, %v5611_v30 }
 0x72a   :  { %4462 = vmatprep.subr.bf16.mxu1 %v2671_v14  ;;  %4689 = vmatpush3.bf16.msra.mxu0 %v4939_v28 }
 0x72b   :  { %v5195_v22 = vpop.eup %5194  ;;  %5200 = vrcp.f32 %v2561_v12  ;;  %4463 = vmatpush3.bf16.msra.mxu1 %v7076_v60  ;;  %4690 = vmatprep.subr.bf16.mxu0 %v4940_v50 }
 0x72c   :  { %v2654_v2 = vmul.f32 %v5195_v22, %v6404_v11  ;;  %v4931_v11 = vld [vmem:[#allocation7 + $0x19c] ss:$12 sps:$4 sm:$0xff]   ;;  %v5363_v22 = vld [vmem:[#allocation8] sm:$0xff] }
 0x72d   :  { %v5197_v8 = vpop.eup %5196  ;;  %v6450_v60 = vrot.slane %v5363_v22, %v2789_v29 }
 0x72e   :  { %v2655_v6 = vmul.f32 %v5197_v8, %v6409_v10  ;;  %v5348_v10 = vld [vmem:[#allocation5] ss:$8 sps:$4 sm:$0xff]   ;;  %4691 = vmatpush3.bf16.msra.mxu0 %v4940_v50 }
 0x72f   :  { %4692 = vmatprep.subr.bf16.mxu0 %v4941_v20  ;;  %v6452_v8 = vld [vmem:[#allocation8 + $0x8] sm:$0xff] }
 0x730   :  { %v2672_v16 = vpack.c.bf16 %v2655_v6, %v2654_v2 }
 0x732   :  { %4464 = vmatprep.subr.bf16.mxu1 %v2672_v16  ;;  %4693 = vmatpush3.bf16.msra.mxu0 %v4941_v20  ;;  %v7079_v16 = vsub.s32 0, %v5611_v30 }
 0x733   :  { %v5199_v61 = vpop.eup %5198  ;;  %4465 = vmatpush3.bf16.msra.mxu1 %v7077_v21 }
 0x734   :  { %v2656_v45 = vmul.f32 %v5199_v61, %v2321_v52  ;;  %v4932_v52 = vld [vmem:[#allocation7 + $0x1b0] ss:$12 sps:$4 sm:$0xff]   ;;  %v6457_v61 = vrot.slane %v6452_v8, %v7079_v16 }
 0x735   :  { %v5201_v5 = vpop.eup %5200 }
 0x736   :  { %v2657_v55 = vmul.f32 %v5201_v5, %v2325_v15  ;;  %v5350_v15 = vld [vmem:[#allocation5 + $0x10] ss:$8 sps:$4 sm:$0xff]  }
 0x738   :  { %v2673_v48 = vpack.c.bf16 %v2657_v55, %v2656_v45 }
 0x73a   :  { %4466 = vmatprep.subr.bf16.mxu1 %v2673_v48 }
 0x73b   :  { %4467 = vmatpush3.bf16.msra.mxu1 %v7078_v57 }
 0x73c   :  { %2955 = vmatprep.subr.bf16.mxu1 %v4928_v27 }
 0x73e   :  { %2707 = vmatmul.mubr.bf16.vlgmr.msra.gmra.mrb[112].mxu1 %v5348_v10 }
 0x73f   :  { %2714 = vmatprep.mubr.bf16.mxu1 %v5349_v41  ;;  %2956 = vmatpush1.bf16.msra.mxu1 %v4926_v53 }
 0x740   :  { %2957 = vmatprep.subr.bf16.mxu1 %v4931_v11 }
 0x743   :  { %2958 = vmatpush1.bf16.msra.mxu1 %v4929_v13 }
 0x744   :  { %2959 = vmatprep.subr.bf16.mxu1 %v4934_v0 }
 0x746   :  { %2715 = vmatmul.mubr.bf16.gmra.mrb[116].mxu1 %v5350_v15 }
 0x747   :  { %2722 = vmatprep.mubr.bf16.mxu1 %v5351_v58  ;;  %2960 = vmatpush1.bf16.msra.mxu1 %v4932_v52 }
 0x748   :  { %2961 = vmatprep.subr.bf16.mxu1 %v4937_v23 }
 0x74b   :  { %2962 = vmatpush1.bf16.msra.mxu1 %v4935_v36 }
 0x74e   :  { %2723 = vmatmul.mubr.bf16.gmra.mrb[120].mxu1 %v5352_v24 }
 0x74f   :  { %2730 = vmatprep.mubr.bf16.mxu1 %v5353_v33 }
 0x756   :  { %2731 = vmatmul.mubr.bf16.gmra.mrb[124].mxu1 %v5354_v34 }
 0x757   :  { %2738 = vmatprep.mubr.bf16.mxu1 %v5355_v42 }
 0x75e   :  { %2739 = vmatmul.mubr.bf16.gmra.mrb[128].mxu1 %v5356_v4 }
 0x75f   :  { %2746 = vmatprep.mubr.bf16.mxu1 %v5357_v31 }
 0x766   :  { %2747 = vmatmul.mubr.bf16.gmra.mrb[132].mxu1 %v5358_v18 }
 0x767   :  { %2754 = vmatprep.mubr.bf16.mxu1 %v5359_v3 }
 0x76e   :  { %2755 = vmatmul.mubr.bf16.gmra.mrb[136].mxu1 %v5360_v46 }
 0x76f   :  { %2762 = vmatprep.mubr.bf16.mxu1 %v5361_v19 }
 0x776   :  { %2763 = vmatmul.mubr.bf16.gmra.mrb[140].mxu1 %v5362_v1 }
 0x777   :  { %2987 = vmatprep.mubr.bf16.mxu1 %v7040_v38 }
 0x811   :  { %v4468_v17 = vpop.f32.mrb[112].mxu1 }
 0x812   :  { %v4469_v14 = vpop.f32.mrb[113].mxu1 }
 0x813   :  { %v4470_v12 = vadd.f32 %v4469_v14, %v4468_v17  ;;  %v4471_v2 = vpop.f32.mrb[114].mxu1 }
 0x814   :  { %v4472_v6 = vpop.f32.mrb[115].mxu1 }
 0x815   :  { %v2771_v21 = vadd.f32 %v4470_v12, %v6133_v56  ;;  %v4473_v45 = vadd.f32 %v4472_v6, %v4471_v2 }
 0x817   :  { %v2791_v5 = vmul.f32 %v6450_v60, %v2771_v21  ;;  %v2772_v55 = vadd.f32 %v4473_v45, %v6137_v39 }
 0x819   :  { %v2811_v48 = vadd.f32 %v6457_v61, %v2791_v5  ;;  %v2792_v27 = vmul.f32 %v6450_v60, %v2772_v55  ;;  %v4474_v57 = vpop.f32.mrb[116].mxu1 }
 0x81a   :  { %v4475_v53 = vpop.f32.mrb[117].mxu1 }
 0x81b   :  { %v2812_v11 = vadd.f32 %v6457_v61, %v2792_v27  ;;  %v4476_v10 = vadd.f32 %v4475_v53, %v4474_v57  ;;  %v4477_v41 = vpop.f32.mrb[118].mxu1  ;;  %v2827_v0 = vmax.f32 %v2811_v48, 0.0 }
 0x81c   :  { %v4478_v13 = vpop.f32.mrb[119].mxu1 }
 0x81d   :  { %v2828_v52 = vmax.f32 %v2812_v11, 0.0  ;;  %v2773_v56 = vadd.f32 %v6131_v25, %v4476_v10  ;;  %v4479_v15 = vadd.f32 %v4478_v13, %v4477_v41 }
 0x81f   :  { %v2859_v58 = vpack.c.bf16 %v2828_v52, %v2827_v0  ;;  %v2793_v24 = vmul.f32 %v6450_v60, %v2773_v56  ;;  %v2774_v39 = vadd.f32 %v6135_v62, %v4479_v15 }
 0x821   :  { %v2813_v33 = vadd.f32 %v6457_v61, %v2793_v24  ;;  %v2794_v34 = vmul.f32 %v6450_v60, %v2774_v39  ;;  %v4480_v42 = vpop.f32.mrb[120].mxu1  ;;  %4220 = vmatmul.mubr.msk.bf16.vlgmr.msra.gmra.mrb[144].mxu1 %vm506_vm0, %v2859_v58  ;;  %4694 = vmatprep.mubr.msk.bf16.mxu0 %vm506_vm0, %v2859_v58 }
 0x822   :  { %v4481_v4 = vpop.f32.mrb[121].mxu1  ;;  %2997 = vmatprep.mubr.bf16.mxu1 %v7040_v38 }
 0x823   :  { %v2814_v25 = vadd.f32 %v6457_v61, %v2794_v34  ;;  %v4482_v31 = vadd.f32 %v4481_v4, %v4480_v42  ;;  %v4483_v18 = vpop.f32.mrb[122].mxu1  ;;  %v2829_v46 = vmax.f32 %v2813_v33, 0.0 }
 0x824   :  { %v4484_v3 = vpop.f32.mrb[123].mxu1 }
 0x825   :  { %v2830_v19 = vmax.f32 %v2814_v25, 0.0  ;;  %v2775_v62 = vadd.f32 %v4482_v31, %v6141_v37  ;;  %v4485_v1 = vadd.f32 %v4484_v3, %v4483_v18  ;;  %v7080_v3 = vld [vmem:[#allocation41_spill] sm:$0xff] }
 0x827   :  { %v2795_v63 = vmul.f32 %v6450_v60, %v2775_v62  ;;  %v2776_v23 = vadd.f32 %v4485_v1, %v6145_v40  ;;  %v2860_v28 = vpack.c.bf16 %v2830_v19, %v2829_v46 }
 0x829   :  { %v2815_v36 = vadd.f32 %v6457_v61, %v2795_v63  ;;  %v2796_v50 = vmul.f32 %v6450_v60, %v2776_v23  ;;  %v4486_v20 = vpop.f32.mrb[124].mxu1  ;;  %4221 = vmatmul.mubr.msk.bf16.gmra.mrb[148].mxu1 %vm506_vm0, %v2860_v28  ;;  %4695 = vmatmul.mubr.msk.bf16.vlgmr.msra.gmra.mrb[160].mxu0 %vm506_vm0, %v2860_v28 }
 0x82a   :  { %v4487_v29 = vpop.f32.mrb[125].mxu1  ;;  %3007 = vmatprep.mubr.bf16.mxu1 %v7040_v38 }
 0x82b   :  { %v2816_v37 = vadd.f32 %v6457_v61, %v2796_v50  ;;  %v4488_v17 = vadd.f32 %v4487_v29, %v4486_v20  ;;  %v4489_v14 = vpop.f32.mrb[126].mxu1  ;;  %v2831_v22 = vmax.f32 %v2815_v36, 0.0 }
 0x82c   :  { %v4490_v12 = vpop.f32.mrb[127].mxu1 }
 0x82d   :  { %v2832_v40 = vmax.f32 %v2816_v37, 0.0  ;;  %v2777_v2 = vadd.f32 %v6139_v47, %v4488_v17  ;;  %v4491_v6 = vadd.f32 %v4490_v12, %v4489_v14  ;;  %v7081_v37 = vld [vmem:[#allocation43_spill] sm:$0xff] }
 0x82f   :  { %v2797_v16 = vmul.f32 %v6450_v60, %v2777_v2  ;;  %v2778_v21 = vadd.f32 %v6143_v9, %v4491_v6  ;;  %v2861_v45 = vpack.c.bf16 %v2832_v40, %v2831_v22  ;;  %v7082_v22 = vld [vmem:[#allocation45_spill] sm:$0xff] }
 0x831   :  { %v2817_v5 = vadd.f32 %v6457_v61, %v2797_v16  ;;  %v2798_v55 = vmul.f32 %v6450_v60, %v2778_v21  ;;  %v4492_v48 = vpop.f32.mrb[128].mxu1  ;;  %4222 = vmatmul.mubr.msk.bf16.gmra.mrb[152].mxu1 %vm506_vm0, %v2861_v45  ;;  %4698 = vmatprep.mubr.msk.bf16.mxu0 %vm506_vm0, %v2861_v45 }
 0x832   :  { %v4493_v27 = vpop.f32.mrb[129].mxu1  ;;  %3017 = vmatprep.mubr.bf16.mxu1 %v7040_v38 }
 0x833   :  { %v2818_v47 = vadd.f32 %v6457_v61, %v2798_v55  ;;  %v4494_v57 = vadd.f32 %v4493_v27, %v4492_v48  ;;  %v4495_v53 = vpop.f32.mrb[130].mxu1  ;;  %v2833_v10 = vmax.f32 %v2817_v5, 0.0 }
 0x834   :  { %v4496_v11 = vpop.f32.mrb[131].mxu1 }
 0x835   :  { %v2834_v9 = vmax.f32 %v2818_v47, 0.0  ;;  %v2779_v41 = vadd.f32 %v4494_v57, %v6149_v44  ;;  %v4497_v13 = vadd.f32 %v4496_v11, %v4495_v53  ;;  %v7083_v53 = vld [vmem:[#allocation42_spill] sm:$0xff] }
 0x837   :  { %v2799_v0 = vmul.f32 %v6450_v60, %v2779_v41  ;;  %v2780_v52 = vadd.f32 %v4497_v13, %v6153_v26  ;;  %v2862_v56 = vpack.c.bf16 %v2834_v9, %v2833_v10  ;;  %v7084_v41 = vld [vmem:[#allocation44_spill] sm:$0xff] }
 0x839   :  { %v2819_v15 = vadd.f32 %v6457_v61, %v2799_v0  ;;  %v2800_v58 = vmul.f32 %v6450_v60, %v2780_v52  ;;  %v4498_v24 = vpop.f32.mrb[132].mxu1  ;;  %4223 = vmatmul.mubr.msk.bf16.gmra.mrb[156].mxu1 %vm506_vm0, %v2862_v56  ;;  %4699 = vmatmul.mubr.msk.bf16.gmra.mrb[164].mxu0 %vm506_vm0, %v2862_v56 }
 0x83a   :  { %v4499_v39 = vpop.f32.mrb[133].mxu1  ;;  %3027 = vmatprep.mubr.bf16.mxu1 %v7040_v38 }
 0x83b   :  { %v2820_v44 = vadd.f32 %v6457_v61, %v2800_v58  ;;  %v4500_v33 = vadd.f32 %v4499_v39, %v4498_v24  ;;  %v4501_v34 = vpop.f32.mrb[134].mxu1  ;;  %v2835_v4 = vmax.f32 %v2819_v15, 0.0 }
 0x83c   :  { %v4502_v42 = vpop.f32.mrb[135].mxu1 }
 0x83d   :  { %v2836_v26 = vmax.f32 %v2820_v44, 0.0  ;;  %v2781_v25 = vadd.f32 %v6147_v7, %v4500_v33  ;;  %v4503_v31 = vadd.f32 %v4502_v42, %v4501_v34  ;;  %v5364_v44 = vld [vmem:[#allocation5 + $0x4] ss:$8 sps:$4 sm:$0xff]  }
 0x83f   :  { %v2801_v18 = vmul.f32 %v6450_v60, %v2781_v25  ;;  %v2782_v46 = vadd.f32 %v7080_v3, %v4503_v31  ;;  %v2863_v19 = vpack.c.bf16 %v2836_v26, %v2835_v4 }
 0x841   :  { %v2821_v62 = vadd.f32 %v6457_v61, %v2801_v18  ;;  %v2802_v1 = vmul.f32 %v6450_v60, %v2782_v46  ;;  %v4504_v63 = vpop.f32.mrb[136].mxu1  ;;  %4224 = vmatmul.mubr.msk.bf16.gmra.mrb[160].mxu1 %vm506_vm0, %v2863_v19  ;;  %4702 = vmatprep.mubr.msk.bf16.mxu0 %vm506_vm0, %v2863_v19 }
 0x842   :  { %v4505_v23 = vpop.f32.mrb[137].mxu1  ;;  %3037 = vmatprep.mubr.bf16.mxu1 %v7040_v38 }
 0x843   :  { %v2822_v7 = vadd.f32 %v6457_v61, %v2802_v1  ;;  %v4506_v28 = vadd.f32 %v4505_v23, %v4504_v63  ;;  %v4507_v36 = vpop.f32.mrb[138].mxu1  ;;  %v2837_v20 = vmax.f32 %v2821_v62, 0.0 }
 0x844   :  { %v4508_v50 = vpop.f32.mrb[139].mxu1 }
 0x845   :  { %v2838_v29 = vmax.f32 %v2822_v7, 0.0  ;;  %v2783_v17 = vadd.f32 %v4506_v28, %v7081_v37  ;;  %v4509_v14 = vadd.f32 %v4508_v50, %v4507_v36 }
 0x847   :  { %v2803_v12 = vmul.f32 %v6450_v60, %v2783_v17  ;;  %v2784_v40 = vadd.f32 %v4509_v14, %v7082_v22  ;;  %v2864_v2 = vpack.c.bf16 %v2838_v29, %v2837_v20 }
 0x849   :  { %v2823_v6 = vadd.f32 %v6457_v61, %v2803_v12  ;;  %v2804_v16 = vmul.f32 %v6450_v60, %v2784_v40  ;;  %v4510_v21 = vpop.f32.mrb[140].mxu1  ;;  %4225 = vmatmul.mubr.msk.bf16.gmra.mrb[164].mxu1 %vm506_vm0, %v2864_v2  ;;  %4703 = vmatmul.mubr.msk.bf16.gmra.mrb[168].mxu0 %vm506_vm0, %v2864_v2 }
 0x84a   :  { %v4511_v45 = vpop.f32.mrb[141].mxu1  ;;  %3047 = vmatprep.mubr.bf16.mxu1 %v7040_v38 }
 0x84b   :  { %v2824_v5 = vadd.f32 %v6457_v61, %v2804_v16  ;;  %v4512_v55 = vadd.f32 %v4511_v45, %v4510_v21  ;;  %v4513_v48 = vpop.f32.mrb[142].mxu1  ;;  %v2839_v47 = vmax.f32 %v2823_v6, 0.0 }
 0x84c   :  { %v4514_v27 = vpop.f32.mrb[143].mxu1 }
 0x84d   :  { %v2840_v57 = vmax.f32 %v2824_v5, 0.0  ;;  %v2785_v11 = vadd.f32 %v7083_v53, %v4512_v55  ;;  %v4515_v10 = vadd.f32 %v4514_v27, %v4513_v48 }
 0x84f   :  { %v2805_v9 = vmul.f32 %v6450_v60, %v2785_v11  ;;  %v2786_v13 = vadd.f32 %v7084_v41, %v4515_v10  ;;  %v2865_v0 = vpack.c.bf16 %v2840_v57, %v2839_v47 }
 0x851   :  { %v2825_v52 = vadd.f32 %v6457_v61, %v2805_v9  ;;  %v2806_v56 = vmul.f32 %v6450_v60, %v2786_v13  ;;  %4226 = vmatmul.mubr.msk.bf16.gmra.mrb[168].mxu1 %vm506_vm0, %v2865_v0  ;;  %4706 = vmatprep.mubr.msk.bf16.mxu0 %vm506_vm0, %v2865_v0 }
 0x852   :  { %3057 = vmatprep.mubr.bf16.mxu1 %v7040_v38 }
 0x853   :  { %v2826_v15 = vadd.f32 %v6457_v61, %v2806_v56  ;;  %v2841_v58 = vmax.f32 %v2825_v52, 0.0 }
 0x855   :  { %v2842_v24 = vmax.f32 %v2826_v15, 0.0 }
 0x857   :  { %v2866_v39 = vpack.c.bf16 %v2842_v24, %v2841_v58 }
 0x859   :  { %4227 = vmatmul.mubr.msk.bf16.gmra.mrb[172].mxu1 %vm506_vm0, %v2866_v39  ;;  %4707 = vmatmul.mubr.msk.bf16.gmra.mrb[172].mxu0 %vm506_vm0, %v2866_v39 }
 0x85a   :  { %3213 = vmatprep.mubr.bf16.mxu1 %v7040_v38  ;;  %3750 = vmatprep.mubr.bf16.mxu0 %v5364_v44 }
 0x8f4   :  { %v2989_v60 = vpop.f32.mrb[144].mxu1 }
 0x8f5   :  { %v2991_v33 = vpop.f32.mrb[145].mxu1 }
 0x8f6   :  { %v2993_v34 = vpop.f32.mrb[146].mxu1 }
 0x8f7   :  { %v3165_v42 = vpack.c.bf16 %v2993_v34, %v2989_v60  ;;  %v2995_v4 = vpop.f32.mrb[147].mxu1 }
 0x8f8   :  { %v3166_v26 = vpack.c.bf16 %v2995_v4, %v2991_v33 }
 0x8fa   :  { %3181 = vmatprep.subr.bf16.mxu1 %v3166_v26 }
 0x8fb   :  { %3182 = vmatpush1.bf16.msra.mxu1 %v3165_v42 }
 0x8fc   :  { %v2999_v61 = vpop.f32.mrb[148].mxu1  ;;  %v6531_v25 = vpop.f32.mrb[160].mxu0 }
 0x8fd   :  { %v3001_v31 = vpop.f32.mrb[149].mxu1  ;;  %v6533_v18 = vpop.f32.mrb[161].mxu0 }
 0x8fe   :  { %v3003_v3 = vpop.f32.mrb[150].mxu1  ;;  %v6535_v46 = vpop.f32.mrb[162].mxu0 }
 0x8ff   :  { %v3167_v19 = vpack.c.bf16 %v3003_v3, %v2999_v61  ;;  %v3005_v62 = vpop.f32.mrb[151].mxu1  ;;  %v6537_v1 = vpop.f32.mrb[163].mxu0 }
 0x900   :  { %v3168_v63 = vpack.c.bf16 %v3005_v62, %v3001_v31  ;;  %v5365_v62 = vld [vmem:[#allocation2 + $0x40] sm:$0xff]  }
 0x902   :  { %3183 = vmatprep.subr.bf16.mxu1 %v3168_v63  ;;  %v5366_v63 = vld [vmem:[#allocation2 + $0x48] sm:$0xff]  }
 0x903   :  { %3184 = vmatpush1.bf16.msra.mxu1 %v3167_v19 }
 0x904   :  { %v3009_v23 = vpop.f32.mrb[152].mxu1 }
 0x905   :  { %v3011_v7 = vpop.f32.mrb[153].mxu1 }
 0x906   :  { %v3013_v28 = vpop.f32.mrb[154].mxu1 }
 0x907   :  { %v3169_v36 = vpack.c.bf16 %v3013_v28, %v3009_v23  ;;  %v3015_v50 = vpop.f32.mrb[155].mxu1  ;;  %v5367_v23 = vld [vmem:[#allocation2 + $0x50] sm:$0xff]   ;;  %v5369_v28 = vld [vmem:[#allocation2 + $0x60] sm:$0xff]  }
 0x908   :  { %v3170_v20 = vpack.c.bf16 %v3015_v50, %v3011_v7  ;;  %v5368_v7 = vld [vmem:[#allocation2 + $0x58] sm:$0xff]   ;;  %v5371_v50 = vld [vmem:[#allocation2 + $0x70] sm:$0xff]  }
 0x90a   :  { %3185 = vmatprep.subr.bf16.mxu1 %v3170_v20  ;;  %v5372_v20 = vld [vmem:[#allocation2 + $0x78] sm:$0xff]  }
 0x90b   :  { %3186 = vmatpush1.bf16.msra.mxu1 %v3169_v36  ;;  %v5370_v36 = vld [vmem:[#allocation2 + $0x68] sm:$0xff]  }
 0x90c   :  { %v3019_v29 = vpop.f32.mrb[156].mxu1  ;;  %v6539_v37 = vpop.f32.mrb[164].mxu0 }
 0x90d   :  { %v3021_v17 = vpop.f32.mrb[157].mxu1  ;;  %v6541_v14 = vpop.f32.mrb[165].mxu0 }
 0x90e   :  { %v3023_v12 = vpop.f32.mrb[158].mxu1  ;;  %v6543_v22 = vpop.f32.mrb[166].mxu0 }
 0x90f   :  { %v3171_v40 = vpack.c.bf16 %v3023_v12, %v3019_v29  ;;  %v3025_v2 = vpop.f32.mrb[159].mxu1  ;;  %v6545_v6 = vpop.f32.mrb[167].mxu0  ;;  %v5373_v29 = vld [vmem:[#allocation2 + $0x80] sm:$0xff]   ;;  %v5375_v12 = vld [vmem:[#allocation2 + $0x90] sm:$0xff]  }
 0x910   :  { %v3172_v16 = vpack.c.bf16 %v3025_v2, %v3021_v17  ;;  %v5374_v17 = vld [vmem:[#allocation2 + $0x88] sm:$0xff]   ;;  %v5377_v2 = vld [vmem:[#allocation2 + $0xa0] sm:$0xff]  }
 0x912   :  { %3187 = vmatprep.subr.bf16.mxu1 %v3172_v16  ;;  %v5378_v16 = vld [vmem:[#allocation2 + $0xa8] sm:$0xff]  }
 0x913   :  { %3188 = vmatpush1.bf16.msra.mxu1 %v3171_v40  ;;  %v5376_v40 = vld [vmem:[#allocation2 + $0x98] sm:$0xff]  }
 0x914   :  { %v3029_v21 = vpop.f32.mrb[160].mxu1 }
 0x915   :  { %v3031_v45 = vpop.f32.mrb[161].mxu1 }
 0x916   :  { %v3033_v5 = vpop.f32.mrb[162].mxu1 }
 0x917   :  { %v3173_v55 = vpack.c.bf16 %v3033_v5, %v3029_v21  ;;  %v3035_v48 = vpop.f32.mrb[163].mxu1  ;;  %v5379_v21 = vld [vmem:[#allocation2 + $0xb0] sm:$0xff]   ;;  %v7089_v5 = vsub.s32 1, %v5611_v30 }
 0x918   :  { %v3174_v27 = vpack.c.bf16 %v3035_v48, %v3031_v45  ;;  %v5380_v45 = vld [vmem:[#allocation2 + $0xb8] sm:$0xff]   ;;  %v7090_v48 = vsub.s32 2, %v5611_v30 }
 0x91a   :  { %3189 = vmatprep.subr.bf16.mxu1 %v3174_v27  ;;  %v6586_v27 = vrot.slane %v6452_v8, %v7090_v48 }
 0x91b   :  { %3190 = vmatpush1.bf16.msra.mxu1 %v3173_v55  ;;  %v6581_v55 = vrot.slane %v6452_v8, %v7089_v5 }
 0x91c   :  { %v3039_v47 = vpop.f32.mrb[164].mxu1  ;;  %v6547_v57 = vpop.f32.mrb[168].mxu0 }
 0x91d   :  { %v3041_v53 = vpop.f32.mrb[165].mxu1  ;;  %v6549_v11 = vpop.f32.mrb[169].mxu0 }
 0x91e   :  { %v3043_v10 = vpop.f32.mrb[166].mxu1  ;;  %v6551_v9 = vpop.f32.mrb[170].mxu0 }
 0x91f   :  { %v3175_v41 = vpack.c.bf16 %v3043_v10, %v3039_v47  ;;  %v3045_v13 = vpop.f32.mrb[167].mxu1  ;;  %v6553_v0 = vpop.f32.mrb[171].mxu0 }
 0x920   :  { %v3176_v52 = vpack.c.bf16 %v3045_v13, %v3041_v53  ;;  %v7091_v53 = vld [vmem:[#allocation15_spill] sm:$0xff] }
 0x921   :  { %v3378_v10 = vmul.f32 %v7091_v53, %v6581_v55 }
 0x922   :  { %3191 = vmatprep.subr.bf16.mxu1 %v3176_v52  ;;  %v7092_v52 = vld [vmem:[#allocation16_spill] sm:$0xff] }
 0x923   :  { %3192 = vmatpush1.bf16.msra.mxu1 %v3175_v41 }
 0x924   :  { %v3049_v56 = vpop.f32.mrb[168].mxu1 }
 0x925   :  { %v3051_v15 = vpop.f32.mrb[169].mxu1 }
 0x926   :  { %v3053_v58 = vpop.f32.mrb[170].mxu1 }
 0x927   :  { %v3177_v24 = vpack.c.bf16 %v3053_v58, %v3049_v56  ;;  %v3055_v39 = vpop.f32.mrb[171].mxu1  ;;  %v3379_v56 = vmul.f32 %v7092_v52, %v6581_v55 }
 0x928   :  { %v3178_v44 = vpack.c.bf16 %v3055_v39, %v3051_v15 }
 0x92a   :  { %3193 = vmatprep.subr.bf16.mxu1 %v3178_v44 }
 0x92b   :  { %3194 = vmatpush1.bf16.msra.mxu1 %v3177_v24 }
 0x92c   :  { %v3059_v60 = vpop.f32.mrb[172].mxu1  ;;  %v6555_v33 = vpop.f32.mrb[172].mxu0 }
 0x92d   :  { %7085 = vst [vmem:[#allocation40_spill] sm:$0xff] %v6555_v33  ;;  %v3061_v34 = vpop.f32.mrb[173].mxu1  ;;  %v6557_v42 = vpop.f32.mrb[173].mxu0 }
 0x92e   :  { %7086 = vst [vmem:[#allocation41_spill] sm:$0xff] %v6557_v42  ;;  %v3063_v4 = vpop.f32.mrb[174].mxu1  ;;  %v6559_v26 = vpop.f32.mrb[174].mxu0 }
 0x92f   :  { %7087 = vst [vmem:[#allocation43_spill] sm:$0xff] %v6559_v26  ;;  %v3179_v61 = vpack.c.bf16 %v3063_v4, %v3059_v60  ;;  %v3065_v31 = vpop.f32.mrb[175].mxu1  ;;  %v6561_v3 = vpop.f32.mrb[175].mxu0 }
 0x930   :  { %7088 = vst [vmem:[#allocation45_spill] sm:$0xff] %v6561_v3  ;;  %v3180_v19 = vpack.c.bf16 %v3065_v31, %v3061_v34  ;;  %v7093_v34 = vld [vmem:[#allocation17_spill] sm:$0xff] }
 0x931   :  { %v3380_v4 = vmul.f32 %v7093_v34, %v6581_v55 }
 0x932   :  { %3195 = vmatprep.subr.bf16.mxu1 %v3180_v19 }
 0x933   :  { %3196 = vmatpush1.bf16.msra.mxu1 %v3179_v61 }
 0x936   :  { %3214 = vmatmul.mubr.bf16.vlgmr.msra.gmra.mrb[176].mxu1 %v5365_v62  ;;  %v7094_v62 = vld [vmem:[#allocation18_spill] sm:$0xff] }
 0x937   :  { %3223 = vmatprep.mubr.bf16.mxu1 %v7040_v38 }
 0x93e   :  { %3224 = vmatmul.mubr.bf16.gmra.mrb[180].mxu1 %v5366_v63  ;;  %v3381_v63 = vmul.f32 %v7094_v62, %v6581_v55 }
 0x93f   :  { %3233 = vmatprep.mubr.bf16.mxu1 %v7040_v38 }
 0x946   :  { %3234 = vmatmul.mubr.bf16.gmra.mrb[184].mxu1 %v5367_v23 }
 0x947   :  { %3243 = vmatprep.mubr.bf16.mxu1 %v7040_v38 }
 0x94e   :  { %3244 = vmatmul.mubr.bf16.gmra.mrb[188].mxu1 %v5368_v7 }
 0x94f   :  { %3253 = vmatprep.mubr.bf16.mxu1 %v7040_v38 }
 0x956   :  { %3254 = vmatmul.mubr.bf16.gmra.mrb[192].mxu1 %v5369_v28 }
 0x957   :  { %3263 = vmatprep.mubr.bf16.mxu1 %v7040_v38 }
 0x95e   :  { %3264 = vmatmul.mubr.bf16.gmra.mrb[196].mxu1 %v5370_v36 }
 0x95f   :  { %3273 = vmatprep.mubr.bf16.mxu1 %v7040_v38 }
 0x966   :  { %3274 = vmatmul.mubr.bf16.gmra.mrb[200].mxu1 %v5371_v50 }
 0x967   :  { %3283 = vmatprep.mubr.bf16.mxu1 %v7040_v38 }
 0x96e   :  { %3284 = vmatmul.mubr.bf16.gmra.mrb[204].mxu1 %v5372_v20 }
 0x96f   :  { %3293 = vmatprep.mubr.bf16.mxu1 %v7040_v38 }
 0x976   :  { %3294 = vmatmul.mubr.bf16.gmra.mrb[208].mxu1 %v5373_v29 }
 0x977   :  { %3303 = vmatprep.mubr.bf16.mxu1 %v7040_v38 }
 0x97e   :  { %3304 = vmatmul.mubr.bf16.gmra.mrb[212].mxu1 %v5374_v17  ;;  %v7095_v17 = vld [vmem:[#allocation19_spill] sm:$0xff] }
 0x97f   :  { %3313 = vmatprep.mubr.bf16.mxu1 %v7040_v38 }
 0x986   :  { %3314 = vmatmul.mubr.bf16.gmra.mrb[216].mxu1 %v5375_v12  ;;  %v3382_v12 = vmul.f32 %v7095_v17, %v6581_v55 }
 0x987   :  { %3323 = vmatprep.mubr.bf16.mxu1 %v7040_v38 }
 0x98e   :  { %3324 = vmatmul.mubr.bf16.gmra.mrb[220].mxu1 %v5376_v40 }
 0x98f   :  { %3333 = vmatprep.mubr.bf16.mxu1 %v7040_v38 }
 0x996   :  { %3334 = vmatmul.mubr.bf16.gmra.mrb[224].mxu1 %v5377_v2 }
 0x997   :  { %3343 = vmatprep.mubr.bf16.mxu1 %v7040_v38 }
 0x99e   :  { %3344 = vmatmul.mubr.bf16.gmra.mrb[228].mxu1 %v5378_v16 }
 0x99f   :  { %3353 = vmatprep.mubr.bf16.mxu1 %v7040_v38 }
 0x9a6   :  { %3354 = vmatmul.mubr.bf16.gmra.mrb[232].mxu1 %v5379_v21 }
 0x9a7   :  { %3363 = vmatprep.mubr.bf16.mxu1 %v7040_v38 }
 0x9ae   :  { %3364 = vmatmul.mubr.bf16.gmra.mrb[236].mxu1 %v5380_v45  ;;  %v7096_v45 = vld [vmem:[#allocation20_spill] sm:$0xff] }
 0x9af   :  { %v3383_v5 = vmul.f32 %v7096_v45, %v6581_v55 }
 0xa09   :  { %v6588_v47 = vpop.f32.mrb[176].mxu1 }
 0xa0a   :  { %v3217_v41 = vpop.f32.mrb[177].mxu1 }
 0xa0b   :  { %v3410_v13 = vadd.f32 %v3378_v10, %v3217_v41  ;;  %v6592_v38 = vpop.f32.mrb[178].mxu1 }
 0xa0c   :  { %v3221_v15 = vpop.f32.mrb[179].mxu1 }
 0xa0d   :  { %v3446_v58 = vadd.f32 %v6586_v27, %v3410_v13  ;;  %v3411_v24 = vadd.f32 %v3379_v56, %v3221_v15 }
 0xa0f   :  { %v4236_v39 = vmul.f32 -1.442695, %v3446_v58  ;;  %v3447_v8 = vadd.f32 %v6586_v27, %v3411_v24 }
 0xa11   :  { %5202 = vpow2.f32 %v4236_v39  ;;  %v4237_v44 = vmul.f32 -1.442695, %v3447_v8  ;;  %v6598_v60 = vpop.f32.mrb[180].mxu1  ;;  %v7097_v39 = vld [vmem:[#allocation21_spill] sm:$0xff] }
 0xa12   :  { %v3227_v61 = vpop.f32.mrb[181].mxu1  ;;  %v3384_v8 = vmul.f32 %v7097_v39, %v6581_v55 }
 0xa13   :  { %5204 = vpow2.f32 %v4237_v44  ;;  %v3412_v31 = vadd.f32 %v3380_v4, %v3227_v61  ;;  %v6602_v19 = vpop.f32.mrb[182].mxu1 }
 0xa14   :  { %v3231_v23 = vpop.f32.mrb[183].mxu1 }
 0xa15   :  { %v3448_v7 = vadd.f32 %v6586_v27, %v3412_v31  ;;  %v3413_v28 = vadd.f32 %v3381_v63, %v3231_v23  ;;  %v7098_v31 = vld [vmem:[#allocation22_spill] sm:$0xff] }
 0xa16   :  { %v3385_v62 = vmul.f32 %v7098_v31, %v6581_v55 }
 0xa17   :  { %v4238_v36 = vmul.f32 -1.442695, %v3448_v7  ;;  %v3449_v50 = vadd.f32 %v6586_v27, %v3413_v28 }
 0xa19   :  { %5206 = vpow2.f32 %v4238_v36  ;;  %v4239_v20 = vmul.f32 -1.442695, %v3449_v50  ;;  %v6608_v29 = vpop.f32.mrb[184].mxu1 }
 0xa1a   :  { %v3237_v40 = vpop.f32.mrb[185].mxu1 }
 0xa1b   :  { %v5203_v2 = vpop.eup %5202  ;;  %5208 = vpow2.f32 %v4239_v20  ;;  %v3414_v16 = vadd.f32 %v3382_v12, %v3237_v40  ;;  %v6612_v21 = vpop.f32.mrb[186].mxu1 }
 0xa1c   :  { %v3574_v48 = vadd.f32 1.0, %v5203_v2  ;;  %v3241_v53 = vpop.f32.mrb[187].mxu1 }
 0xa1d   :  { %v5205_v10 = vpop.eup %5204  ;;  %v3450_v41 = vadd.f32 %v6586_v27, %v3414_v16  ;;  %v3415_v13 = vadd.f32 %v3383_v5, %v3241_v53  ;;  %v7099_v16 = vld [vmem:[#allocation23_spill] sm:$0xff] }
 0xa1e   :  { %5210 = vrcp.f32 %v3574_v48  ;;  %v3575_v52 = vadd.f32 1.0, %v5205_v10  ;;  %v3386_v45 = vmul.f32 %v7099_v16, %v6581_v55  ;;  %v7102_v16 = vld [vmem:[#allocation26_spill] sm:$0xff] }
 0xa1f   :  { %v4240_v56 = vmul.f32 -1.442695, %v3450_v41  ;;  %v3451_v15 = vadd.f32 %v6586_v27, %v3415_v13 }
 0xa20   :  { %5212 = vrcp.f32 %v3575_v52  ;;  %v7100_v52 = vld [vmem:[#allocation24_spill] sm:$0xff] }
 0xa21   :  { %5214 = vpow2.f32 %v4240_v56  ;;  %v4241_v58 = vmul.f32 -1.442695, %v3451_v15  ;;  %v6618_v24 = vpop.f32.mrb[188].mxu1  ;;  %v3387_v56 = vmul.f32 %v7100_v52, %v6581_v55 }
 0xa22   :  { %v3247_v44 = vpop.f32.mrb[189].mxu1 }
 0xa23   :  { %v5207_v34 = vpop.eup %5206  ;;  %5216 = vpow2.f32 %v4241_v58  ;;  %v3416_v4 = vadd.f32 %v3384_v8, %v3247_v44  ;;  %v6622_v61 = vpop.f32.mrb[190].mxu1 }
 0xa24   :  { %v3576_v63 = vadd.f32 1.0, %v5207_v34  ;;  %v3251_v23 = vpop.f32.mrb[191].mxu1 }
 0xa25   :  { %v5209_v7 = vpop.eup %5208  ;;  %v3452_v28 = vadd.f32 %v6586_v27, %v3416_v4  ;;  %v3417_v36 = vadd.f32 %v3385_v62, %v3251_v23 }
 0xa26   :  { %5218 = vrcp.f32 %v3576_v63  ;;  %v3577_v50 = vadd.f32 1.0, %v5209_v7  ;;  %v7101_v7 = vld [vmem:[#allocation25_spill] sm:$0xff] }
 0xa27   :  { %v4242_v20 = vmul.f32 -1.442695, %v3452_v28  ;;  %v3453_v17 = vadd.f32 %v6586_v27, %v3417_v36  ;;  %v3388_v28 = vmul.f32 %v7101_v7, %v6581_v55 }
 0xa28   :  { %v5211_v12 = vpop.eup %5210  ;;  %5220 = vrcp.f32 %v3577_v50 }
 0xa29   :  { %5222 = vpow2.f32 %v4242_v20  ;;  %v4243_v40 = vmul.f32 -1.442695, %v3453_v17  ;;  %v6628_v2 = vpop.f32.mrb[192].mxu1  ;;  %v6633_v5 = vmul.f32 %v5211_v12, %v6588_v47 }
 0xa2a   :  { %v5213_v48 = vpop.eup %5212  ;;  %v3257_v53 = vpop.f32.mrb[193].mxu1 }
 0xa2b   :  { %v5215_v10 = vpop.eup %5214  ;;  %5224 = vpow2.f32 %v4243_v40  ;;  %v3418_v41 = vadd.f32 %v3386_v45, %v3257_v53  ;;  %v6635_v13 = vpop.f32.mrb[194].mxu1  ;;  %v6640_v15 = vmul.f32 %v5213_v48, %v6592_v38  ;;  %v3389_v45 = vmul.f32 %v7102_v16, %v6581_v55 }
 0xa2c   :  { %v3578_v58 = vadd.f32 1.0, %v5215_v10  ;;  %v3261_v39 = vpop.f32.mrb[195].mxu1 }
 0xa2d   :  { %v5217_v8 = vpop.eup %5216  ;;  %v3454_v44 = vadd.f32 %v6586_v27, %v3418_v41  ;;  %v3419_v47 = vadd.f32 %v3387_v56, %v3261_v39 }
 0xa2e   :  { %5226 = vrcp.f32 %v3578_v58  ;;  %v3579_v4 = vadd.f32 1.0, %v5217_v8 }
 0xa2f   :  { %v4244_v31 = vmul.f32 -1.442695, %v3454_v44  ;;  %v3455_v62 = vadd.f32 %v6586_v27, %v3419_v47 }
 0xa30   :  { %v5219_v63 = vpop.eup %5218  ;;  %5228 = vrcp.f32 %v3579_v4  ;;  %v7103_v4 = vld [vmem:[#allocation27_spill] sm:$0xff] }
 0xa31   :  { %5230 = vpow2.f32 %v4244_v31  ;;  %v4245_v23 = vmul.f32 -1.442695, %v3455_v62  ;;  %v6646_v38 = vpop.f32.mrb[196].mxu1  ;;  %v6651_v36 = vmul.f32 %v5219_v63, %v6598_v60  ;;  %v3390_v31 = vmul.f32 %v7103_v4, %v6581_v55 }
 0xa32   :  { %v5221_v50 = vpop.eup %5220  ;;  %v3267_v20 = vpop.f32.mrb[197].mxu1 }
 0xa33   :  { %v5223_v17 = vpop.eup %5222  ;;  %5232 = vpow2.f32 %v4245_v23  ;;  %v3420_v12 = vadd.f32 %v3388_v28, %v3267_v20  ;;  %v6653_v40 = vpop.f32.mrb[198].mxu1  ;;  %v6658_v48 = vmul.f32 %v5221_v50, %v6602_v19  ;;  %v7104_v20 = vld [vmem:[#allocation28_spill] sm:$0xff] }
 0xa34   :  { %v3580_v53 = vadd.f32 1.0, %v5223_v17  ;;  %v3271_v10 = vpop.f32.mrb[199].mxu1  ;;  %v3391_v17 = vmul.f32 %v7104_v20, %v6581_v55  ;;  %v7106_v20 = vld [vmem:[#allocation30_spill] sm:$0xff] }
 0xa35   :  { %v5225_v41 = vpop.eup %5224  ;;  %v3456_v52 = vadd.f32 %v6586_v27, %v3420_v12  ;;  %v3421_v60 = vadd.f32 %v3389_v45, %v3271_v10 }
 0xa36   :  { %5234 = vrcp.f32 %v3580_v53  ;;  %v3581_v58 = vadd.f32 1.0, %v5225_v41 }
 0xa37   :  { %v4246_v39 = vmul.f32 -1.442695, %v3456_v52  ;;  %v3457_v8 = vadd.f32 %v6586_v27, %v3421_v60 }
 0xa38   :  { %v5227_v44 = vpop.eup %5226  ;;  %5236 = vrcp.f32 %v3581_v58 }
 0xa39   :  { %5238 = vpow2.f32 %v4246_v39  ;;  %v4247_v47 = vmul.f32 -1.442695, %v3457_v8  ;;  %v6664_v19 = vpop.f32.mrb[200].mxu1  ;;  %v6669_v62 = vmul.f32 %v5227_v44, %v6608_v29  ;;  %v7105_v44 = vld [vmem:[#allocation29_spill] sm:$0xff] }
 0xa3a   :  { %v5229_v63 = vpop.eup %5228  ;;  %v3277_v23 = vpop.f32.mrb[201].mxu1 }
 0xa3b   :  { %v5231_v7 = vpop.eup %5230  ;;  %5240 = vpow2.f32 %v4247_v47  ;;  %v3422_v28 = vadd.f32 %v3390_v31, %v3277_v23  ;;  %v6671_v50 = vpop.f32.mrb[202].mxu1  ;;  %v6676_v12 = vmul.f32 %v5229_v63, %v6612_v21  ;;  %v3392_v47 = vmul.f32 %v7105_v44, %v6581_v55 }
 0xa3c   :  { %v3582_v16 = vadd.f32 1.0, %v5231_v7  ;;  %v3281_v45 = vpop.f32.mrb[203].mxu1 }
 0xa3d   :  { %v5233_v53 = vpop.eup %5232  ;;  %v3458_v10 = vadd.f32 %v6586_v27, %v3422_v28  ;;  %v3423_v29 = vadd.f32 %v3391_v17, %v3281_v45  ;;  %v3393_v17 = vmul.f32 %v7106_v20, %v6581_v55 }
 0xa3e   :  { %5242 = vrcp.f32 %v3582_v16  ;;  %v3583_v52 = vadd.f32 1.0, %v5233_v53 }
 0xa3f   :  { %v4248_v60 = vmul.f32 -1.442695, %v3458_v10  ;;  %v3459_v58 = vadd.f32 %v6586_v27, %v3423_v29 }
 0xa40   :  { %v5235_v39 = vpop.eup %5234  ;;  %5244 = vrcp.f32 %v3583_v52 }
 0xa41   :  { %5246 = vpow2.f32 %v4248_v60  ;;  %v4249_v8 = vmul.f32 -1.442695, %v3459_v58  ;;  %v6682_v21 = vpop.f32.mrb[204].mxu1  ;;  %v6687_v4 = vmul.f32 %v5235_v39, %v6618_v24 }
 0xa42   :  { %v5237_v31 = vpop.eup %5236  ;;  %v3287_v63 = vpop.f32.mrb[205].mxu1 }
 0xa43   :  { %v5239_v23 = vpop.eup %5238  ;;  %5248 = vpow2.f32 %v4249_v8  ;;  %v3424_v7 = vadd.f32 %v3392_v47, %v3287_v63  ;;  %v6689_v28 = vpop.f32.mrb[206].mxu1  ;;  %v6694_v16 = vmul.f32 %v5237_v31, %v6622_v61  ;;  %v7107_v47 = vld [vmem:[#allocation31_spill] sm:$0xff] }
 0xa44   :  { %v3584_v45 = vadd.f32 1.0, %v5239_v23  ;;  %v3291_v53 = vpop.f32.mrb[207].mxu1  ;;  %v3394_v31 = vmul.f32 %v7107_v47, %v6581_v55 }
 0xa45   :  { %v5241_v10 = vpop.eup %5240  ;;  %v3460_v29 = vadd.f32 %v6586_v27, %v3424_v7  ;;  %v3425_v24 = vadd.f32 %v3393_v17, %v3291_v53  ;;  %v7108_v53 = vld [vmem:[#allocation32_spill] sm:$0xff] }
 0xa46   :  { %5250 = vrcp.f32 %v3584_v45  ;;  %v3585_v60 = vadd.f32 1.0, %v5241_v10  ;;  %v3395_v10 = vmul.f32 %v7108_v53, %v6581_v55 }
 0xa47   :  { %v4250_v58 = vmul.f32 -1.442695, %v3460_v29  ;;  %v3461_v39 = vadd.f32 %v6586_v27, %v3425_v24 }
 0xa48   :  { %v5243_v8 = vpop.eup %5242  ;;  %5252 = vrcp.f32 %v3585_v60 }
 0xa49   :  { %5254 = vpow2.f32 %v4250_v58  ;;  %v4251_v44 = vmul.f32 -1.442695, %v3461_v39  ;;  %v6700_v61 = vpop.f32.mrb[208].mxu1  ;;  %v6705_v63 = vmul.f32 %v5243_v8, %v6628_v2 }
 0xa4a   :  { %v5245_v23 = vpop.eup %5244  ;;  %v3297_v7 = vpop.f32.mrb[209].mxu1 }
 0xa4b   :  { %v5247_v20 = vpop.eup %5246  ;;  %5256 = vpow2.f32 %v4251_v44  ;;  %v3426_v17 = vadd.f32 %v3394_v31, %v3297_v7  ;;  %v6707_v45 = vpop.f32.mrb[210].mxu1  ;;  %v6712_v29 = vmul.f32 %v5245_v23, %v6635_v13  ;;  %v7109_v23 = vld [vmem:[#allocation33_spill] sm:$0xff] }
 0xa4c   :  { %v3586_v24 = vadd.f32 1.0, %v5247_v20  ;;  %v3301_v60 = vpop.f32.mrb[211].mxu1  ;;  %v3396_v20 = vmul.f32 %v7109_v23, %v6581_v55 }
 0xa4d   :  { %v5249_v58 = vpop.eup %5248  ;;  %v3462_v39 = vadd.f32 %v6586_v27, %v3426_v17  ;;  %v3427_v2 = vadd.f32 %v3395_v10, %v3301_v60 }
 0xa4e   :  { %5258 = vrcp.f32 %v3586_v24  ;;  %v3587_v44 = vadd.f32 1.0, %v5249_v58 }
 0xa4f   :  { %v4252_v47 = vmul.f32 -1.442695, %v3462_v39  ;;  %v3463_v31 = vadd.f32 %v6586_v27, %v3427_v2  ;;  %v7110_v39 = vld [vmem:[#allocation34_spill] sm:$0xff] }
 0xa50   :  { %v5251_v7 = vpop.eup %5250  ;;  %5260 = vrcp.f32 %v3587_v44  ;;  %v3397_v2 = vmul.f32 %v7110_v39, %v6581_v55 }
 0xa51   :  { %5262 = vpow2.f32 %v4252_v47  ;;  %v4253_v53 = vmul.f32 -1.442695, %v3463_v31  ;;  %v6718_v13 = vpop.f32.mrb[212].mxu1  ;;  %v6723_v17 = vmul.f32 %v5251_v7, %v6646_v38 }
 0xa52   :  { %v5253_v10 = vpop.eup %5252  ;;  %v3307_v60 = vpop.f32.mrb[213].mxu1 }
 0xa53   :  { %v5255_v8 = vpop.eup %5254  ;;  %5264 = vpow2.f32 %v4253_v53  ;;  %v3428_v24 = vadd.f32 %v3396_v20, %v3307_v60  ;;  %v6725_v58 = vpop.f32.mrb[214].mxu1  ;;  %v6730_v44 = vmul.f32 %v5253_v10, %v6653_v40 }
 0xa54   :  { %v3588_v47 = vadd.f32 1.0, %v5255_v8  ;;  %v3311_v31 = vpop.f32.mrb[215].mxu1  ;;  %v7111_v8 = vld [vmem:[#allocation35_spill] sm:$0xff] }
 0xa55   :  { %v5257_v52 = vpop.eup %5256  ;;  %v3464_v23 = vadd.f32 %v6586_v27, %v3428_v24  ;;  %v3429_v38 = vadd.f32 %v3397_v2, %v3311_v31  ;;  %v3398_v10 = vmul.f32 %v7111_v8, %v6581_v55 }
 0xa56   :  { %5266 = vrcp.f32 %v3588_v47  ;;  %v3589_v53 = vadd.f32 1.0, %v5257_v52 }
 0xa57   :  { %v4254_v20 = vmul.f32 -1.442695, %v3464_v23  ;;  %v3465_v60 = vadd.f32 %v6586_v27, %v3429_v38  ;;  %v7112_v23 = vld [vmem:[#allocation36_spill] sm:$0xff] }
 0xa58   :  { %v5259_v41 = vpop.eup %5258  ;;  %5268 = vrcp.f32 %v3589_v53  ;;  %v3399_v38 = vmul.f32 %v7112_v23, %v6581_v55 }
 0xa59   :  { %5270 = vpow2.f32 %v4254_v20  ;;  %v4255_v39 = vmul.f32 -1.442695, %v3465_v60  ;;  %v6736_v40 = vpop.f32.mrb[216].mxu1  ;;  %v6741_v24 = vmul.f32 %v5259_v41, %v6664_v19 }
 0xa5a   :  { %v5261_v2 = vpop.eup %5260  ;;  %v3317_v31 = vpop.f32.mrb[217].mxu1 }
 0xa5b   :  { %v5263_v7 = vpop.eup %5262  ;;  %5272 = vpow2.f32 %v4255_v39  ;;  %v3430_v52 = vadd.f32 %v3398_v10, %v3317_v31  ;;  %v6743_v47 = vpop.f32.mrb[218].mxu1  ;;  %v6748_v53 = vmul.f32 %v5261_v2, %v6671_v50 }
 0xa5c   :  { %v3590_v20 = vadd.f32 1.0, %v5263_v7  ;;  %v3321_v60 = vpop.f32.mrb[219].mxu1  ;;  %v7113_v7 = vld [vmem:[#allocation37_spill] sm:$0xff] }
 0xa5d   :  { %v5265_v56 = vpop.eup %5264  ;;  %v3466_v8 = vadd.f32 %v6586_v27, %v3430_v52  ;;  %v3431_v19 = vadd.f32 %v3399_v38, %v3321_v60  ;;  %v3400_v2 = vmul.f32 %v7113_v7, %v6581_v55 }
 0xa5e   :  { %5274 = vrcp.f32 %v3590_v20  ;;  %v3591_v39 = vadd.f32 1.0, %v5265_v56 }
 0xa5f   :  { %v4256_v10 = vmul.f32 -1.442695, %v3466_v8  ;;  %v3467_v31 = vadd.f32 %v6586_v27, %v3431_v19  ;;  %v7114_v8 = vld [vmem:[#allocation38_spill] sm:$0xff] }
 0xa60   :  { %v5267_v34 = vpop.eup %5266  ;;  %5276 = vrcp.f32 %v3591_v39  ;;  %v3401_v19 = vmul.f32 %v7114_v8, %v6581_v55 }
 0xa61   :  { %5278 = vpow2.f32 %v4256_v10  ;;  %v4257_v23 = vmul.f32 -1.442695, %v3467_v31  ;;  %v6754_v50 = vpop.f32.mrb[220].mxu1  ;;  %v6759_v52 = vmul.f32 %v5267_v34, %v6682_v21 }
 0xa62   :  { %v5269_v38 = vpop.eup %5268  ;;  %v3327_v60 = vpop.f32.mrb[221].mxu1 }
 0xa63   :  { %v5271_v41 = vpop.eup %5270  ;;  %5280 = vpow2.f32 %v4257_v23  ;;  %v3432_v56 = vadd.f32 %v3400_v2, %v3327_v60  ;;  %v6761_v20 = vpop.f32.mrb[222].mxu1  ;;  %v6766_v39 = vmul.f32 %v5269_v38, %v6689_v28 }
 0xa64   :  { %v3592_v10 = vadd.f32 1.0, %v5271_v41  ;;  %v3331_v31 = vpop.f32.mrb[223].mxu1  ;;  %v7115_v41 = vld [vmem:[#allocation39_spill] sm:$0xff] }
 0xa65   :  { %v5273_v26 = vpop.eup %5272  ;;  %v3468_v7 = vadd.f32 %v6586_v27, %v3432_v56  ;;  %v3433_v34 = vadd.f32 %v3401_v19, %v3331_v31  ;;  %v3402_v38 = vmul.f32 %v7115_v41, %v6581_v55 }
 0xa66   :  { %5282 = vrcp.f32 %v3592_v10  ;;  %v3593_v23 = vadd.f32 1.0, %v5273_v26 }
 0xa67   :  { %v4258_v2 = vmul.f32 -1.442695, %v3468_v7  ;;  %v3469_v60 = vadd.f32 %v6586_v27, %v3433_v34  ;;  %v3403_v7 = vmul.f32 %v7070_v49, %v6581_v55  ;;  %v7116_v49 = vpack.c.bf16 %v6640_v15, %v6633_v5 }
 0xa68   :  { %v5275_v33 = vpop.eup %5274  ;;  %5284 = vrcp.f32 %v3593_v23  ;;  %v3405_v5 = vmul.f32 %v5971_v43, %v6581_v55  ;;  %v7117_v43 = vpack.c.bf16 %v6658_v48, %v6651_v36  ;;  %v3407_v36 = vmul.f32 %v5990_v32, %v6581_v55 }
 0xa69   :  { %5286 = vpow2.f32 %v4258_v2  ;;  %v4259_v8 = vmul.f32 -1.442695, %v3469_v60  ;;  %v6772_v28 = vpop.f32.mrb[224].mxu1  ;;  %v3686_v56 = vmul.f32 %v5275_v33, %v6700_v61  ;;  %v7118_v32 = vpack.c.bf16 %v6676_v12, %v6669_v62 }
 0xa6a   :  { %v5277_v19 = vpop.eup %5276  ;;  %v3337_v31 = vpop.f32.mrb[225].mxu1 }
 0xa6b   :  { %v5279_v3 = vpop.eup %5278  ;;  %5288 = vpow2.f32 %v4259_v8  ;;  %v3434_v10 = vadd.f32 %v3402_v38, %v3337_v31  ;;  %v6777_v26 = vpop.f32.mrb[226].mxu1  ;;  %v3687_v34 = vmul.f32 %v5277_v19, %v6707_v45  ;;  %v3404_v19 = vmul.f32 %v5968_v35, %v6581_v55 }
 0xa6c   :  { %v3594_v23 = vadd.f32 1.0, %v5279_v3  ;;  %v3341_v2 = vpop.f32.mrb[227].mxu1 }
 0xa6d   :  { %v5281_v60 = vpop.eup %5280  ;;  %v3470_v21 = vadd.f32 %v6586_v27, %v3434_v10  ;;  %v3435_v41 = vadd.f32 %v3403_v7, %v3341_v2  ;;  %v3710_v42 = vpack.c.bf16 %v3687_v34, %v3686_v56 }
 0xa6e   :  { %5290 = vrcp.f32 %v3594_v23  ;;  %v3595_v33 = vadd.f32 1.0, %v5281_v60 }
 0xa6f   :  { %v4260_v61 = vmul.f32 -1.442695, %v3470_v21  ;;  %v3471_v8 = vadd.f32 %v6586_v27, %v3435_v41  ;;  %4528 = vmatprep.subr.bf16.mxu0 %v3710_v42 }
 0xa70   :  { %v5283_v38 = vpop.eup %5282  ;;  %5292 = vrcp.f32 %v3595_v33  ;;  %4529 = vmatpush3.bf16.msra.mxu0 %v7116_v49  ;;  %v3406_v49 = vmul.f32 %v5987_v54, %v6581_v55 }
 0xa71   :  { %5294 = vpow2.f32 %v4260_v61  ;;  %v4261_v3 = vmul.f32 -1.442695, %v3471_v8  ;;  %v6787_v45 = vpop.f32.mrb[228].mxu1  ;;  %v3688_v56 = vmul.f32 %v5283_v38, %v6718_v13 }
 0xa72   :  { %v5285_v31 = vpop.eup %5284  ;;  %v3347_v21 = vpop.f32.mrb[229].mxu1 }
 0xa73   :  { %v5287_v10 = vpop.eup %5286  ;;  %5296 = vpow2.f32 %v4261_v3  ;;  %v3436_v42 = vadd.f32 %v3404_v19, %v3347_v21  ;;  %v6792_v7 = vpop.f32.mrb[230].mxu1  ;;  %v3689_v15 = vmul.f32 %v5285_v31, %v6725_v58 }
 0xa74   :  { %v3596_v34 = vadd.f32 1.0, %v5287_v10  ;;  %v3351_v23 = vpop.f32.mrb[231].mxu1 }
 0xa75   :  { %v5289_v2 = vpop.eup %5288  ;;  %v3472_v60 = vadd.f32 %v6586_v27, %v3436_v42  ;;  %v3437_v35 = vadd.f32 %v3405_v5, %v3351_v23  ;;  %v3711_v41 = vpack.c.bf16 %v3689_v15, %v3688_v56 }
 0xa76   :  { %5298 = vrcp.f32 %v3596_v34  ;;  %v3597_v13 = vadd.f32 1.0, %v5289_v2 }
 0xa77   :  { %v4262_v33 = vmul.f32 -1.442695, %v3472_v60  ;;  %v3473_v61 = vadd.f32 %v6586_v27, %v3437_v35  ;;  %4530 = vmatprep.subr.bf16.mxu0 %v3711_v41 }
 0xa78   :  { %v5291_v8 = vpop.eup %5290  ;;  %5300 = vrcp.f32 %v3597_v13  ;;  %4531 = vmatpush3.bf16.msra.mxu0 %v7117_v43  ;;  %v3408_v13 = vmul.f32 %v6006_v59, %v6581_v55 }
 0xa79   :  { %5302 = vpow2.f32 %v4262_v33  ;;  %v4263_v58 = vmul.f32 -1.442695, %v3473_v61  ;;  %v6802_v38 = vpop.f32.mrb[232].mxu1  ;;  %v3690_v3 = vmul.f32 %v5291_v8, %v6736_v40 }
 0xa7a   :  { %v5293_v19 = vpop.eup %5292  ;;  %v3357_v56 = vpop.f32.mrb[233].mxu1 }
 0xa7b   :  { %v5295_v31 = vpop.eup %5294  ;;  %5304 = vpow2.f32 %v4263_v58  ;;  %v3438_v21 = vadd.f32 %v3406_v49, %v3357_v56  ;;  %v6807_v10 = vpop.f32.mrb[234].mxu1  ;;  %v3691_v48 = vmul.f32 %v5293_v19, %v6743_v47 }
 0xa7c   :  { %v3598_v42 = vadd.f32 1.0, %v5295_v31  ;;  %v3361_v5 = vpop.f32.mrb[235].mxu1 }
 0xa7d   :  { %v5297_v15 = vpop.eup %5296  ;;  %v3474_v34 = vadd.f32 %v6586_v27, %v3438_v21  ;;  %v3439_v54 = vadd.f32 %v3407_v36, %v3361_v5  ;;  %v3712_v23 = vpack.c.bf16 %v3691_v48, %v3690_v3  ;;  %v3409_v3 = vmul.f32 %v6009_v51, %v6581_v55 }
 0xa7e   :  { %5306 = vrcp.f32 %v3598_v42  ;;  %v3599_v40 = vadd.f32 1.0, %v5297_v15  ;;  %v7119_v51 = vpack.c.bf16 %v6694_v16, %v6687_v4  ;;  %v7120_v4 = vpack.c.bf16 %v6712_v29, %v6705_v63 }
 0xa7f   :  { %v4264_v2 = vmul.f32 -1.442695, %v3474_v34  ;;  %v3475_v60 = vadd.f32 %v6586_v27, %v3439_v54  ;;  %4532 = vmatprep.subr.bf16.mxu0 %v3712_v23 }
 0xa80   :  { %v5299_v35 = vpop.eup %5298  ;;  %5308 = vrcp.f32 %v3599_v40  ;;  %4533 = vmatpush3.bf16.msra.mxu0 %v7118_v32 }
 0xa81   :  { %5310 = vpow2.f32 %v4264_v2  ;;  %v4265_v47 = vmul.f32 -1.442695, %v3475_v60  ;;  %v3365_v41 = vpop.f32.mrb[236].mxu1  ;;  %v3692_v33 = vmul.f32 %v5299_v35, %v6754_v50 }
 0xa82   :  { %v5301_v61 = vpop.eup %5300  ;;  %v3367_v8 = vpop.f32.mrb[237].mxu1 }
 0xa83   :  { %v5303_v43 = vpop.eup %5302  ;;  %5312 = vpow2.f32 %v4265_v47  ;;  %v3440_v58 = vadd.f32 %v3408_v13, %v3367_v8  ;;  %v3369_v49 = vpop.f32.mrb[238].mxu1  ;;  %v3693_v62 = vmul.f32 %v5301_v61, %v6761_v20  ;;  %v7121_v61 = vpack.c.bf16 %v6730_v44, %v6723_v17  ;;  %v5381_v44 = vld [vmem:[#allocation5] ss:$8 sps:$4 sm:$0xff]  }
 0xa84   :  { %v3600_v12 = vadd.f32 1.0, %v5303_v43  ;;  %v3371_v19 = vpop.f32.mrb[239].mxu1  ;;  %v7122_v43 = vpack.c.bf16 %v6748_v53, %v6741_v24  ;;  %v7123_v17 = vpack.c.bf16 %v6766_v39, %v6759_v52  ;;  %v5386_v24 = vld [vmem:[#allocation5 + $0x34] ss:$8 sps:$4 sm:$0xff]   ;;  %v5387_v53 = vld [vmem:[#allocation5 + $0x30] ss:$8 sps:$4 sm:$0xff]  }
 0xa85   :  { %v5305_v56 = vpop.eup %5304  ;;  %v3476_v31 = vadd.f32 %v6586_v27, %v3440_v58  ;;  %v3441_v21 = vadd.f32 %v3409_v3, %v3371_v19  ;;  %v3713_v59 = vpack.c.bf16 %v3693_v62, %v3692_v33  ;;  %v5384_v19 = vld [vmem:[#allocation5 + $0x24] ss:$8 sps:$4 sm:$0xff]   ;;  %v5390_v52 = vld [vmem:[#allocation5 + $0x54] ss:$8 sps:$4 sm:$0xff]   ;;  %v5391_v39 = vld [vmem:[#allocation5 + $0x50] ss:$8 sps:$4 sm:$0xff]  }
 0xa86   :  { %5314 = vrcp.f32 %v3600_v12  ;;  %v3601_v50 = vadd.f32 1.0, %v5305_v56  ;;  %v5385_v56 = vld [vmem:[#allocation5 + $0x20] ss:$8 sps:$4 sm:$0xff]  }
 0xa87   :  { %v4266_v36 = vmul.f32 -1.442695, %v3476_v31  ;;  %v3477_v48 = vadd.f32 %v6586_v27, %v3441_v21  ;;  %4534 = vmatprep.subr.bf16.mxu0 %v3713_v59  ;;  %v5392_v31 = vld [vmem:[#allocation5 + $0x64] ss:$8 sps:$4 sm:$0xff]   ;;  %v5393_v21 = vld [vmem:[#allocation5 + $0x60] ss:$8 sps:$4 sm:$0xff]  }
 0xa88   :  { %v5307_v42 = vpop.eup %5306  ;;  %5316 = vrcp.f32 %v3601_v50  ;;  %4535 = vmatpush3.bf16.msra.mxu0 %v7119_v51  ;;  %v5394_v59 = vld [vmem:[#allocation5 + $0x74] ss:$8 sps:$4 sm:$0xff]   ;;  %v5395_v50 = vld [vmem:[#allocation5 + $0x70] ss:$8 sps:$4 sm:$0xff]  }
 0xa89   :  { %5318 = vpow2.f32 %v4266_v36  ;;  %v4267_v55 = vmul.f32 -1.442695, %v3477_v48  ;;  %v3694_v20 = vmul.f32 %v5307_v42, %v6772_v28  ;;  %v5526_v36 = vmov 0.0  }
 0xa8a   :  { %v5309_v5 = vpop.eup %5308 }
 0xa8b   :  { %v5311_v15 = vpop.eup %5310  ;;  %5320 = vpow2.f32 %v4267_v55  ;;  %v3695_v34 = vmul.f32 %v5309_v5, %v6777_v26  ;;  %v6849_v55 = vld [vmem:[#allocation8 + $0x8] sm:$0xff] }
 0xa8c   :  { %v3602_v54 = vadd.f32 1.0, %v5311_v15 }
 0xa8d   :  { %v5313_v23 = vpop.eup %5312  ;;  %v3714_v40 = vpack.c.bf16 %v3695_v34, %v3694_v20  ;;  %v7124_v20 = vsub.s32 3, %v5611_v30 }
 0xa8e   :  { %5322 = vrcp.f32 %v3602_v54  ;;  %v3603_v27 = vadd.f32 1.0, %v5313_v23  ;;  %v7125_v23 = vsub.s32 4, %v5611_v30 }
 0xa8f   :  { %4536 = vmatprep.subr.bf16.mxu0 %v3714_v40  ;;  %v6854_v5 = vrot.slane %v6849_v55, %v7124_v20 }
 0xa90   :  { %v5315_v2 = vpop.eup %5314  ;;  %5324 = vrcp.f32 %v3603_v27  ;;  %4537 = vmatpush3.bf16.msra.mxu0 %v7120_v4  ;;  %v6860_v40 = vrot.slane %v6849_v55, %v7125_v23 }
 0xa91   :  { %v3696_v16 = vmul.f32 %v5315_v2, %v6787_v45 }
 0xa92   :  { %v5317_v28 = vpop.eup %5316 }
 0xa93   :  { %v5319_v60 = vpop.eup %5318  ;;  %v3697_v35 = vmul.f32 %v5317_v28, %v6792_v7 }
 0xa94   :  { %v3604_v32 = vadd.f32 1.0, %v5319_v60 }
 0xa95   :  { %v5321_v26 = vpop.eup %5320  ;;  %v3715_v47 = vpack.c.bf16 %v3697_v35, %v3696_v16 }
 0xa96   :  { %5326 = vrcp.f32 %v3604_v32  ;;  %v3605_v13 = vadd.f32 1.0, %v5321_v26 }
 0xa97   :  { %4538 = vmatprep.subr.bf16.mxu0 %v3715_v47 }
 0xa98   :  { %v5323_v33 = vpop.eup %5322  ;;  %5328 = vrcp.f32 %v3605_v13  ;;  %4539 = vmatpush3.bf16.msra.mxu0 %v7121_v61 }
 0xa99   :  { %v3698_v63 = vmul.f32 %v5323_v33, %v6802_v38  ;;  %v5382_v38 = vld [vmem:[#allocation5 + $0x14] ss:$8 sps:$4 sm:$0xff]  }
 0xa9a   :  { %v5325_v29 = vpop.eup %5324 }
 0xa9b   :  { %v3699_v45 = vmul.f32 %v5325_v29, %v6807_v10  ;;  %v5383_v10 = vld [vmem:[#allocation5 + $0x10] ss:$8 sps:$4 sm:$0xff]  }
 0xa9d   :  { %v3716_v8 = vpack.c.bf16 %v3699_v45, %v3698_v63 }
 0xa9f   :  { %4540 = vmatprep.subr.bf16.mxu0 %v3716_v8 }
 0xaa0   :  { %v5327_v7 = vpop.eup %5326  ;;  %4541 = vmatpush3.bf16.msra.mxu0 %v7122_v43 }
 0xaa1   :  { %v3700_v58 = vmul.f32 %v5327_v7, %v3365_v41  ;;  %v5388_v41 = vld [vmem:[#allocation5 + $0x44] ss:$8 sps:$4 sm:$0xff]  }
 0xaa2   :  { %v5329_v3 = vpop.eup %5328 }
 0xaa3   :  { %v3701_v62 = vmul.f32 %v5329_v3, %v3369_v49  ;;  %v5389_v49 = vld [vmem:[#allocation5 + $0x40] ss:$8 sps:$4 sm:$0xff]  }
 0xaa5   :  { %v3717_v12 = vpack.c.bf16 %v3701_v62, %v3700_v58 }
 0xaa7   :  { %4542 = vmatprep.subr.bf16.mxu0 %v3717_v12 }
 0xaa8   :  { %4543 = vmatpush3.bf16.msra.mxu0 %v7123_v17 }
 0xaa9   :  { %4710 = vmatprep.subr.bf16.mxu0 %v5526_v36 }
 0xaab   :  { %3751 = vmatmul.mubr.bf16.vlgmr.msra.gmra.mrb[176].mxu0 %v5381_v44 }
 0xaac   :  { %3758 = vmatprep.mubr.bf16.mxu0 %v5382_v38 }
 0xab3   :  { %3759 = vmatmul.mubr.bf16.gmra.mrb[180].mxu0 %v5383_v10 }
 0xab4   :  { %3766 = vmatprep.mubr.bf16.mxu0 %v5384_v19 }
 0xabb   :  { %3767 = vmatmul.mubr.bf16.gmra.mrb[184].mxu0 %v5385_v56 }
 0xabc   :  { %3774 = vmatprep.mubr.bf16.mxu0 %v5386_v24 }
 0xac3   :  { %3775 = vmatmul.mubr.bf16.gmra.mrb[188].mxu0 %v5387_v53 }
 0xac4   :  { %3782 = vmatprep.mubr.bf16.mxu0 %v5388_v41 }
 0xacb   :  { %3783 = vmatmul.mubr.bf16.gmra.mrb[192].mxu0 %v5389_v49 }
 0xacc   :  { %3790 = vmatprep.mubr.bf16.mxu0 %v5390_v52 }
 0xad3   :  { %3791 = vmatmul.mubr.bf16.gmra.mrb[196].mxu0 %v5391_v39 }
 0xad4   :  { %3798 = vmatprep.mubr.bf16.mxu0 %v5392_v31 }
 0xadb   :  { %3799 = vmatmul.mubr.bf16.gmra.mrb[200].mxu0 %v5393_v21 }
 0xadc   :  { %3806 = vmatprep.mubr.bf16.mxu0 %v5394_v59 }
 0xae3   :  { %3807 = vmatmul.mubr.bf16.gmra.mrb[204].mxu0 %v5395_v50 }
 0xae4   :  { %4726 = vmatprep.mubr.msk.bf16.mxu0 %vm5527_vm1, %v5526_v36 }
 0xb7e   :  { %v4544_v48 = vpop.f32.mrb[176].mxu0 }
 0xb7f   :  { %v4545_v42 = vpop.f32.mrb[177].mxu0 }
 0xb80   :  { %v4546_v51 = vadd.f32 %v4545_v42, %v4544_v48  ;;  %v4547_v15 = vpop.f32.mrb[178].mxu0 }
 0xb81   :  { %v4548_v34 = vpop.f32.mrb[179].mxu0 }
 0xb82   :  { %v3815_v54 = vadd.f32 %v4546_v51, %v6533_v18  ;;  %v4549_v27 = vadd.f32 %v4548_v34, %v4547_v15 }
 0xb84   :  { %v3835_v2 = vmul.f32 %v6854_v5, %v3815_v54  ;;  %v3816_v4 = vadd.f32 %v4549_v27, %v6537_v1 }
 0xb86   :  { %v3855_v16 = vadd.f32 %v6860_v40, %v3835_v2  ;;  %v3836_v28 = vmul.f32 %v6854_v5, %v3816_v4  ;;  %v4550_v60 = vpop.f32.mrb[180].mxu0 }
 0xb87   :  { %v4551_v35 = vpop.f32.mrb[181].mxu0 }
 0xb88   :  { %v3856_v32 = vadd.f32 %v6860_v40, %v3836_v28  ;;  %v4552_v26 = vadd.f32 %v4551_v35, %v4550_v60  ;;  %v4553_v18 = vpop.f32.mrb[182].mxu0  ;;  %v3871_v13 = vmax.f32 %v3855_v16, 0.0 }
 0xb89   :  { %v4554_v47 = vpop.f32.mrb[183].mxu0 }
 0xb8a   :  { %v3872_v33 = vmax.f32 %v3856_v32, 0.0  ;;  %v3817_v61 = vadd.f32 %v6531_v25, %v4552_v26  ;;  %v4555_v63 = vadd.f32 %v4554_v47, %v4553_v18 }
 0xb8c   :  { %v3837_v29 = vmul.f32 %v6854_v5, %v3817_v61  ;;  %v3818_v1 = vadd.f32 %v6535_v46, %v4555_v63  ;;  %v3887_v45 = vpack.c.bf16 %v3872_v33, %v3871_v13 }
 0xb8e   :  { %v3857_v8 = vadd.f32 %v6860_v40, %v3837_v29  ;;  %v3838_v7 = vmul.f32 %v6854_v5, %v3818_v1  ;;  %v4556_v43 = vpop.f32.mrb[184].mxu0  ;;  %4711 = vmatpush3.bf16.msra.mxu0 %v3887_v45 }
 0xb8f   :  { %v4557_v58 = vpop.f32.mrb[185].mxu0  ;;  %4712 = vmatprep.subr.bf16.mxu0 %v5526_v36 }
 0xb90   :  { %v3858_v3 = vadd.f32 %v6860_v40, %v3838_v7  ;;  %v4558_v62 = vadd.f32 %v4557_v58, %v4556_v43  ;;  %v4559_v12 = vpop.f32.mrb[186].mxu0  ;;  %v3873_v17 = vmax.f32 %v3857_v8, 0.0 }
 0xb91   :  { %v4560_v25 = vpop.f32.mrb[187].mxu0 }
 0xb92   :  { %v3874_v44 = vmax.f32 %v3858_v3, 0.0  ;;  %v3819_v38 = vadd.f32 %v4558_v62, %v6541_v14  ;;  %v4561_v46 = vadd.f32 %v4560_v25, %v4559_v12 }
 0xb94   :  { %v3839_v10 = vmul.f32 %v6854_v5, %v3819_v38  ;;  %v3820_v19 = vadd.f32 %v4561_v46, %v6545_v6  ;;  %v3888_v56 = vpack.c.bf16 %v3874_v44, %v3873_v17 }
 0xb96   :  { %v3859_v24 = vadd.f32 %v6860_v40, %v3839_v10  ;;  %v3840_v53 = vmul.f32 %v6854_v5, %v3820_v19  ;;  %v4562_v41 = vpop.f32.mrb[188].mxu0  ;;  %4713 = vmatpush3.bf16.msra.mxu0 %v3888_v56  ;;  %v7126_v10 = vld [vmem:[#allocation41_spill] sm:$0xff] }
 0xb97   :  { %v4563_v49 = vpop.f32.mrb[189].mxu0  ;;  %4714 = vmatprep.subr.bf16.mxu0 %v5526_v36 }
 0xb98   :  { %v3860_v52 = vadd.f32 %v6860_v40, %v3840_v53  ;;  %v4564_v39 = vadd.f32 %v4563_v49, %v4562_v41  ;;  %v4565_v31 = vpop.f32.mrb[190].mxu0  ;;  %v3875_v21 = vmax.f32 %v3859_v24, 0.0  ;;  %v7127_v24 = vld [vmem:[#allocation45_spill] sm:$0xff] }
 0xb99   :  { %v4566_v14 = vpop.f32.mrb[191].mxu0 }
 0xb9a   :  { %v3876_v59 = vmax.f32 %v3860_v52, 0.0  ;;  %v3821_v50 = vadd.f32 %v6539_v37, %v4564_v39  ;;  %v4567_v6 = vadd.f32 %v4566_v14, %v4565_v31 }
 0xb9c   :  { %v3841_v48 = vmul.f32 %v6854_v5, %v3821_v50  ;;  %v3822_v42 = vadd.f32 %v6543_v22, %v4567_v6  ;;  %v3889_v51 = vpack.c.bf16 %v3876_v59, %v3875_v21 }
 0xb9e   :  { %v3861_v20 = vadd.f32 %v6860_v40, %v3841_v48  ;;  %v3842_v15 = vmul.f32 %v6854_v5, %v3822_v42  ;;  %v4568_v34 = vpop.f32.mrb[192].mxu0  ;;  %4715 = vmatpush3.bf16.msra.mxu0 %v3889_v51  ;;  %v7128_v42 = vld [vmem:[#allocation40_spill] sm:$0xff] }
 0xb9f   :  { %v4569_v54 = vpop.f32.mrb[193].mxu0  ;;  %4716 = vmatprep.subr.bf16.mxu0 %v5526_v36 }
 0xba0   :  { %v3862_v23 = vadd.f32 %v6860_v40, %v3842_v15  ;;  %v4570_v27 = vadd.f32 %v4569_v54, %v4568_v34  ;;  %v4571_v2 = vpop.f32.mrb[194].mxu0  ;;  %v3877_v4 = vmax.f32 %v3861_v20, 0.0  ;;  %v7129_v34 = vld [vmem:[#allocation43_spill] sm:$0xff] }
 0xba1   :  { %v4572_v37 = vpop.f32.mrb[195].mxu0 }
 0xba2   :  { %v3878_v16 = vmax.f32 %v3862_v23, 0.0  ;;  %v3823_v28 = vadd.f32 %v4570_v27, %v6549_v11  ;;  %v4573_v22 = vadd.f32 %v4572_v37, %v4571_v2 }
 0xba4   :  { %v3843_v60 = vmul.f32 %v6854_v5, %v3823_v28  ;;  %v3824_v35 = vadd.f32 %v4573_v22, %v6553_v0  ;;  %v3890_v32 = vpack.c.bf16 %v3878_v16, %v3877_v4  ;;  %v124_v22 = vld [vmem:[#allocation2 + $0xc0] sm:$0xf] }
 0xba6   :  { %v3863_v26 = vadd.f32 %v6860_v40, %v3843_v60  ;;  %v3844_v18 = vmul.f32 %v6854_v5, %v3824_v35  ;;  %v4574_v47 = vpop.f32.mrb[196].mxu0  ;;  %4717 = vmatpush3.bf16.msra.mxu0 %v3890_v32  ;;  %v4942_v60 = vld [vmem:[#allocation7 + $0x1e0] ss:$12 sps:$4 sm:$0xff]   ;;  %v4943_v35 = vld [vmem:[#allocation7 + $0x1f8] ss:$12 sps:$4 sm:$0xff]  }
 0xba7   :  { %v4575_v13 = vpop.f32.mrb[197].mxu0  ;;  %4718 = vmatprep.subr.bf16.mxu0 %v5526_v36 }
 0xba8   :  { %v3864_v33 = vadd.f32 %v6860_v40, %v3844_v18  ;;  %v4576_v61 = vadd.f32 %v4575_v13, %v4574_v47  ;;  %v4577_v63 = vpop.f32.mrb[198].mxu0  ;;  %v3879_v29 = vmax.f32 %v3863_v26, 0.0 }
 0xba9   :  { %v4578_v11 = vpop.f32.mrb[199].mxu0 }
 0xbaa   :  { %v3880_v1 = vmax.f32 %v3864_v33, 0.0  ;;  %v3825_v45 = vadd.f32 %v6547_v57, %v4576_v61  ;;  %v4579_v0 = vadd.f32 %v4578_v11, %v4577_v63  ;;  %v7130_v33 = vsub.s32 5, %v5611_v30 }
 0xbab   :  { %v7131_v63 = vsub.s32 6, %v5611_v30 }
 0xbac   :  { %v3845_v8 = vmul.f32 %v6854_v5, %v3825_v45  ;;  %v3826_v7 = vadd.f32 %v6551_v9, %v4579_v0  ;;  %v3891_v43 = vpack.c.bf16 %v3880_v1, %v3879_v29  ;;  %v4014_v61 = vrot.slane %v6849_v55, %v7130_v33 }
 0xbad   :  { %v4019_v11 = vrot.slane %v6849_v55, %v7131_v63 }
 0xbae   :  { %v3865_v58 = vadd.f32 %v6860_v40, %v3845_v8  ;;  %v3846_v3 = vmul.f32 %v6854_v5, %v3826_v7  ;;  %v4580_v62 = vpop.f32.mrb[200].mxu0  ;;  %4719 = vmatpush3.bf16.msra.mxu0 %v3891_v43 }
 0xbaf   :  { %v4581_v12 = vpop.f32.mrb[201].mxu0  ;;  %4720 = vmatprep.subr.bf16.mxu0 %v5526_v36 }
 0xbb0   :  { %v3866_v25 = vadd.f32 %v6860_v40, %v3846_v3  ;;  %v4582_v17 = vadd.f32 %v4581_v12, %v4580_v62  ;;  %v4583_v44 = vpop.f32.mrb[202].mxu0  ;;  %v3881_v38 = vmax.f32 %v3865_v58, 0.0 }
 0xbb1   :  { %v4584_v57 = vpop.f32.mrb[203].mxu0 }
 0xbb2   :  { %v3882_v46 = vmax.f32 %v3866_v25, 0.0  ;;  %v3827_v19 = vadd.f32 %v4582_v17, %v7126_v10  ;;  %v4585_v9 = vadd.f32 %v4584_v57, %v4583_v44 }
 0xbb4   :  { %v3847_v56 = vmul.f32 %v6854_v5, %v3827_v19  ;;  %v3828_v53 = vadd.f32 %v4585_v9, %v7127_v24  ;;  %v3892_v41 = vpack.c.bf16 %v3882_v46, %v3881_v38 }
 0xbb6   :  { %v3867_v49 = vadd.f32 %v6860_v40, %v3847_v56  ;;  %v3848_v52 = vmul.f32 %v6854_v5, %v3828_v53  ;;  %v4586_v39 = vpop.f32.mrb[204].mxu0  ;;  %4721 = vmatpush3.bf16.msra.mxu0 %v3892_v41 }
 0xbb7   :  { %v4587_v31 = vpop.f32.mrb[205].mxu0  ;;  %4722 = vmatprep.subr.bf16.mxu0 %v5526_v36 }
 0xbb8   :  { %v3868_v14 = vadd.f32 %v6860_v40, %v3848_v52  ;;  %v4588_v21 = vadd.f32 %v4587_v31, %v4586_v39  ;;  %v4589_v59 = vpop.f32.mrb[206].mxu0  ;;  %v3883_v6 = vmax.f32 %v3867_v49, 0.0 }
 0xbb9   :  { %v4590_v50 = vpop.f32.mrb[207].mxu0 }
 0xbba   :  { %v3884_v48 = vmax.f32 %v3868_v14, 0.0  ;;  %v3829_v51 = vadd.f32 %v7128_v42, %v4588_v21  ;;  %v4591_v20 = vadd.f32 %v4590_v50, %v4589_v59 }
 0xbbc   :  { %v3849_v15 = vmul.f32 %v6854_v5, %v3829_v51  ;;  %v3830_v54 = vadd.f32 %v7129_v34, %v4591_v20  ;;  %v3893_v23 = vpack.c.bf16 %v3884_v48, %v3883_v6 }
 0xbbe   :  { %v3869_v27 = vadd.f32 %v6860_v40, %v3849_v15  ;;  %v3850_v2 = vmul.f32 %v6854_v5, %v3830_v54  ;;  %4723 = vmatpush3.bf16.msra.mxu0 %v3893_v23  ;;  %v4944_v5 = vld [vmem:[#allocation7 + $0x210] ss:$12 sps:$4 sm:$0xff]  }
 0xbbf   :  { %4724 = vmatprep.subr.bf16.mxu0 %v5526_v36 }
 0xbc0   :  { %v3870_v37 = vadd.f32 %v6860_v40, %v3850_v2  ;;  %v3885_v4 = vmax.f32 %v3869_v27, 0.0  ;;  %v4945_v40 = vld [vmem:[#allocation7 + $0x228] ss:$12 sps:$4 sm:$0xff]  }
 0xbc2   :  { %v3886_v16 = vmax.f32 %v3870_v37, 0.0 }
 0xbc4   :  { %v3894_v28 = vpack.c.bf16 %v3886_v16, %v3885_v4 }
 0xbc6   :  { %4725 = vmatpush3.bf16.msra.mxu0 %v3894_v28 }
 0xbc7   :  { %4730 = vmatprep.subr.bf16.mxu0 %v5526_v36 }
 0xbc9   :  { %4727 = vmatmul.mubr.bf16.vlgmr.msra.gmra.mrb[208].mxu0 %v124_v22 }
 0xbca   :  { %4731 = vmatpush3.bf16.msra.mxu0 %v4942_v60  ;;  %4738 = vmatprep.mubr.msk.bf16.mxu0 %vm5527_vm1, %v5526_v36 }
 0xbcb   :  { %4732 = vmatprep.subr.bf16.mxu0 %v5526_v36 }
 0xbce   :  { %4733 = vmatpush3.bf16.msra.mxu0 %v4943_v35 }
 0xbcf   :  { %4734 = vmatprep.subr.bf16.mxu0 %v5526_v36 }
 0xbd2   :  { %4735 = vmatpush3.bf16.msra.mxu0 %v4944_v5 }
 0xbd3   :  { %4736 = vmatprep.subr.bf16.mxu0 %v5526_v36 }
 0xbd6   :  { %4737 = vmatpush3.bf16.msra.mxu0 %v4945_v40 }
 0xc9c   :  { %v3929_v32 = vpop.f32.mrb[208].mxu0 }
 0xc9d   :  { %v3943_v26 = vpack.c.bf16 %v3929_v32, %v3929_v32  ;;  %v4728_v18 = vpop.f32.mrb[209].mxu0 }
 0xc9e   :  { %v3932_v47 = vpop.f32.mrb[210].mxu0 }
 0xc9f   :  { %v4729_v13 = vpop.f32.mrb[211].mxu0  ;;  %4739 = vmatmul.mubr.msk.bf16.vlgmr.msra.gmra.mrb[212].mxu0 %vm506_vm0, %v3943_v26 }
 0xd72   :  { %v4005_v29 = vpop.f32.mrb[212].mxu0 }
 0xd73   :  { %v4015_v1 = vmul.f32 %v4014_v61, %v4005_v29  ;;  %v4740_v36 = vpop.f32.mrb[213].mxu0 }
 0xd74   :  { %v4008_v45 = vpop.f32.mrb[214].mxu0 }
 0xd75   :  { %v4020_v0 = vadd.f32 %v4019_v11, %v4015_v1  ;;  %v4741_v8 = vpop.f32.mrb[215].mxu0 }
 0xd77   :  { %v4021_v7 = vmax.f32 %v4020_v0, 0.0 }
 0xd79   :  { %4022 = vst [vmem:[#allocation10] sm:$0xff] %v4021_v7 }
 0xd7a   :  { %5496 = shalt.err (!%p5493_p8)
}
 0xd7b   :  { %s5497_s17 = scalar_lea.hbm %s6945_s4, 128 }
 0xd7c   :  { %p5498_p9 = scmp.ne.s32.totalorder %s6945_s4, %s5497_s17  ;;  %p5501_p10 = scmp.lt.u32.totalorder %s5497_s17, %s6945_s4 }
 0xd7e   :  { %p5503_p11 = pnand %p5501_p10, %p5498_p9 }
 0xd80   :  { %5506 = shalt.err (!%p5503_p11)
}
 0xd81   :  { %4032 = dma.vmem_to_hbm [thread:$0]  %s4030_s25, 128, %s6945_s4, [#allocation4]  }
 0xd82   :  { %5513 = dma.done.wait [#allocation4], 128  }
 0xd83   :  { %5514 = vsyncadd [#allocation4], 4294967168 }
 0xd84   :  { %4036 = vsyncpa [#allocation3], 1 }
 0xd85   :  { %4037 = vsyncpa [#allocation6], 1 }
 0xd86   :  { %4038 = vsyncpa [#allocation9], 1 }
 0xd87   :  { %4039 = vsyncpa [#allocation4], 1 }

</bundles_post_ra>
